<compile_context>
chip_gen: v6e
topology: v6e:2x2x1
jax: 0.10.0
libtpu: 0.0.40
codegen_flags: <defaults>
</compile_context>

<pallas_src>
import functools
import math

import jax
import jax.numpy as jnp
from jax.experimental import pallas as pl
from jax.experimental.pallas import tpu as pltpu  # noqa: F401  (TPU backend)

# ---------------- config (small, consistent with the module) ----------------
SEQ_LEN = 16          # configs.seq_len
PRED_LEN = 8          # configs.pred_len
D_MODEL = 32          # configs.d_model
N_HEADS = 2           # configs.n_heads
D_FF = 64             # configs.d_ff
ENC_IN = 4            # configs.enc_in (multivariate channels)
BATCH = 2             # configs.batch_size
E_LAYERS_TIME = 1     # configs.e_layers_time
E_LAYERS_VARIATE = 1  # configs.e_layers_variate
ALPHA = 0.5           # configs.alpha
KERNEL_SIZE = 25      # moving average kernel
EPS = 1e-5
NEG_INF = -1e9
CONCAT_DIM = 16       # Linear_concat output width

LAYER_KEYS = ('wq_h', 'bq_h', 'wk_h', 'bk_h', 'wv_h', 'bv_h', 'wo_h', 'bo',
              'norm1_g', 'norm1_b', 'w1', 'b1', 'w2', 'b2', 'norm2_g', 'norm2_b')
N_LAYER_REFS = len(LAYER_KEYS)


# ======================= in-kernel helpers =======================

def _ln(x, g, b, eps=EPS):
    m = jnp.mean(x, axis=-1, keepdims=True)
    v = jnp.mean((x - m) * (x - m), axis=-1, keepdims=True)
    return (x - m) * jax.lax.rsqrt(v + eps) * g + b


def _encoder_layer(x, bias, layer_refs, *, n_heads, scale):
    """One post-norm transformer encoder layer on (M, D) tokens, all VMEM."""
    (wq_ref, bq_ref, wk_ref, bk_ref, wv_ref, bv_ref, wo_ref, bo_ref,
     n1g_ref, n1b_ref, w1_ref, b1_ref, w2_ref, b2_ref, n2g_ref, n2b_ref) = layer_refs
    M, D = x.shape

    attn = jnp.zeros((M, D), jnp.float32)
    for h in range(n_heads):                                          # static
        q = jnp.dot(x, wq_ref[h], preferred_element_type=jnp.float32) + bq_ref[h]
        k = jnp.dot(x, wk_ref[h], preferred_element_type=jnp.float32) + bk_ref[h]
        v = jnp.dot(x, wv_ref[h], preferred_element_type=jnp.float32) + bv_ref[h]
        s = jnp.dot(q, k.T, preferred_element_type=jnp.float32) * scale + bias
        s = s - jnp.max(s, axis=-1, keepdims=True)
        p = jnp.exp(s)
        p = p * pl.reciprocal(jnp.sum(p, axis=-1, keepdims=True), approx=True)
        o_h = jnp.dot(p, v, preferred_element_type=jnp.float32)       # (M, Dh)
        attn = attn + jnp.dot(o_h, wo_ref[h],
                              preferred_element_type=jnp.float32)     # out-proj
    attn = attn + bo_ref[...]

    x1 = _ln(x + attn, n1g_ref[...], n1b_ref[...])
    y = jnp.dot(x1, w1_ref[...], preferred_element_type=jnp.float32) + b1_ref[...]
    y = jax.nn.gelu(y, approximate=True)
    y = jnp.dot(y, w2_ref[...], preferred_element_type=jnp.float32) + b2_ref[...]
    return _ln(x1 + y, n2g_ref[...], n2b_ref[...])


# ======================= Pallas kernel 1: time path =======================

def _time_path_kernel(*refs, n_layers, n_heads, scale, eps):
    pos = [0]

    def take(n):
        out = refs[pos[0]:pos[0] + n]
        pos[0] += n
        return out

    (x_ref, rw_ref, rb_ref, avg_ref, wval_ref, bval_ref,
     g_ref, sel_ref, pet_ref, map_ref, tbias_ref) = take(11)
    layer_refs = [take(N_LAYER_REFS) for _ in range(n_layers)]
    encg_ref, encb_ref, wc_ref, bc_ref = take(4)
    cat_out, xn_out, trend_out, vemb_out, mean_out, std_out = take(6)

    # ---- RevIN 'norm' (per (batch, channel) row over time) ----
    # TODO(synk): RevIN source not provided; standard RevIN (mean/std over time, affine).
    x = x_ref[...].astype(jnp.float32)                                # (B*N, L)
    mean = jnp.mean(x, axis=-1, keepdims=True)
    var = jnp.mean((x - mean) * (x - mean), axis=-1, keepdims=True)
    stdev = jnp.sqrt(var + eps)
    xn = (x - mean) / stdev * rw_ref[...] + rb_ref[...]
    mean_out[...] = mean
    std_out[...] = stdev
    xn_out[...] = xn

    # ---- series decomposition: moving average as one (L, L) matmul ----
    trend = jnp.dot(xn, avg_ref[...], preferred_element_type=jnp.float32)
    seasonal = xn - trend
    trend_out[...] = trend

    # ---- value_embedding for the variate path (uses normalized series) ----
    vemb_out[...] = (jnp.dot(xn, wval_ref[...], preferred_element_type=jnp.float32)
                     + bval_ref[...])

    # ---- Embedding: tok[g*L+l, :] = seasonal[g, l] * mapping[l, :] + pe[l, :]
    #      built via one-hot expansion matmuls (no in-kernel reshape/transpose).
    s_big = (jnp.dot(g_ref[...], seasonal, preferred_element_type=jnp.float32)
             * sel_ref[...])                                          # (M, L)
    tok = (jnp.dot(s_big, map_ref[...], preferred_element_type=jnp.float32)
           + pet_ref[...])                                            # (M, D)

    # ---- e_layers_time post-norm encoder layers, all sequences at once with a
    #      block-diagonal additive bias (off-block = -1e9 -> exp == 0).
    # TODO(synk): EncoderLayer source not provided (extra seq_len ctor arg);
    # standard post-norm EncoderLayer with gelu FFN assumed.
    bias = tbias_ref[...].astype(jnp.float32)
    for lr in layer_refs:
        tok = _encoder_layer(tok, bias, lr, n_heads=n_heads, scale=scale)

    # ---- epilogue: final encoder LayerNorm + Linear_concat ----
    tok = _ln(tok, encg_ref[...], encb_ref[...])
    cat_out[...] = (jnp.dot(tok, wc_ref[...], preferred_element_type=jnp.float32)
                    + bc_ref[...])


def time_path_call(x_flat, params):
    BN, L = x_flat.shape
    M = BN * L
    n_layers = len(params['encoder_layers'])
    args = [x_flat, params['revin_w_col'], params['revin_b_col'], params['avg_t'],
            params['w_val_emb'], params['b_val_emb'],
            params['g_onehot'], params['sel_onehot'], params['pe_tiled'],
            params['mapping'], params['time_bias']]
    for lp in params['encoder_layers']:
        args += [lp[k] for k in LAYER_KEYS]
    args += [params['enc_norm_g'], params['enc_norm_b'],
             params['w_concat'], params['b_concat']]
    kernel = functools.partial(
        _time_path_kernel, n_layers=n_layers, n_heads=N_HEADS,
        scale=1.0 / math.sqrt(D_MODEL // N_HEADS), eps=EPS)
    return pl.pallas_call(
        kernel,
        out_shape=(jax.ShapeDtypeStruct((M, CONCAT_DIM), jnp.float32),   # concat out
                   jax.ShapeDtypeStruct((BN, L), jnp.float32),           # xn
                   jax.ShapeDtypeStruct((BN, L), jnp.float32),           # trend
                   jax.ShapeDtypeStruct((BN, D_MODEL), jnp.float32),     # value emb
                   jax.ShapeDtypeStruct((BN, 1), jnp.float32),           # mean
                   jax.ShapeDtypeStruct((BN, 1), jnp.float32)),          # stdev
    )(*args)


# ================ Pallas kernel 2: variate path + combine head ================

def _variate_combine_kernel(*refs, n_layers, n_heads, scale, eps):
    pos = [0]

    def take(n):
        out = refs[pos[0]:pos[0] + n]
        pos[0] += n
        return out

    vemb_ref, vbias_ref = take(2)
    layer_refs = [take(N_LAYER_REFS) for _ in range(n_layers)]
    (flat_ref, trend_ref, wsp_ref, bsp_ref, wtr_ref, btr_ref, wpr_ref, bpr_ref,
     wfc1_ref, wfc2_ref, bfc_ref, mean_ref, std_ref, rw_ref, rb_ref) = take(15)
    time_out, vari_out, fc_out = take(3)

    # ---- variate transformer with correlation mask as additive bias ----
    # TODO(synk): TransformerEncoder source not provided; standard post-norm
    # layer with the mask applied as an additive -1e9 bias assumed.
    x = vemb_ref[...].astype(jnp.float32)                             # (B*N, D)
    bias = vbias_ref[...].astype(jnp.float32)                         # (B*N, B*N)
    for lr in layer_refs:
        x = _encoder_layer(x, bias, lr, n_heads=n_heads, scale=scale)

    # ---- combine head: projector, seq_pred + trend, FC ----
    dec_vari = jnp.dot(x, wpr_ref[...], preferred_element_type=jnp.float32) + bpr_ref[...]
    dec_time = (jnp.dot(flat_ref[...], wsp_ref[...],
                        preferred_element_type=jnp.float32) + bsp_ref[...]
                + jnp.dot(trend_ref[...], wtr_ref[...],
                          preferred_element_type=jnp.float32) + btr_ref[...])
    dec_fc = (jnp.dot(dec_time, wfc1_ref[...], preferred_element_type=jnp.float32)
              + jnp.dot(dec_vari, wfc2_ref[...], preferred_element_type=jnp.float32)
              + bfc_ref[...])

    # ---- RevIN 'denorm' epilogue (per-row scale/shift) ----
    factor = std_ref[...] / (rw_ref[...] + eps * eps)
    shift = mean_ref[...] - rb_ref[...] * factor
    time_out[...] = dec_time * factor + shift
    vari_out[...] = dec_vari * factor + shift
    fc_out[...] = dec_fc * factor + shift


def variate_combine_call(vemb, vari_bias, flat_c, trend, mean_col, stdev_col, params):
    BN = vemb.shape[0]
    P = params['w_proj'].shape[1]
    n_layers = len(params['variate_layers'])
    args = [vemb, vari_bias]
    for lp in params['variate_layers']:
        args += [lp[k] for k in LAYER_KEYS]
    args += [flat_c, trend,
             params['w_seq_pred'], params['b_seq_pred'],
             params['w_trend'], params['b_trend'],
             params['w_proj'], params['b_proj'],
             params['w_fc1'], params['w_fc2'], params['b_fc'],
             mean_col, stdev_col, params['revin_w_col'], params['revin_b_col']]
    kernel = functools.partial(
        _variate_combine_kernel, n_layers=n_layers, n_heads=N_HEADS,
        scale=1.0 / math.sqrt(D_MODEL // N_HEADS), eps=EPS)
    return pl.pallas_call(
        kernel,
        out_shape=(jax.ShapeDtypeStruct((BN, P), jnp.float32),
                   jax.ShapeDtypeStruct((BN, P), jnp.float32),
                   jax.ShapeDtypeStruct((BN, P), jnp.float32)),
    )(*args)


# ======================= JAX glue (tiny XLA ops) =======================

def positional_embedding(L, D):
    pos = jnp.arange(L, dtype=jnp.float32)[:, None]
    div = jnp.exp(jnp.arange(0, D, 2, dtype=jnp.float32) * (-math.log(10000.0) / D))
    pe = jnp.zeros((L, D), jnp.float32)
    pe = pe.at[:, 0::2].set(jnp.sin(pos * div))
    pe = pe.at[:, 1::2].set(jnp.cos(pos * div))
    return pe


def correlation_bias(xn_flat, B, N, alpha):
    """Correlation-matrix mask (last batch element) -> (B*N, B*N) additive bias.
    Kept in plain XLA (4x16 matmul + elementwise): a Pallas call here is pure
    dispatch overhead."""
    data = xn_flat[(B - 1) * N:, :]                                   # (N, L)
    Lf = data.shape[1]
    centered = data - jnp.mean(data, axis=1, keepdims=True)
    cov = (centered @ centered.T) / (Lf - 1)
    std = jnp.sqrt(jnp.diag(cov))
    denom = std[:, None] * std[None, :]
    denom = jnp.where(denom == 0.0, 1.0, denom)
    corr = cov / denom
    corr = (corr + corr.T) / 2
    eye = jnp.eye(N, dtype=corr.dtype)
    corr = corr * (1 - eye) + eye
    msb = jnp.where(corr < alpha, NEG_INF, 0.0).astype(jnp.float32)   # (N, N)
    bidx = jnp.arange(B * N) // N
    same_b = bidx[:, None] == bidx[None, :]                           # (BN, BN)
    tiled = jnp.tile(msb, (B, B))                                     # (BN, BN)
    return jnp.where(same_b, tiled, NEG_INF).astype(jnp.float32)


# ======================= Model forward =======================

def model_forward(params, x_enc, x_mark_enc=None, x_dec=None, x_mark_dec=None):
    B, L, N = x_enc.shape
    P = PRED_LEN

    # channels-major flat layout (B*N, L) — pure layout op
    x_flat = jnp.swapaxes(x_enc, 1, 2).reshape(B * N, L)

    # --- Pallas call 1: RevIN + decomposition + embedding + time-path encoder ---
    (concat_out, xn_flat, trend, vemb,
     mean_col, stdev_col) = time_path_call(x_flat, params)

    # tokens are batch-major -> flatten is a plain reshape (no transpose)
    flat_c = concat_out.reshape(B * N, L * CONCAT_DIM)                # (B*N, 256)

    # correlation mask for the variate transformer (tiny, XLA)
    vari_bias = correlation_bias(xn_flat, B, N, ALPHA)                # (B*N, B*N)

    # --- Pallas call 2: variate transformer + combine head + denorm ---
    dec_time, dec_vari, dec_fc = variate_combine_call(
        vemb, vari_bias, flat_c, trend, mean_col, stdev_col, params)

    def to_bpn(v):
        return jnp.swapaxes(v.reshape(B, N, P), 1, 2)                 # (B, P, N)

    dec_out_time = to_bpn(dec_time)
    dec_out_vari = to_bpn(dec_vari)
    dec_out_ = to_bpn(dec_fc)
    return dec_out_[:, -P:, :], dec_out_time, dec_out_vari


# ======================= deterministic parameter init =======================

def init_params(key):
    keys = iter(jax.random.split(key, 64))
    H, Dh = N_HEADS, D_MODEL // N_HEADS
    BN = BATCH * ENC_IN
    M = BN * SEQ_LEN

    def lin(in_d, out_d):
        w = jax.random.normal(next(keys), (in_d, out_d), jnp.float32) * 0.02
        return w, jnp.zeros((out_d,), jnp.float32)

    def row(v):
        return v.reshape(1, -1)

    def attn_params():
        wq, bq = lin(D_MODEL, D_MODEL)
        wk, bk = lin(D_MODEL, D_MODEL)
        wv, bv = lin(D_MODEL, D_MODEL)
        wo, bo = lin(D_MODEL, D_MODEL)

        def per_head_w(w):   # (D, D) -> (H, D, Dh)
            return w.reshape(D_MODEL, H, Dh).transpose(1, 0, 2)

        def per_head_b(b):   # (D,) -> (H, 1, Dh)
            return b.reshape(H, 1, Dh)

        return dict(wq_h=per_head_w(wq), bq_h=per_head_b(bq),
                    wk_h=per_head_w(wk), bk_h=per_head_b(bk),
                    wv_h=per_head_w(wv), bv_h=per_head_b(bv),
                    wo_h=wo.reshape(H, Dh, D_MODEL), bo=row(bo))

    def enc_layer():
        w1, b1 = lin(D_MODEL, D_FF)
        w2, b2 = lin(D_FF, D_MODEL)
        d = attn_params()
        d.update(w1=w1, b1=row(b1), w2=w2, b2=row(b2),
                 norm1_g=jnp.ones((1, D_MODEL), jnp.float32),
                 norm1_b=jnp.zeros((1, D_MODEL), jnp.float32),
                 norm2_g=jnp.ones((1, D_MODEL), jnp.float32),
                 norm2_b=jnp.zeros((1, D_MODEL), jnp.float32))
        return d

    p = {}
    p['mapping'] = jax.random.normal(next(keys), (SEQ_LEN, D_MODEL), jnp.float32)
    pe = positional_embedding(SEQ_LEN, D_MODEL)
    p['revin_w'] = jnp.ones((ENC_IN,), jnp.float32)
    p['revin_b'] = jnp.zeros((ENC_IN,), jnp.float32)

    w, b = lin(SEQ_LEN, D_MODEL);        p['w_val_emb'], p['b_val_emb'] = w, row(b)
    w, b = lin(SEQ_LEN * 16, PRED_LEN);  p['w_seq_pred'], p['b_seq_pred'] = w, row(b)
    w, b = lin(D_MODEL, CONCAT_DIM);     p['w_concat'], p['b_concat'] = w, row(b)
    w, b = lin(D_MODEL, PRED_LEN);       p['w_proj'], p['b_proj'] = w, row(b)
    w, b = lin(SEQ_LEN, PRED_LEN);       p['w_trend'], p['b_trend'] = w, row(b)
    w_fc, b_fc = lin(PRED_LEN * 2, PRED_LEN)
    p['w_fc1'] = w_fc[:PRED_LEN]         # rows multiplying dec_out_time part
    p['w_fc2'] = w_fc[PRED_LEN:]         # rows multiplying dec_out_vari part
    p['b_fc'] = row(b_fc)

    p['encoder_layers'] = [enc_layer() for _ in range(E_LAYERS_TIME)]
    p['enc_norm_g'] = jnp.ones((1, D_MODEL), jnp.float32)
    p['enc_norm_b'] = jnp.zeros((1, D_MODEL), jnp.float32)
    p['variate_layers'] = [enc_layer() for _ in range(E_LAYERS_VARIATE)]

    # ---- precomputed constants (built once, outside the jit'd forward) ----
    # moving average with replicate padding folded into one (L, L) matrix:
    # trend[t] = sum_j avg[t, j] * x[j]
    pad = (KERNEL_SIZE - 1) // 2
    Lp = SEQ_LEN + 2 * pad
    posn = jnp.arange(Lp)
    src = jnp.clip(posn - pad, 0, SEQ_LEN - 1)
    t = jnp.arange(SEQ_LEN)
    window = ((posn[None, :] >= t[:, None]) &
              (posn[None, :] < t[:, None] + KERNEL_SIZE)).astype(jnp.float32)  # (L, Lp)
    one_hot_src = jax.nn.one_hot(src, SEQ_LEN, dtype=jnp.float32)              # (Lp, L)
    avg = (window @ one_hot_src) / float(KERNEL_SIZE)                          # (L, L)
    p['avg_t'] = avg.T                                                         # x @ avg_t -> trend

    # block-diagonal attention bias for the time path: each of the B*N length-L
    # sequences only attends within itself (off-block = -1e9 -> exp underflows to 0)
    r = jnp.arange(M)
    g = r // SEQ_LEN
    p['time_bias'] = jnp.where(g[:, None] == g[None, :], 0.0, NEG_INF).astype(jnp.float32)

    # one-hot expansion matrices for building the (M, D) embedding tokens
    # inside the kernel with matmuls only (no reshapes):
    #   tok = (g_onehot @ seasonal) * sel_onehot @ mapping + pe_tiled
    p['g_onehot'] = jax.nn.one_hot(g, BN, dtype=jnp.float32)                   # (M, BN)
    p['sel_onehot'] = jax.nn.one_hot(r % SEQ_LEN, SEQ_LEN, dtype=jnp.float32)  # (M, L)
    p['pe_tiled'] = jnp.tile(pe, (BN, 1))                                      # (M, D)

    # RevIN affine params expanded to per-(batch, channel)-row columns
    p['revin_w_col'] = jnp.tile(p['revin_w'], BATCH).reshape(BN, 1)
    p['revin_b_col'] = jnp.tile(p['revin_b'], BATCH).reshape(BN, 1)
    return p


if __name__ == "__main__":
    key = jax.random.PRNGKey(0)
    pkey, xkey = jax.random.split(key)
    params = init_params(pkey)

    x_enc = jax.random.normal(xkey, (BATCH, SEQ_LEN, ENC_IN), jnp.float32)
    x_mark_enc = jnp.zeros((BATCH, SEQ_LEN, 4), jnp.float32)   # unused by forward
    x_dec = jnp.zeros((BATCH, PRED_LEN, ENC_IN), jnp.float32)  # unused by forward
    x_mark_dec = jnp.zeros((BATCH, PRED_LEN, 4), jnp.float32)  # unused by forward

    fwd = jax.jit(model_forward)
    dec_out, dec_out_time, dec_out_vari = fwd(params, x_enc, x_mark_enc, x_dec, x_mark_dec)
    jax.block_until_ready((dec_out, dec_out_time, dec_out_vari))

    assert dec_out.shape == (BATCH, PRED_LEN, ENC_IN)
    assert dec_out_time.shape == (BATCH, PRED_LEN, ENC_IN)
    assert dec_out_vari.shape == (BATCH, PRED_LEN, ENC_IN)
    assert jnp.all(jnp.isfinite(dec_out))
    assert jnp.all(jnp.isfinite(dec_out_time))
    assert jnp.all(jnp.isfinite(dec_out_vari))
    print("KERNEL_OK")
</pallas_src>

<mosaic_0001>
module attributes {stable_mosaic.version = 11 : i64} {
  func.func @_time_path_kernel(%arg0: memref<8x16xf32, #tpu.memory_space<vmem>>, %arg1: memref<8x1xf32, #tpu.memory_space<vmem>>, %arg2: memref<8x1xf32, #tpu.memory_space<vmem>>, %arg3: memref<16x16xf32, #tpu.memory_space<vmem>>, %arg4: memref<16x32xf32, #tpu.memory_space<vmem>>, %arg5: memref<1x32xf32, #tpu.memory_space<vmem>>, %arg6: memref<128x8xf32, #tpu.memory_space<vmem>>, %arg7: memref<128x16xf32, #tpu.memory_space<vmem>>, %arg8: memref<128x32xf32, #tpu.memory_space<vmem>>, %arg9: memref<16x32xf32, #tpu.memory_space<vmem>>, %arg10: memref<128x128xf32, #tpu.memory_space<vmem>>, %arg11: memref<2x32x16xf32, #tpu.memory_space<vmem>>, %arg12: memref<2x1x16xf32, #tpu.memory_space<vmem>>, %arg13: memref<2x32x16xf32, #tpu.memory_space<vmem>>, %arg14: memref<2x1x16xf32, #tpu.memory_space<vmem>>, %arg15: memref<2x32x16xf32, #tpu.memory_space<vmem>>, %arg16: memref<2x1x16xf32, #tpu.memory_space<vmem>>, %arg17: memref<2x16x32xf32, #tpu.memory_space<vmem>>, %arg18: memref<1x32xf32, #tpu.memory_space<vmem>>, %arg19: memref<1x32xf32, #tpu.memory_space<vmem>>, %arg20: memref<1x32xf32, #tpu.memory_space<vmem>>, %arg21: memref<32x64xf32, #tpu.memory_space<vmem>>, %arg22: memref<1x64xf32, #tpu.memory_space<vmem>>, %arg23: memref<64x32xf32, #tpu.memory_space<vmem>>, %arg24: memref<1x32xf32, #tpu.memory_space<vmem>>, %arg25: memref<1x32xf32, #tpu.memory_space<vmem>>, %arg26: memref<1x32xf32, #tpu.memory_space<vmem>>, %arg27: memref<1x32xf32, #tpu.memory_space<vmem>>, %arg28: memref<1x32xf32, #tpu.memory_space<vmem>>, %arg29: memref<32x16xf32, #tpu.memory_space<vmem>>, %arg30: memref<1x16xf32, #tpu.memory_space<vmem>>, %arg31: memref<128x16xf32, #tpu.memory_space<vmem>>, %arg32: memref<8x16xf32, #tpu.memory_space<vmem>>, %arg33: memref<8x16xf32, #tpu.memory_space<vmem>>, %arg34: memref<8x32xf32, #tpu.memory_space<vmem>>, %arg35: memref<8x1xf32, #tpu.memory_space<vmem>>, %arg36: memref<8x1xf32, #tpu.memory_space<vmem>>) attributes {dimension_semantics = [], scalar_prefetch = 0 : i64, scratch_operands = 0 : i64, tpu.core_type = #tpu.core_type<tc>} {
    %c0 = arith.constant 0 : index
    %c0_0 = arith.constant 0 : index
    %0 = vector.load %arg0[%c0, %c0_0] : memref<8x16xf32, #tpu.memory_space<vmem>>, vector<8x16xf32>
    %cst = arith.constant dense<0.000000e+00> : vector<8xf32>
    %1 = vector.multi_reduction <add>, %0, %cst [1] : vector<8x16xf32> to vector<8xf32>
    %2 = vector.shape_cast %1 : vector<8xf32> to vector<8x1xf32>
    %cst_1 = arith.constant 1.600000e+01 : f32
    %3 = vector.broadcast %cst_1 : f32 to vector<8x1xf32>
    %4 = arith.divf %2, %3 : vector<8x1xf32>
    %5 = vector.broadcast %4 : vector<8x1xf32> to vector<8x16xf32>
    %6 = arith.subf %0, %5 : vector<8x16xf32>
    %7 = vector.broadcast %4 : vector<8x1xf32> to vector<8x16xf32>
    %8 = arith.subf %0, %7 : vector<8x16xf32>
    %9 = arith.mulf %6, %8 : vector<8x16xf32>
    %cst_2 = arith.constant dense<0.000000e+00> : vector<8xf32>
    %10 = vector.multi_reduction <add>, %9, %cst_2 [1] : vector<8x16xf32> to vector<8xf32>
    %11 = vector.shape_cast %10 : vector<8xf32> to vector<8x1xf32>
    %cst_3 = arith.constant 1.600000e+01 : f32
    %12 = vector.broadcast %cst_3 : f32 to vector<8x1xf32>
    %13 = arith.divf %11, %12 : vector<8x1xf32>
    %cst_4 = arith.constant 9.99999974E-6 : f32
    %14 = vector.broadcast %cst_4 : f32 to vector<8x1xf32>
    %15 = arith.addf %13, %14 : vector<8x1xf32>
    %16 = math.sqrt %15 : vector<8x1xf32>
    %17 = vector.broadcast %4 : vector<8x1xf32> to vector<8x16xf32>
    %18 = arith.subf %0, %17 : vector<8x16xf32>
    %19 = vector.broadcast %16 : vector<8x1xf32> to vector<8x16xf32>
    %20 = arith.divf %18, %19 : vector<8x16xf32>
    %c0_5 = arith.constant 0 : index
    %c0_6 = arith.constant 0 : index
    %21 = vector.load %arg1[%c0_5, %c0_6] : memref<8x1xf32, #tpu.memory_space<vmem>>, vector<8x1xf32>
    %22 = vector.broadcast %21 : vector<8x1xf32> to vector<8x16xf32>
    %23 = arith.mulf %20, %22 : vector<8x16xf32>
    %c0_7 = arith.constant 0 : index
    %c0_8 = arith.constant 0 : index
    %24 = vector.load %arg2[%c0_7, %c0_8] : memref<8x1xf32, #tpu.memory_space<vmem>>, vector<8x1xf32>
    %25 = vector.broadcast %24 : vector<8x1xf32> to vector<8x16xf32>
    %26 = arith.addf %23, %25 : vector<8x16xf32>
    %c0_9 = arith.constant 0 : index
    %c0_10 = arith.constant 0 : index
    %27 = vector.load %arg35[%c0_9, %c0_10] : memref<8x1xf32, #tpu.memory_space<vmem>>, vector<8x1xf32>
    tpu.vector_store %arg35[%c0_9, %c0_10], %4 {strides = array<i32>} : memref<8x1xf32, #tpu.memory_space<vmem>>, vector<8x1xf32>,
    %c0_11 = arith.constant 0 : index
    %c0_12 = arith.constant 0 : index
    %28 = vector.load %arg36[%c0_11, %c0_12] : memref<8x1xf32, #tpu.memory_space<vmem>>, vector<8x1xf32>
    tpu.vector_store %arg36[%c0_11, %c0_12], %16 {strides = array<i32>} : memref<8x1xf32, #tpu.memory_space<vmem>>, vector<8x1xf32>,
    %c0_13 = arith.constant 0 : index
    %c0_14 = arith.constant 0 : index
    %29 = vector.load %arg32[%c0_13, %c0_14] : memref<8x16xf32, #tpu.memory_space<vmem>>, vector<8x16xf32>
    tpu.vector_store %arg32[%c0_13, %c0_14], %26 {strides = array<i32>} : memref<8x16xf32, #tpu.memory_space<vmem>>, vector<8x16xf32>,
    %c0_15 = arith.constant 0 : index
    %c0_16 = arith.constant 0 : index
    %30 = vector.load %arg3[%c0_15, %c0_16] : memref<16x16xf32, #tpu.memory_space<vmem>>, vector<16x16xf32>
    %cst_17 = arith.constant dense<0.000000e+00> : vector<8x16xf32>
    %31 = tpu.matmul %26, %30, %cst_17 {dimension_numbers = #tpu.dot_dimension_numbers<[1], [0], [0], [1], [0, 0, 1, 1], [], []>} : vector<8x16xf32>, vector<16x16xf32>, vector<8x16xf32> -> vector<8x16xf32>
    %32 = arith.subf %26, %31 : vector<8x16xf32>
    %c0_18 = arith.constant 0 : index
    %c0_19 = arith.constant 0 : index
    %33 = vector.load %arg33[%c0_18, %c0_19] : memref<8x16xf32, #tpu.memory_space<vmem>>, vector<8x16xf32>
    tpu.vector_store %arg33[%c0_18, %c0_19], %31 {strides = array<i32>} : memref<8x16xf32, #tpu.memory_space<vmem>>, vector<8x16xf32>,
    %c0_20 = arith.constant 0 : index
    %c0_21 = arith.constant 0 : index
    %34 = vector.load %arg4[%c0_20, %c0_21] : memref<16x32xf32, #tpu.memory_space<vmem>>, vector<16x32xf32>
    %cst_22 = arith.constant dense<0.000000e+00> : vector<8x32xf32>
    %35 = tpu.matmul %26, %34, %cst_22 {dimension_numbers = #tpu.dot_dimension_numbers<[1], [0], [0], [1], [0, 0, 1, 1], [], []>} : vector<8x16xf32>, vector<16x32xf32>, vector<8x32xf32> -> vector<8x32xf32>
    %c0_23 = arith.constant 0 : index
    %c0_24 = arith.constant 0 : index
    %36 = vector.load %arg5[%c0_23, %c0_24] : memref<1x32xf32, #tpu.memory_space<vmem>>, vector<1x32xf32>
    %37 = vector.broadcast %36 : vector<1x32xf32> to vector<8x32xf32>
    %38 = arith.addf %35, %37 : vector<8x32xf32>
    %c0_25 = arith.constant 0 : index
    %c0_26 = arith.constant 0 : index
    %39 = vector.load %arg34[%c0_25, %c0_26] : memref<8x32xf32, #tpu.memory_space<vmem>>, vector<8x32xf32>
    tpu.vector_store %arg34[%c0_25, %c0_26], %38 {strides = array<i32>} : memref<8x32xf32, #tpu.memory_space<vmem>>, vector<8x32xf32>,
    %c0_27 = arith.constant 0 : index
    %c0_28 = arith.constant 0 : index
    %40 = vector.load %arg6[%c0_27, %c0_28] : memref<128x8xf32, #tpu.memory_space<vmem>>, vector<128x8xf32>
    %cst_29 = arith.constant dense<0.000000e+00> : vector<128x16xf32>
    %41 = tpu.matmul %40, %32, %cst_29 {dimension_numbers = #tpu.dot_dimension_numbers<[1], [0], [0], [1], [0, 0, 1, 1], [], []>} : vector<128x8xf32>, vector<8x16xf32>, vector<128x16xf32> -> vector<128x16xf32>
    %c0_30 = arith.constant 0 : index
    %c0_31 = arith.constant 0 : index
    %42 = vector.load %arg7[%c0_30, %c0_31] : memref<128x16xf32, #tpu.memory_space<vmem>>, vector<128x16xf32>
    %43 = arith.mulf %41, %42 : vector<128x16xf32>
    %c0_32 = arith.constant 0 : index
    %c0_33 = arith.constant 0 : index
    %44 = vector.load %arg9[%c0_32, %c0_33] : memref<16x32xf32, #tpu.memory_space<vmem>>, vector<16x32xf32>
    %cst_34 = arith.constant dense<0.000000e+00> : vector<128x32xf32>
    %45 = tpu.matmul %43, %44, %cst_34 {dimension_numbers = #tpu.dot_dimension_numbers<[1], [0], [0], [1], [0, 0, 1, 1], [], []>} : vector<128x16xf32>, vector<16x32xf32>, vector<128x32xf32> -> vector<128x32xf32>
    %c0_35 = arith.constant 0 : index
    %c0_36 = arith.constant 0 : index
    %46 = vector.load %arg8[%c0_35, %c0_36] : memref<128x32xf32, #tpu.memory_space<vmem>>, vector<128x32xf32>
    %47 = arith.addf %45, %46 : vector<128x32xf32>
    %c0_37 = arith.constant 0 : index
    %c0_38 = arith.constant 0 : index
    %48 = vector.load %arg10[%c0_37, %c0_38] : memref<128x128xf32, #tpu.memory_space<vmem>>, vector<128x128xf32>
    %cst_39 = arith.constant 0.000000e+00 : f32
    %49 = vector.broadcast %cst_39 : f32 to vector<128x32xf32>
    %c0_40 = arith.constant 0 : index
    %c0_41 = arith.constant 0 : index
    %c0_42 = arith.constant 0 : index
    %50 = vector.load %arg11[%c0_40, %c0_41, %c0_42] : memref<2x32x16xf32, #tpu.memory_space<vmem>>, vector<1x32x16xf32>
    %51 = vector.shape_cast %50 : vector<1x32x16xf32> to vector<32x16xf32>
    %cst_43 = arith.constant dense<0.000000e+00> : vector<128x16xf32>
    %52 = tpu.matmul %47, %51, %cst_43 {dimension_numbers = #tpu.dot_dimension_numbers<[1], [0], [0], [1], [0, 0, 1, 1], [], []>} : vector<128x32xf32>, vector<32x16xf32>, vector<128x16xf32> -> vector<128x16xf32>
    %c0_44 = arith.constant 0 : index
    %c0_45 = arith.constant 0 : index
    %c0_46 = arith.constant 0 : index
    %53 = vector.load %arg12[%c0_44, %c0_45, %c0_46] : memref<2x1x16xf32, #tpu.memory_space<vmem>>, vector<1x1x16xf32>
    %54 = vector.shape_cast %53 : vector<1x1x16xf32> to vector<1x16xf32>
    %55 = vector.broadcast %54 : vector<1x16xf32> to vector<128x16xf32>
    %56 = arith.addf %52, %55 : vector<128x16xf32>
    %c0_47 = arith.constant 0 : index
    %c0_48 = arith.constant 0 : index
    %c0_49 = arith.constant 0 : index
    %57 = vector.load %arg13[%c0_47, %c0_48, %c0_49] : memref<2x32x16xf32, #tpu.memory_space<vmem>>, vector<1x32x16xf32>
    %58 = vector.shape_cast %57 : vector<1x32x16xf32> to vector<32x16xf32>
    %cst_50 = arith.constant dense<0.000000e+00> : vector<128x16xf32>
    %59 = tpu.matmul %47, %58, %cst_50 {dimension_numbers = #tpu.dot_dimension_numbers<[1], [0], [0], [1], [0, 0, 1, 1], [], []>} : vector<128x32xf32>, vector<32x16xf32>, vector<128x16xf32> -> vector<128x16xf32>
    %c0_51 = arith.constant 0 : index
    %c0_52 = arith.constant 0 : index
    %c0_53 = arith.constant 0 : index
    %60 = vector.load %arg14[%c0_51, %c0_52, %c0_53] : memref<2x1x16xf32, #tpu.memory_space<vmem>>, vector<1x1x16xf32>
    %61 = vector.shape_cast %60 : vector<1x1x16xf32> to vector<1x16xf32>
    %62 = vector.broadcast %61 : vector<1x16xf32> to vector<128x16xf32>
    %63 = arith.addf %59, %62 : vector<128x16xf32>
    %c0_54 = arith.constant 0 : index
    %c0_55 = arith.constant 0 : index
    %c0_56 = arith.constant 0 : index
    %64 = vector.load %arg15[%c0_54, %c0_55, %c0_56] : memref<2x32x16xf32, #tpu.memory_space<vmem>>, vector<1x32x16xf32>
    %65 = vector.shape_cast %64 : vector<1x32x16xf32> to vector<32x16xf32>
    %cst_57 = arith.constant dense<0.000000e+00> : vector<128x16xf32>
    %66 = tpu.matmul %47, %65, %cst_57 {dimension_numbers = #tpu.dot_dimension_numbers<[1], [0], [0], [1], [0, 0, 1, 1], [], []>} : vector<128x32xf32>, vector<32x16xf32>, vector<128x16xf32> -> vector<128x16xf32>
    %c0_58 = arith.constant 0 : index
    %c0_59 = arith.constant 0 : index
    %c0_60 = arith.constant 0 : index
    %67 = vector.load %arg16[%c0_58, %c0_59, %c0_60] : memref<2x1x16xf32, #tpu.memory_space<vmem>>, vector<1x1x16xf32>
    %68 = vector.shape_cast %67 : vector<1x1x16xf32> to vector<1x16xf32>
    %69 = vector.broadcast %68 : vector<1x16xf32> to vector<128x16xf32>
    %70 = arith.addf %66, %69 : vector<128x16xf32>
    %71 = tpu.transpose %63, [1, 0] : vector<128x16xf32> -> vector<16x128xf32>
    %cst_61 = arith.constant dense<0.000000e+00> : vector<128x128xf32>
    %72 = tpu.matmul %56, %71, %cst_61 {dimension_numbers = #tpu.dot_dimension_numbers<[1], [0], [0], [1], [0, 0, 1, 1], [], []>} : vector<128x16xf32>, vector<16x128xf32>, vector<128x128xf32> -> vector<128x128xf32>
    %cst_62 = arith.constant 2.500000e-01 : f32
    %73 = vector.broadcast %cst_62 : f32 to vector<128x128xf32>
    %74 = arith.mulf %72, %73 : vector<128x128xf32>
    %75 = arith.addf %74, %48 : vector<128x128xf32>
    %cst_63 = arith.constant dense<0xFF800000> : vector<128xf32>
    %76 = vector.multi_reduction <maximumf>, %75, %cst_63 [1] : vector<128x128xf32> to vector<128xf32>
    %77 = vector.shape_cast %76 : vector<128xf32> to vector<128x1xf32>
    %78 = vector.broadcast %77 : vector<128x1xf32> to vector<128x128xf32>
    %79 = arith.subf %75, %78 : vector<128x128xf32>
    %80 = math.exp %79 : vector<128x128xf32>
    %cst_64 = arith.constant dense<0.000000e+00> : vector<128xf32>
    %81 = vector.multi_reduction <add>, %80, %cst_64 [1] : vector<128x128xf32> to vector<128xf32>
    %82 = vector.shape_cast %81 : vector<128xf32> to vector<128x1xf32>
    %83 = tpu.reciprocal %82 {approx = true} : vector<128x1xf32> -> vector<128x1xf32>
    %84 = vector.broadcast %83 : vector<128x1xf32> to vector<128x128xf32>
    %85 = arith.mulf %80, %84 : vector<128x128xf32>
    %cst_65 = arith.constant dense<0.000000e+00> : vector<128x16xf32>
    %86 = tpu.matmul %85, %70, %cst_65 {dimension_numbers = #tpu.dot_dimension_numbers<[1], [0], [0], [1], [0, 0, 1, 1], [], []>} : vector<128x128xf32>, vector<128x16xf32>, vector<128x16xf32> -> vector<128x16xf32>
    %c0_66 = arith.constant 0 : index
    %c0_67 = arith.constant 0 : index
    %c0_68 = arith.constant 0 : index
    %87 = vector.load %arg17[%c0_66, %c0_67, %c0_68] : memref<2x16x32xf32, #tpu.memory_space<vmem>>, vector<1x16x32xf32>
    %88 = vector.shape_cast %87 : vector<1x16x32xf32> to vector<16x32xf32>
    %cst_69 = arith.constant dense<0.000000e+00> : vector<128x32xf32>
    %89 = tpu.matmul %86, %88, %cst_69 {dimension_numbers = #tpu.dot_dimension_numbers<[1], [0], [0], [1], [0, 0, 1, 1], [], []>} : vector<128x16xf32>, vector<16x32xf32>, vector<128x32xf32> -> vector<128x32xf32>
    %90 = arith.addf %49, %89 : vector<128x32xf32>
    %c1 = arith.constant 1 : index
    %c0_70 = arith.constant 0 : index
    %c0_71 = arith.constant 0 : index
    %91 = vector.load %arg11[%c1, %c0_70, %c0_71] : memref<2x32x16xf32, #tpu.memory_space<vmem>>, vector<1x32x16xf32>
    %92 = vector.shape_cast %91 : vector<1x32x16xf32> to vector<32x16xf32>
    %cst_72 = arith.constant dense<0.000000e+00> : vector<128x16xf32>
    %93 = tpu.matmul %47, %92, %cst_72 {dimension_numbers = #tpu.dot_dimension_numbers<[1], [0], [0], [1], [0, 0, 1, 1], [], []>} : vector<128x32xf32>, vector<32x16xf32>, vector<128x16xf32> -> vector<128x16xf32>
    %c1_73 = arith.constant 1 : index
    %c0_74 = arith.constant 0 : index
    %c0_75 = arith.constant 0 : index
    %94 = vector.load %arg12[%c1_73, %c0_74, %c0_75] : memref<2x1x16xf32, #tpu.memory_space<vmem>>, vector<1x1x16xf32>
    %95 = vector.shape_cast %94 : vector<1x1x16xf32> to vector<1x16xf32>
    %96 = vector.broadcast %95 : vector<1x16xf32> to vector<128x16xf32>
    %97 = arith.addf %93, %96 : vector<128x16xf32>
    %c1_76 = arith.constant 1 : index
    %c0_77 = arith.constant 0 : index
    %c0_78 = arith.constant 0 : index
    %98 = vector.load %arg13[%c1_76, %c0_77, %c0_78] : memref<2x32x16xf32, #tpu.memory_space<vmem>>, vector<1x32x16xf32>
    %99 = vector.shape_cast %98 : vector<1x32x16xf32> to vector<32x16xf32>
    %cst_79 = arith.constant dense<0.000000e+00> : vector<128x16xf32>
    %100 = tpu.matmul %47, %99, %cst_79 {dimension_numbers = #tpu.dot_dimension_numbers<[1], [0], [0], [1], [0, 0, 1, 1], [], []>} : vector<128x32xf32>, vector<32x16xf32>, vector<128x16xf32> -> vector<128x16xf32>
    %c1_80 = arith.constant 1 : index
    %c0_81 = arith.constant 0 : index
    %c0_82 = arith.constant 0 : index
    %101 = vector.load %arg14[%c1_80, %c0_81, %c0_82] : memref<2x1x16xf32, #tpu.memory_space<vmem>>, vector<1x1x16xf32>
    %102 = vector.shape_cast %101 : vector<1x1x16xf32> to vector<1x16xf32>
    %103 = vector.broadcast %102 : vector<1x16xf32> to vector<128x16xf32>
    %104 = arith.addf %100, %103 : vector<128x16xf32>
    %c1_83 = arith.constant 1 : index
    %c0_84 = arith.constant 0 : index
    %c0_85 = arith.constant 0 : index
    %105 = vector.load %arg15[%c1_83, %c0_84, %c0_85] : memref<2x32x16xf32, #tpu.memory_space<vmem>>, vector<1x32x16xf32>
    %106 = vector.shape_cast %105 : vector<1x32x16xf32> to vector<32x16xf32>
    %cst_86 = arith.constant dense<0.000000e+00> : vector<128x16xf32>
    %107 = tpu.matmul %47, %106, %cst_86 {dimension_numbers = #tpu.dot_dimension_numbers<[1], [0], [0], [1], [0, 0, 1, 1], [], []>} : vector<128x32xf32>, vector<32x16xf32>, vector<128x16xf32> -> vector<128x16xf32>
    %c1_87 = arith.constant 1 : index
    %c0_88 = arith.constant 0 : index
    %c0_89 = arith.constant 0 : index
    %108 = vector.load %arg16[%c1_87, %c0_88, %c0_89] : memref<2x1x16xf32, #tpu.memory_space<vmem>>, vector<1x1x16xf32>
    %109 = vector.shape_cast %108 : vector<1x1x16xf32> to vector<1x16xf32>
    %110 = vector.broadcast %109 : vector<1x16xf32> to vector<128x16xf32>
    %111 = arith.addf %107, %110 : vector<128x16xf32>
    %112 = tpu.transpose %104, [1, 0] : vector<128x16xf32> -> vector<16x128xf32>
    %cst_90 = arith.constant dense<0.000000e+00> : vector<128x128xf32>
    %113 = tpu.matmul %97, %112, %cst_90 {dimension_numbers = #tpu.dot_dimension_numbers<[1], [0], [0], [1], [0, 0, 1, 1], [], []>} : vector<128x16xf32>, vector<16x128xf32>, vector<128x128xf32> -> vector<128x128xf32>
    %cst_91 = arith.constant 2.500000e-01 : f32
    %114 = vector.broadcast %cst_91 : f32 to vector<128x128xf32>
    %115 = arith.mulf %113, %114 : vector<128x128xf32>
    %116 = arith.addf %115, %48 : vector<128x128xf32>
    %cst_92 = arith.constant dense<0xFF800000> : vector<128xf32>
    %117 = vector.multi_reduction <maximumf>, %116, %cst_92 [1] : vector<128x128xf32> to vector<128xf32>
    %118 = vector.shape_cast %117 : vector<128xf32> to vector<128x1xf32>
    %119 = vector.broadcast %118 : vector<128x1xf32> to vector<128x128xf32>
    %120 = arith.subf %116, %119 : vector<128x128xf32>
    %121 = math.exp %120 : vector<128x128xf32>
    %cst_93 = arith.constant dense<0.000000e+00> : vector<128xf32>
    %122 = vector.multi_reduction <add>, %121, %cst_93 [1] : vector<128x128xf32> to vector<128xf32>
    %123 = vector.shape_cast %122 : vector<128xf32> to vector<128x1xf32>
    %124 = tpu.reciprocal %123 {approx = true} : vector<128x1xf32> -> vector<128x1xf32>
    %125 = vector.broadcast %124 : vector<128x1xf32> to vector<128x128xf32>
    %126 = arith.mulf %121, %125 : vector<128x128xf32>
    %cst_94 = arith.constant dense<0.000000e+00> : vector<128x16xf32>
    %127 = tpu.matmul %126, %111, %cst_94 {dimension_numbers = #tpu.dot_dimension_numbers<[1], [0], [0], [1], [0, 0, 1, 1], [], []>} : vector<128x128xf32>, vector<128x16xf32>, vector<128x16xf32> -> vector<128x16xf32>
    %c1_95 = arith.constant 1 : index
    %c0_96 = arith.constant 0 : index
    %c0_97 = arith.constant 0 : index
    %128 = vector.load %arg17[%c1_95, %c0_96, %c0_97] : memref<2x16x32xf32, #tpu.memory_space<vmem>>, vector<1x16x32xf32>
    %129 = vector.shape_cast %128 : vector<1x16x32xf32> to vector<16x32xf32>
    %cst_98 = arith.constant dense<0.000000e+00> : vector<128x32xf32>
    %130 = tpu.matmul %127, %129, %cst_98 {dimension_numbers = #tpu.dot_dimension_numbers<[1], [0], [0], [1], [0, 0, 1, 1], [], []>} : vector<128x16xf32>, vector<16x32xf32>, vector<128x32xf32> -> vector<128x32xf32>
    %131 = arith.addf %90, %130 : vector<128x32xf32>
    %c0_99 = arith.constant 0 : index
    %c0_100 = arith.constant 0 : index
    %132 = vector.load %arg18[%c0_99, %c0_100] : memref<1x32xf32, #tpu.memory_space<vmem>>, vector<1x32xf32>
    %133 = vector.broadcast %132 : vector<1x32xf32> to vector<128x32xf32>
    %134 = arith.addf %131, %133 : vector<128x32xf32>
    %135 = arith.addf %47, %134 : vector<128x32xf32>
    %c0_101 = arith.constant 0 : index
    %c0_102 = arith.constant 0 : index
    %136 = vector.load %arg19[%c0_101, %c0_102] : memref<1x32xf32, #tpu.memory_space<vmem>>, vector<1x32xf32>
    %c0_103 = arith.constant 0 : index
    %c0_104 = arith.constant 0 : index
    %137 = vector.load %arg20[%c0_103, %c0_104] : memref<1x32xf32, #tpu.memory_space<vmem>>, vector<1x32xf32>
    %cst_105 = arith.constant dense<0.000000e+00> : vector<128xf32>
    %138 = vector.multi_reduction <add>, %135, %cst_105 [1] : vector<128x32xf32> to vector<128xf32>
    %139 = vector.shape_cast %138 : vector<128xf32> to vector<128x1xf32>
    %cst_106 = arith.constant 3.200000e+01 : f32
    %140 = vector.broadcast %cst_106 : f32 to vector<128x1xf32>
    %141 = arith.divf %139, %140 : vector<128x1xf32>
    %142 = vector.broadcast %141 : vector<128x1xf32> to vector<128x32xf32>
    %143 = arith.subf %135, %142 : vector<128x32xf32>
    %144 = vector.broadcast %141 : vector<128x1xf32> to vector<128x32xf32>
    %145 = arith.subf %135, %144 : vector<128x32xf32>
    %146 = arith.mulf %143, %145 : vector<128x32xf32>
    %cst_107 = arith.constant dense<0.000000e+00> : vector<128xf32>
    %147 = vector.multi_reduction <add>, %146, %cst_107 [1] : vector<128x32xf32> to vector<128xf32>
    %148 = vector.shape_cast %147 : vector<128xf32> to vector<128x1xf32>
    %cst_108 = arith.constant 3.200000e+01 : f32
    %149 = vector.broadcast %cst_108 : f32 to vector<128x1xf32>
    %150 = arith.divf %148, %149 : vector<128x1xf32>
    %151 = vector.broadcast %141 : vector<128x1xf32> to vector<128x32xf32>
    %152 = arith.subf %135, %151 : vector<128x32xf32>
    %cst_109 = arith.constant 9.99999974E-6 : f32
    %153 = vector.broadcast %cst_109 : f32 to vector<128x1xf32>
    %154 = arith.addf %150, %153 : vector<128x1xf32>
    %155 = math.rsqrt %154 : vector<128x1xf32>
    %156 = vector.broadcast %155 : vector<128x1xf32> to vector<128x32xf32>
    %157 = arith.mulf %152, %156 : vector<128x32xf32>
    %158 = vector.broadcast %136 : vector<1x32xf32> to vector<128x32xf32>
    %159 = arith.mulf %157, %158 : vector<128x32xf32>
    %160 = vector.broadcast %137 : vector<1x32xf32> to vector<128x32xf32>
    %161 = arith.addf %159, %160 : vector<128x32xf32>
    %c0_110 = arith.constant 0 : index
    %c0_111 = arith.constant 0 : index
    %162 = vector.load %arg21[%c0_110, %c0_111] : memref<32x64xf32, #tpu.memory_space<vmem>>, vector<32x64xf32>
    %cst_112 = arith.constant dense<0.000000e+00> : vector<128x64xf32>
    %163 = tpu.matmul %161, %162, %cst_112 {dimension_numbers = #tpu.dot_dimension_numbers<[1], [0], [0], [1], [0, 0, 1, 1], [], []>} : vector<128x32xf32>, vector<32x64xf32>, vector<128x64xf32> -> vector<128x64xf32>
    %c0_113 = arith.constant 0 : index
    %c0_114 = arith.constant 0 : index
    %164 = vector.load %arg22[%c0_113, %c0_114] : memref<1x64xf32, #tpu.memory_space<vmem>>, vector<1x64xf32>
    %165 = vector.broadcast %164 : vector<1x64xf32> to vector<128x64xf32>
    %166 = arith.addf %163, %165 : vector<128x64xf32>
    %167 = arith.mulf %166, %166 : vector<128x64xf32>
    %168 = arith.mulf %166, %167 : vector<128x64xf32>
    %cst_115 = arith.constant 4.471500e-02 : f32
    %169 = vector.broadcast %cst_115 : f32 to vector<128x64xf32>
    %170 = arith.mulf %169, %168 : vector<128x64xf32>
    %171 = arith.addf %166, %170 : vector<128x64xf32>
    %cst_116 = arith.constant 0.797884583 : f32
    %172 = vector.broadcast %cst_116 : f32 to vector<128x64xf32>
    %173 = arith.mulf %172, %171 : vector<128x64xf32>
    %174 = math.tanh %173 : vector<128x64xf32>
    %cst_117 = arith.constant 1.000000e+00 : f32
    %175 = vector.broadcast %cst_117 : f32 to vector<128x64xf32>
    %176 = arith.addf %175, %174 : vector<128x64xf32>
    %cst_118 = arith.constant 5.000000e-01 : f32
    %177 = vector.broadcast %cst_118 : f32 to vector<128x64xf32>
    %178 = arith.mulf %177, %176 : vector<128x64xf32>
    %179 = arith.mulf %166, %178 : vector<128x64xf32>
    %c0_119 = arith.constant 0 : index
    %c0_120 = arith.constant 0 : index
    %180 = vector.load %arg23[%c0_119, %c0_120] : memref<64x32xf32, #tpu.memory_space<vmem>>, vector<64x32xf32>
    %cst_121 = arith.constant dense<0.000000e+00> : vector<128x32xf32>
    %181 = tpu.matmul %179, %180, %cst_121 {dimension_numbers = #tpu.dot_dimension_numbers<[1], [0], [0], [1], [0, 0, 1, 1], [], []>} : vector<128x64xf32>, vector<64x32xf32>, vector<128x32xf32> -> vector<128x32xf32>
    %c0_122 = arith.constant 0 : index
    %c0_123 = arith.constant 0 : index
    %182 = vector.load %arg24[%c0_122, %c0_123] : memref<1x32xf32, #tpu.memory_space<vmem>>, vector<1x32xf32>
    %183 = vector.broadcast %182 : vector<1x32xf32> to vector<128x32xf32>
    %184 = arith.addf %181, %183 : vector<128x32xf32>
    %185 = arith.addf %161, %184 : vector<128x32xf32>
    %c0_124 = arith.constant 0 : index
    %c0_125 = arith.constant 0 : index
    %186 = vector.load %arg25[%c0_124, %c0_125] : memref<1x32xf32, #tpu.memory_space<vmem>>, vector<1x32xf32>
    %c0_126 = arith.constant 0 : index
    %c0_127 = arith.constant 0 : index
    %187 = vector.load %arg26[%c0_126, %c0_127] : memref<1x32xf32, #tpu.memory_space<vmem>>, vector<1x32xf32>
    %cst_128 = arith.constant dense<0.000000e+00> : vector<128xf32>
    %188 = vector.multi_reduction <add>, %185, %cst_128 [1] : vector<128x32xf32> to vector<128xf32>
    %189 = vector.shape_cast %188 : vector<128xf32> to vector<128x1xf32>
    %cst_129 = arith.constant 3.200000e+01 : f32
    %190 = vector.broadcast %cst_129 : f32 to vector<128x1xf32>
    %191 = arith.divf %189, %190 : vector<128x1xf32>
    %192 = vector.broadcast %191 : vector<128x1xf32> to vector<128x32xf32>
    %193 = arith.subf %185, %192 : vector<128x32xf32>
    %194 = vector.broadcast %191 : vector<128x1xf32> to vector<128x32xf32>
    %195 = arith.subf %185, %194 : vector<128x32xf32>
    %196 = arith.mulf %193, %195 : vector<128x32xf32>
    %cst_130 = arith.constant dense<0.000000e+00> : vector<128xf32>
    %197 = vector.multi_reduction <add>, %196, %cst_130 [1] : vector<128x32xf32> to vector<128xf32>
    %198 = vector.shape_cast %197 : vector<128xf32> to vector<128x1xf32>
    %cst_131 = arith.constant 3.200000e+01 : f32
    %199 = vector.broadcast %cst_131 : f32 to vector<128x1xf32>
    %200 = arith.divf %198, %199 : vector<128x1xf32>
    %201 = vector.broadcast %191 : vector<128x1xf32> to vector<128x32xf32>
    %202 = arith.subf %185, %201 : vector<128x32xf32>
    %cst_132 = arith.constant 9.99999974E-6 : f32
    %203 = vector.broadcast %cst_132 : f32 to vector<128x1xf32>
    %204 = arith.addf %200, %203 : vector<128x1xf32>
    %205 = math.rsqrt %204 : vector<128x1xf32>
    %206 = vector.broadcast %205 : vector<128x1xf32> to vector<128x32xf32>
    %207 = arith.mulf %202, %206 : vector<128x32xf32>
    %208 = vector.broadcast %186 : vector<1x32xf32> to vector<128x32xf32>
    %209 = arith.mulf %207, %208 : vector<128x32xf32>
    %210 = vector.broadcast %187 : vector<1x32xf32> to vector<128x32xf32>
    %211 = arith.addf %209, %210 : vector<128x32xf32>
    %c0_133 = arith.constant 0 : index
    %c0_134 = arith.constant 0 : index
    %212 = vector.load %arg27[%c0_133, %c0_134] : memref<1x32xf32, #tpu.memory_space<vmem>>, vector<1x32xf32>
    %c0_135 = arith.constant 0 : index
    %c0_136 = arith.constant 0 : index
    %213 = vector.load %arg28[%c0_135, %c0_136] : memref<1x32xf32, #tpu.memory_space<vmem>>, vector<1x32xf32>
    %cst_137 = arith.constant dense<0.000000e+00> : vector<128xf32>
    %214 = vector.multi_reduction <add>, %211, %cst_137 [1] : vector<128x32xf32> to vector<128xf32>
    %215 = vector.shape_cast %214 : vector<128xf32> to vector<128x1xf32>
    %cst_138 = arith.constant 3.200000e+01 : f32
    %216 = vector.broadcast %cst_138 : f32 to vector<128x1xf32>
    %217 = arith.divf %215, %216 : vector<128x1xf32>
    %218 = vector.broadcast %217 : vector<128x1xf32> to vector<128x32xf32>
    %219 = arith.subf %211, %218 : vector<128x32xf32>
    %220 = vector.broadcast %217 : vector<128x1xf32> to vector<128x32xf32>
    %221 = arith.subf %211, %220 : vector<128x32xf32>
    %222 = arith.mulf %219, %221 : vector<128x32xf32>
    %cst_139 = arith.constant dense<0.000000e+00> : vector<128xf32>
    %223 = vector.multi_reduction <add>, %222, %cst_139 [1] : vector<128x32xf32> to vector<128xf32>
    %224 = vector.shape_cast %223 : vector<128xf32> to vector<128x1xf32>
    %cst_140 = arith.constant 3.200000e+01 : f32
    %225 = vector.broadcast %cst_140 : f32 to vector<128x1xf32>
    %226 = arith.divf %224, %225 : vector<128x1xf32>
    %227 = vector.broadcast %217 : vector<128x1xf32> to vector<128x32xf32>
    %228 = arith.subf %211, %227 : vector<128x32xf32>
    %cst_141 = arith.constant 9.99999974E-6 : f32
    %229 = vector.broadcast %cst_141 : f32 to vector<128x1xf32>
    %230 = arith.addf %226, %229 : vector<128x1xf32>
    %231 = math.rsqrt %230 : vector<128x1xf32>
    %232 = vector.broadcast %231 : vector<128x1xf32> to vector<128x32xf32>
    %233 = arith.mulf %228, %232 : vector<128x32xf32>
    %234 = vector.broadcast %212 : vector<1x32xf32> to vector<128x32xf32>
    %235 = arith.mulf %233, %234 : vector<128x32xf32>
    %236 = vector.broadcast %213 : vector<1x32xf32> to vector<128x32xf32>
    %237 = arith.addf %235, %236 : vector<128x32xf32>
    %c0_142 = arith.constant 0 : index
    %c0_143 = arith.constant 0 : index
    %238 = vector.load %arg29[%c0_142, %c0_143] : memref<32x16xf32, #tpu.memory_space<vmem>>, vector<32x16xf32>
    %cst_144 = arith.constant dense<0.000000e+00> : vector<128x16xf32>
    %239 = tpu.matmul %237, %238, %cst_144 {dimension_numbers = #tpu.dot_dimension_numbers<[1], [0], [0], [1], [0, 0, 1, 1], [], []>} : vector<128x32xf32>, vector<32x16xf32>, vector<128x16xf32> -> vector<128x16xf32>
    %c0_145 = arith.constant 0 : index
    %c0_146 = arith.constant 0 : index
    %240 = vector.load %arg30[%c0_145, %c0_146] : memref<1x16xf32, #tpu.memory_space<vmem>>, vector<1x16xf32>
    %241 = vector.broadcast %240 : vector<1x16xf32> to vector<128x16xf32>
    %242 = arith.addf %239, %241 : vector<128x16xf32>
    %c0_147 = arith.constant 0 : index
    %c0_148 = arith.constant 0 : index
    %243 = vector.load %arg31[%c0_147, %c0_148] : memref<128x16xf32, #tpu.memory_space<vmem>>, vector<128x16xf32>
    tpu.vector_store %arg31[%c0_147, %c0_148], %242 {strides = array<i32>} : memref<128x16xf32, #tpu.memory_space<vmem>>, vector<128x16xf32>,
    return
  }
}

module attributes {stable_mosaic.version = 11 : i64} {
  func.func @_variate_combine_kernel(%arg0: memref<8x32xf32, #tpu.memory_space<vmem>>, %arg1: memref<8x8xf32, #tpu.memory_space<vmem>>, %arg2: memref<2x32x16xf32, #tpu.memory_space<vmem>>, %arg3: memref<2x1x16xf32, #tpu.memory_space<vmem>>, %arg4: memref<2x32x16xf32, #tpu.memory_space<vmem>>, %arg5: memref<2x1x16xf32, #tpu.memory_space<vmem>>, %arg6: memref<2x32x16xf32, #tpu.memory_space<vmem>>, %arg7: memref<2x1x16xf32, #tpu.memory_space<vmem>>, %arg8: memref<2x16x32xf32, #tpu.memory_space<vmem>>, %arg9: memref<1x32xf32, #tpu.memory_space<vmem>>, %arg10: memref<1x32xf32, #tpu.memory_space<vmem>>, %arg11: memref<1x32xf32, #tpu.memory_space<vmem>>, %arg12: memref<32x64xf32, #tpu.memory_space<vmem>>, %arg13: memref<1x64xf32, #tpu.memory_space<vmem>>, %arg14: memref<64x32xf32, #tpu.memory_space<vmem>>, %arg15: memref<1x32xf32, #tpu.memory_space<vmem>>, %arg16: memref<1x32xf32, #tpu.memory_space<vmem>>, %arg17: memref<1x32xf32, #tpu.memory_space<vmem>>, %arg18: memref<8x256xf32, #tpu.memory_space<vmem>>, %arg19: memref<8x16xf32, #tpu.memory_space<vmem>>, %arg20: memref<256x8xf32, #tpu.memory_space<vmem>>, %arg21: memref<1x8xf32, #tpu.memory_space<vmem>>, %arg22: memref<16x8xf32, #tpu.memory_space<vmem>>, %arg23: memref<1x8xf32, #tpu.memory_space<vmem>>, %arg24: memref<32x8xf32, #tpu.memory_space<vmem>>, %arg25: memref<1x8xf32, #tpu.memory_space<vmem>>, %arg26: memref<8x8xf32, #tpu.memory_space<vmem>>, %arg27: memref<8x8xf32, #tpu.memory_space<vmem>>, %arg28: memref<1x8xf32, #tpu.memory_space<vmem>>, %arg29: memref<8x1xf32, #tpu.memory_space<vmem>>, %arg30: memref<8x1xf32, #tpu.memory_space<vmem>>, %arg31: memref<8x1xf32, #tpu.memory_space<vmem>>, %arg32: memref<8x1xf32, #tpu.memory_space<vmem>>, %arg33: memref<8x8xf32, #tpu.memory_space<vmem>>, %arg34: memref<8x8xf32, #tpu.memory_space<vmem>>, %arg35: memref<8x8xf32, #tpu.memory_space<vmem>>) attributes {dimension_semantics = [], scalar_prefetch = 0 : i64, scratch_operands = 0 : i64, tpu.core_type = #tpu.core_type<tc>} {
    %c0 = arith.constant 0 : index
    %c0_0 = arith.constant 0 : index
    %0 = vector.load %arg0[%c0, %c0_0] : memref<8x32xf32, #tpu.memory_space<vmem>>, vector<8x32xf32>
    %c0_1 = arith.constant 0 : index
    %c0_2 = arith.constant 0 : index
    %1 = vector.load %arg1[%c0_1, %c0_2] : memref<8x8xf32, #tpu.memory_space<vmem>>, vector<8x8xf32>
    %cst = arith.constant 0.000000e+00 : f32
    %2 = vector.broadcast %cst : f32 to vector<8x32xf32>
    %c0_3 = arith.constant 0 : index
    %c0_4 = arith.constant 0 : index
    %c0_5 = arith.constant 0 : index
    %3 = vector.load %arg2[%c0_3, %c0_4, %c0_5] : memref<2x32x16xf32, #tpu.memory_space<vmem>>, vector<1x32x16xf32>
    %4 = vector.shape_cast %3 : vector<1x32x16xf32> to vector<32x16xf32>
    %cst_6 = arith.constant dense<0.000000e+00> : vector<8x16xf32>
    %5 = tpu.matmul %0, %4, %cst_6 {dimension_numbers = #tpu.dot_dimension_numbers<[1], [0], [0], [1], [0, 0, 1, 1], [], []>} : vector<8x32xf32>, vector<32x16xf32>, vector<8x16xf32> -> vector<8x16xf32>
    %c0_7 = arith.constant 0 : index
    %c0_8 = arith.constant 0 : index
    %c0_9 = arith.constant 0 : index
    %6 = vector.load %arg3[%c0_7, %c0_8, %c0_9] : memref<2x1x16xf32, #tpu.memory_space<vmem>>, vector<1x1x16xf32>
    %7 = vector.shape_cast %6 : vector<1x1x16xf32> to vector<1x16xf32>
    %8 = vector.broadcast %7 : vector<1x16xf32> to vector<8x16xf32>
    %9 = arith.addf %5, %8 : vector<8x16xf32>
    %c0_10 = arith.constant 0 : index
    %c0_11 = arith.constant 0 : index
    %c0_12 = arith.constant 0 : index
    %10 = vector.load %arg4[%c0_10, %c0_11, %c0_12] : memref<2x32x16xf32, #tpu.memory_space<vmem>>, vector<1x32x16xf32>
    %11 = vector.shape_cast %10 : vector<1x32x16xf32> to vector<32x16xf32>
    %cst_13 = arith.constant dense<0.000000e+00> : vector<8x16xf32>
    %12 = tpu.matmul %0, %11, %cst_13 {dimension_numbers = #tpu.dot_dimension_numbers<[1], [0], [0], [1], [0, 0, 1, 1], [], []>} : vector<8x32xf32>, vector<32x16xf32>, vector<8x16xf32> -> vector<8x16xf32>
    %c0_14 = arith.constant 0 : index
    %c0_15 = arith.constant 0 : index
    %c0_16 = arith.constant 0 : index
    %13 = vector.load %arg5[%c0_14, %c0_15, %c0_16] : memref<2x1x16xf32, #tpu.memory_space<vmem>>, vector<1x1x16xf32>
    %14 = vector.shape_cast %13 : vector<1x1x16xf32> to vector<1x16xf32>
    %15 = vector.broadcast %14 : vector<1x16xf32> to vector<8x16xf32>
    %16 = arith.addf %12, %15 : vector<8x16xf32>
    %c0_17 = arith.constant 0 : index
    %c0_18 = arith.constant 0 : index
    %c0_19 = arith.constant 0 : index
    %17 = vector.load %arg6[%c0_17, %c0_18, %c0_19] : memref<2x32x16xf32, #tpu.memory_space<vmem>>, vector<1x32x16xf32>
    %18 = vector.shape_cast %17 : vector<1x32x16xf32> to vector<32x16xf32>
    %cst_20 = arith.constant dense<0.000000e+00> : vector<8x16xf32>
    %19 = tpu.matmul %0, %18, %cst_20 {dimension_numbers = #tpu.dot_dimension_numbers<[1], [0], [0], [1], [0, 0, 1, 1], [], []>} : vector<8x32xf32>, vector<32x16xf32>, vector<8x16xf32> -> vector<8x16xf32>
    %c0_21 = arith.constant 0 : index
    %c0_22 = arith.constant 0 : index
    %c0_23 = arith.constant 0 : index
    %20 = vector.load %arg7[%c0_21, %c0_22, %c0_23] : memref<2x1x16xf32, #tpu.memory_space<vmem>>, vector<1x1x16xf32>
    %21 = vector.shape_cast %20 : vector<1x1x16xf32> to vector<1x16xf32>
    %22 = vector.broadcast %21 : vector<1x16xf32> to vector<8x16xf32>
    %23 = arith.addf %19, %22 : vector<8x16xf32>
    %24 = tpu.transpose %16, [1, 0] : vector<8x16xf32> -> vector<16x8xf32>
    %cst_24 = arith.constant dense<0.000000e+00> : vector<8x8xf32>
    %25 = tpu.matmul %9, %24, %cst_24 {dimension_numbers = #tpu.dot_dimension_numbers<[1], [0], [0], [1], [0, 0, 1, 1], [], []>} : vector<8x16xf32>, vector<16x8xf32>, vector<8x8xf32> -> vector<8x8xf32>
    %cst_25 = arith.constant 2.500000e-01 : f32
    %26 = vector.broadcast %cst_25 : f32 to vector<8x8xf32>
    %27 = arith.mulf %25, %26 : vector<8x8xf32>
    %28 = arith.addf %27, %1 : vector<8x8xf32>
    %cst_26 = arith.constant dense<0xFF800000> : vector<8xf32>
    %29 = vector.multi_reduction <maximumf>, %28, %cst_26 [1] : vector<8x8xf32> to vector<8xf32>
    %30 = vector.shape_cast %29 : vector<8xf32> to vector<8x1xf32>
    %31 = vector.broadcast %30 : vector<8x1xf32> to vector<8x8xf32>
    %32 = arith.subf %28, %31 : vector<8x8xf32>
    %33 = math.exp %32 : vector<8x8xf32>
    %cst_27 = arith.constant dense<0.000000e+00> : vector<8xf32>
    %34 = vector.multi_reduction <add>, %33, %cst_27 [1] : vector<8x8xf32> to vector<8xf32>
    %35 = vector.shape_cast %34 : vector<8xf32> to vector<8x1xf32>
    %36 = tpu.reciprocal %35 {approx = true} : vector<8x1xf32> -> vector<8x1xf32>
    %37 = vector.broadcast %36 : vector<8x1xf32> to vector<8x8xf32>
    %38 = arith.mulf %33, %37 : vector<8x8xf32>
    %cst_28 = arith.constant dense<0.000000e+00> : vector<8x16xf32>
    %39 = tpu.matmul %38, %23, %cst_28 {dimension_numbers = #tpu.dot_dimension_numbers<[1], [0], [0], [1], [0, 0, 1, 1], [], []>} : vector<8x8xf32>, vector<8x16xf32>, vector<8x16xf32> -> vector<8x16xf32>
    %c0_29 = arith.constant 0 : index
    %c0_30 = arith.constant 0 : index
    %c0_31 = arith.constant 0 : index
    %40 = vector.load %arg8[%c0_29, %c0_30, %c0_31] : memref<2x16x32xf32, #tpu.memory_space<vmem>>, vector<1x16x32xf32>
    %41 = vector.shape_cast %40 : vector<1x16x32xf32> to vector<16x32xf32>
    %cst_32 = arith.constant dense<0.000000e+00> : vector<8x32xf32>
    %42 = tpu.matmul %39, %41, %cst_32 {dimension_numbers = #tpu.dot_dimension_numbers<[1], [0], [0], [1], [0, 0, 1, 1], [], []>} : vector<8x16xf32>, vector<16x32xf32>, vector<8x32xf32> -> vector<8x32xf32>
    %43 = arith.addf %2, %42 : vector<8x32xf32>
    %c1 = arith.constant 1 : index
    %c0_33 = arith.constant 0 : index
    %c0_34 = arith.constant 0 : index
    %44 = vector.load %arg2[%c1, %c0_33, %c0_34] : memref<2x32x16xf32, #tpu.memory_space<vmem>>, vector<1x32x16xf32>
    %45 = vector.shape_cast %44 : vector<1x32x16xf32> to vector<32x16xf32>
    %cst_35 = arith.constant dense<0.000000e+00> : vector<8x16xf32>
    %46 = tpu.matmul %0, %45, %cst_35 {dimension_numbers = #tpu.dot_dimension_numbers<[1], [0], [0], [1], [0, 0, 1, 1], [], []>} : vector<8x32xf32>, vector<32x16xf32>, vector<8x16xf32> -> vector<8x16xf32>
    %c1_36 = arith.constant 1 : index
    %c0_37 = arith.constant 0 : index
    %c0_38 = arith.constant 0 : index
    %47 = vector.load %arg3[%c1_36, %c0_37, %c0_38] : memref<2x1x16xf32, #tpu.memory_space<vmem>>, vector<1x1x16xf32>
    %48 = vector.shape_cast %47 : vector<1x1x16xf32> to vector<1x16xf32>
    %49 = vector.broadcast %48 : vector<1x16xf32> to vector<8x16xf32>
    %50 = arith.addf %46, %49 : vector<8x16xf32>
    %c1_39 = arith.constant 1 : index
    %c0_40 = arith.constant 0 : index
    %c0_41 = arith.constant 0 : index
    %51 = vector.load %arg4[%c1_39, %c0_40, %c0_41] : memref<2x32x16xf32, #tpu.memory_space<vmem>>, vector<1x32x16xf32>
    %52 = vector.shape_cast %51 : vector<1x32x16xf32> to vector<32x16xf32>
    %cst_42 = arith.constant dense<0.000000e+00> : vector<8x16xf32>
    %53 = tpu.matmul %0, %52, %cst_42 {dimension_numbers = #tpu.dot_dimension_numbers<[1], [0], [0], [1], [0, 0, 1, 1], [], []>} : vector<8x32xf32>, vector<32x16xf32>, vector<8x16xf32> -> vector<8x16xf32>
    %c1_43 = arith.constant 1 : index
    %c0_44 = arith.constant 0 : index
    %c0_45 = arith.constant 0 : index
    %54 = vector.load %arg5[%c1_43, %c0_44, %c0_45] : memref<2x1x16xf32, #tpu.memory_space<vmem>>, vector<1x1x16xf32>
    %55 = vector.shape_cast %54 : vector<1x1x16xf32> to vector<1x16xf32>
    %56 = vector.broadcast %55 : vector<1x16xf32> to vector<8x16xf32>
    %57 = arith.addf %53, %56 : vector<8x16xf32>
    %c1_46 = arith.constant 1 : index
    %c0_47 = arith.constant 0 : index
    %c0_48 = arith.constant 0 : index
    %58 = vector.load %arg6[%c1_46, %c0_47, %c0_48] : memref<2x32x16xf32, #tpu.memory_space<vmem>>, vector<1x32x16xf32>
    %59 = vector.shape_cast %58 : vector<1x32x16xf32> to vector<32x16xf32>
    %cst_49 = arith.constant dense<0.000000e+00> : vector<8x16xf32>
    %60 = tpu.matmul %0, %59, %cst_49 {dimension_numbers = #tpu.dot_dimension_numbers<[1], [0], [0], [1], [0, 0, 1, 1], [], []>} : vector<8x32xf32>, vector<32x16xf32>, vector<8x16xf32> -> vector<8x16xf32>
    %c1_50 = arith.constant 1 : index
    %c0_51 = arith.constant 0 : index
    %c0_52 = arith.constant 0 : index
    %61 = vector.load %arg7[%c1_50, %c0_51, %c0_52] : memref<2x1x16xf32, #tpu.memory_space<vmem>>, vector<1x1x16xf32>
    %62 = vector.shape_cast %61 : vector<1x1x16xf32> to vector<1x16xf32>
    %63 = vector.broadcast %62 : vector<1x16xf32> to vector<8x16xf32>
    %64 = arith.addf %60, %63 : vector<8x16xf32>
    %65 = tpu.transpose %57, [1, 0] : vector<8x16xf32> -> vector<16x8xf32>
    %cst_53 = arith.constant dense<0.000000e+00> : vector<8x8xf32>
    %66 = tpu.matmul %50, %65, %cst_53 {dimension_numbers = #tpu.dot_dimension_numbers<[1], [0], [0], [1], [0, 0, 1, 1], [], []>} : vector<8x16xf32>, vector<16x8xf32>, vector<8x8xf32> -> vector<8x8xf32>
    %cst_54 = arith.constant 2.500000e-01 : f32
    %67 = vector.broadcast %cst_54 : f32 to vector<8x8xf32>
    %68 = arith.mulf %66, %67 : vector<8x8xf32>
    %69 = arith.addf %68, %1 : vector<8x8xf32>
    %cst_55 = arith.constant dense<0xFF800000> : vector<8xf32>
    %70 = vector.multi_reduction <maximumf>, %69, %cst_55 [1] : vector<8x8xf32> to vector<8xf32>
    %71 = vector.shape_cast %70 : vector<8xf32> to vector<8x1xf32>
    %72 = vector.broadcast %71 : vector<8x1xf32> to vector<8x8xf32>
    %73 = arith.subf %69, %72 : vector<8x8xf32>
    %74 = math.exp %73 : vector<8x8xf32>
    %cst_56 = arith.constant dense<0.000000e+00> : vector<8xf32>
    %75 = vector.multi_reduction <add>, %74, %cst_56 [1] : vector<8x8xf32> to vector<8xf32>
    %76 = vector.shape_cast %75 : vector<8xf32> to vector<8x1xf32>
    %77 = tpu.reciprocal %76 {approx = true} : vector<8x1xf32> -> vector<8x1xf32>
    %78 = vector.broadcast %77 : vector<8x1xf32> to vector<8x8xf32>
    %79 = arith.mulf %74, %78 : vector<8x8xf32>
    %cst_57 = arith.constant dense<0.000000e+00> : vector<8x16xf32>
    %80 = tpu.matmul %79, %64, %cst_57 {dimension_numbers = #tpu.dot_dimension_numbers<[1], [0], [0], [1], [0, 0, 1, 1], [], []>} : vector<8x8xf32>, vector<8x16xf32>, vector<8x16xf32> -> vector<8x16xf32>
    %c1_58 = arith.constant 1 : index
    %c0_59 = arith.constant 0 : index
    %c0_60 = arith.constant 0 : index
    %81 = vector.load %arg8[%c1_58, %c0_59, %c0_60] : memref<2x16x32xf32, #tpu.memory_space<vmem>>, vector<1x16x32xf32>
    %82 = vector.shape_cast %81 : vector<1x16x32xf32> to vector<16x32xf32>
    %cst_61 = arith.constant dense<0.000000e+00> : vector<8x32xf32>
    %83 = tpu.matmul %80, %82, %cst_61 {dimension_numbers = #tpu.dot_dimension_numbers<[1], [0], [0], [1], [0, 0, 1, 1], [], []>} : vector<8x16xf32>, vector<16x32xf32>, vector<8x32xf32> -> vector<8x32xf32>
    %84 = arith.addf %43, %83 : vector<8x32xf32>
    %c0_62 = arith.constant 0 : index
    %c0_63 = arith.constant 0 : index
    %85 = vector.load %arg9[%c0_62, %c0_63] : memref<1x32xf32, #tpu.memory_space<vmem>>, vector<1x32xf32>
    %86 = vector.broadcast %85 : vector<1x32xf32> to vector<8x32xf32>
    %87 = arith.addf %84, %86 : vector<8x32xf32>
    %88 = arith.addf %0, %87 : vector<8x32xf32>
    %c0_64 = arith.constant 0 : index
    %c0_65 = arith.constant 0 : index
    %89 = vector.load %arg10[%c0_64, %c0_65] : memref<1x32xf32, #tpu.memory_space<vmem>>, vector<1x32xf32>
    %c0_66 = arith.constant 0 : index
    %c0_67 = arith.constant 0 : index
    %90 = vector.load %arg11[%c0_66, %c0_67] : memref<1x32xf32, #tpu.memory_space<vmem>>, vector<1x32xf32>
    %cst_68 = arith.constant dense<0.000000e+00> : vector<8xf32>
    %91 = vector.multi_reduction <add>, %88, %cst_68 [1] : vector<8x32xf32> to vector<8xf32>
    %92 = vector.shape_cast %91 : vector<8xf32> to vector<8x1xf32>
    %cst_69 = arith.constant 3.200000e+01 : f32
    %93 = vector.broadcast %cst_69 : f32 to vector<8x1xf32>
    %94 = arith.divf %92, %93 : vector<8x1xf32>
    %95 = vector.broadcast %94 : vector<8x1xf32> to vector<8x32xf32>
    %96 = arith.subf %88, %95 : vector<8x32xf32>
    %97 = vector.broadcast %94 : vector<8x1xf32> to vector<8x32xf32>
    %98 = arith.subf %88, %97 : vector<8x32xf32>
    %99 = arith.mulf %96, %98 : vector<8x32xf32>
    %cst_70 = arith.constant dense<0.000000e+00> : vector<8xf32>
    %100 = vector.multi_reduction <add>, %99, %cst_70 [1] : vector<8x32xf32> to vector<8xf32>
    %101 = vector.shape_cast %100 : vector<8xf32> to vector<8x1xf32>
    %cst_71 = arith.constant 3.200000e+01 : f32
    %102 = vector.broadcast %cst_71 : f32 to vector<8x1xf32>
    %103 = arith.divf %101, %102 : vector<8x1xf32>
    %104 = vector.broadcast %94 : vector<8x1xf32> to vector<8x32xf32>
    %105 = arith.subf %88, %104 : vector<8x32xf32>
    %cst_72 = arith.constant 9.99999974E-6 : f32
    %106 = vector.broadcast %cst_72 : f32 to vector<8x1xf32>
    %107 = arith.addf %103, %106 : vector<8x1xf32>
    %108 = math.rsqrt %107 : vector<8x1xf32>
    %109 = vector.broadcast %108 : vector<8x1xf32> to vector<8x32xf32>
    %110 = arith.mulf %105, %109 : vector<8x32xf32>
    %111 = vector.broadcast %89 : vector<1x32xf32> to vector<8x32xf32>
    %112 = arith.mulf %110, %111 : vector<8x32xf32>
    %113 = vector.broadcast %90 : vector<1x32xf32> to vector<8x32xf32>
    %114 = arith.addf %112, %113 : vector<8x32xf32>
    %c0_73 = arith.constant 0 : index
    %c0_74 = arith.constant 0 : index
    %115 = vector.load %arg12[%c0_73, %c0_74] : memref<32x64xf32, #tpu.memory_space<vmem>>, vector<32x64xf32>
    %cst_75 = arith.constant dense<0.000000e+00> : vector<8x64xf32>
    %116 = tpu.matmul %114, %115, %cst_75 {dimension_numbers = #tpu.dot_dimension_numbers<[1], [0], [0], [1], [0, 0, 1, 1], [], []>} : vector<8x32xf32>, vector<32x64xf32>, vector<8x64xf32> -> vector<8x64xf32>
    %c0_76 = arith.constant 0 : index
    %c0_77 = arith.constant 0 : index
    %117 = vector.load %arg13[%c0_76, %c0_77] : memref<1x64xf32, #tpu.memory_space<vmem>>, vector<1x64xf32>
    %118 = vector.broadcast %117 : vector<1x64xf32> to vector<8x64xf32>
    %119 = arith.addf %116, %118 : vector<8x64xf32>
    %120 = arith.mulf %119, %119 : vector<8x64xf32>
    %121 = arith.mulf %119, %120 : vector<8x64xf32>
    %cst_78 = arith.constant 4.471500e-02 : f32
    %122 = vector.broadcast %cst_78 : f32 to vector<8x64xf32>
    %123 = arith.mulf %122, %121 : vector<8x64xf32>
    %124 = arith.addf %119, %123 : vector<8x64xf32>
    %cst_79 = arith.constant 0.797884583 : f32
    %125 = vector.broadcast %cst_79 : f32 to vector<8x64xf32>
    %126 = arith.mulf %125, %124 : vector<8x64xf32>
    %127 = math.tanh %126 : vector<8x64xf32>
    %cst_80 = arith.constant 1.000000e+00 : f32
    %128 = vector.broadcast %cst_80 : f32 to vector<8x64xf32>
    %129 = arith.addf %128, %127 : vector<8x64xf32>
    %cst_81 = arith.constant 5.000000e-01 : f32
    %130 = vector.broadcast %cst_81 : f32 to vector<8x64xf32>
    %131 = arith.mulf %130, %129 : vector<8x64xf32>
    %132 = arith.mulf %119, %131 : vector<8x64xf32>
    %c0_82 = arith.constant 0 : index
    %c0_83 = arith.constant 0 : index
    %133 = vector.load %arg14[%c0_82, %c0_83] : memref<64x32xf32, #tpu.memory_space<vmem>>, vector<64x32xf32>
    %cst_84 = arith.constant dense<0.000000e+00> : vector<8x32xf32>
    %134 = tpu.matmul %132, %133, %cst_84 {dimension_numbers = #tpu.dot_dimension_numbers<[1], [0], [0], [1], [0, 0, 1, 1], [], []>} : vector<8x64xf32>, vector<64x32xf32>, vector<8x32xf32> -> vector<8x32xf32>
    %c0_85 = arith.constant 0 : index
    %c0_86 = arith.constant 0 : index
    %135 = vector.load %arg15[%c0_85, %c0_86] : memref<1x32xf32, #tpu.memory_space<vmem>>, vector<1x32xf32>
    %136 = vector.broadcast %135 : vector<1x32xf32> to vector<8x32xf32>
    %137 = arith.addf %134, %136 : vector<8x32xf32>
    %138 = arith.addf %114, %137 : vector<8x32xf32>
    %c0_87 = arith.constant 0 : index
    %c0_88 = arith.constant 0 : index
    %139 = vector.load %arg16[%c0_87, %c0_88] : memref<1x32xf32, #tpu.memory_space<vmem>>, vector<1x32xf32>
    %c0_89 = arith.constant 0 : index
    %c0_90 = arith.constant 0 : index
    %140 = vector.load %arg17[%c0_89, %c0_90] : memref<1x32xf32, #tpu.memory_space<vmem>>, vector<1x32xf32>
    %cst_91 = arith.constant dense<0.000000e+00> : vector<8xf32>
    %141 = vector.multi_reduction <add>, %138, %cst_91 [1] : vector<8x32xf32> to vector<8xf32>
    %142 = vector.shape_cast %141 : vector<8xf32> to vector<8x1xf32>
    %cst_92 = arith.constant 3.200000e+01 : f32
    %143 = vector.broadcast %cst_92 : f32 to vector<8x1xf32>
    %144 = arith.divf %142, %143 : vector<8x1xf32>
    %145 = vector.broadcast %144 : vector<8x1xf32> to vector<8x32xf32>
    %146 = arith.subf %138, %145 : vector<8x32xf32>
    %147 = vector.broadcast %144 : vector<8x1xf32> to vector<8x32xf32>
    %148 = arith.subf %138, %147 : vector<8x32xf32>
    %149 = arith.mulf %146, %148 : vector<8x32xf32>
    %cst_93 = arith.constant dense<0.000000e+00> : vector<8xf32>
    %150 = vector.multi_reduction <add>, %149, %cst_93 [1] : vector<8x32xf32> to vector<8xf32>
    %151 = vector.shape_cast %150 : vector<8xf32> to vector<8x1xf32>
    %cst_94 = arith.constant 3.200000e+01 : f32
    %152 = vector.broadcast %cst_94 : f32 to vector<8x1xf32>
    %153 = arith.divf %151, %152 : vector<8x1xf32>
    %154 = vector.broadcast %144 : vector<8x1xf32> to vector<8x32xf32>
    %155 = arith.subf %138, %154 : vector<8x32xf32>
    %cst_95 = arith.constant 9.99999974E-6 : f32
    %156 = vector.broadcast %cst_95 : f32 to vector<8x1xf32>
    %157 = arith.addf %153, %156 : vector<8x1xf32>
    %158 = math.rsqrt %157 : vector<8x1xf32>
    %159 = vector.broadcast %158 : vector<8x1xf32> to vector<8x32xf32>
    %160 = arith.mulf %155, %159 : vector<8x32xf32>
    %161 = vector.broadcast %139 : vector<1x32xf32> to vector<8x32xf32>
    %162 = arith.mulf %160, %161 : vector<8x32xf32>
    %163 = vector.broadcast %140 : vector<1x32xf32> to vector<8x32xf32>
    %164 = arith.addf %162, %163 : vector<8x32xf32>
    %c0_96 = arith.constant 0 : index
    %c0_97 = arith.constant 0 : index
    %165 = vector.load %arg24[%c0_96, %c0_97] : memref<32x8xf32, #tpu.memory_space<vmem>>, vector<32x8xf32>
    %cst_98 = arith.constant dense<0.000000e+00> : vector<8x8xf32>
    %166 = tpu.matmul %164, %165, %cst_98 {dimension_numbers = #tpu.dot_dimension_numbers<[1], [0], [0], [1], [0, 0, 1, 1], [], []>} : vector<8x32xf32>, vector<32x8xf32>, vector<8x8xf32> -> vector<8x8xf32>
    %c0_99 = arith.constant 0 : index
    %c0_100 = arith.constant 0 : index
    %167 = vector.load %arg25[%c0_99, %c0_100] : memref<1x8xf32, #tpu.memory_space<vmem>>, vector<1x8xf32>
    %168 = vector.broadcast %167 : vector<1x8xf32> to vector<8x8xf32>
    %169 = arith.addf %166, %168 : vector<8x8xf32>
    %c0_101 = arith.constant 0 : index
    %c0_102 = arith.constant 0 : index
    %170 = vector.load %arg18[%c0_101, %c0_102] : memref<8x256xf32, #tpu.memory_space<vmem>>, vector<8x256xf32>
    %c0_103 = arith.constant 0 : index
    %c0_104 = arith.constant 0 : index
    %171 = vector.load %arg20[%c0_103, %c0_104] : memref<256x8xf32, #tpu.memory_space<vmem>>, vector<256x8xf32>
    %cst_105 = arith.constant dense<0.000000e+00> : vector<8x8xf32>
    %172 = tpu.matmul %170, %171, %cst_105 {dimension_numbers = #tpu.dot_dimension_numbers<[1], [0], [0], [1], [0, 0, 1, 1], [], []>} : vector<8x256xf32>, vector<256x8xf32>, vector<8x8xf32> -> vector<8x8xf32>
    %c0_106 = arith.constant 0 : index
    %c0_107 = arith.constant 0 : index
    %173 = vector.load %arg21[%c0_106, %c0_107] : memref<1x8xf32, #tpu.memory_space<vmem>>, vector<1x8xf32>
    %174 = vector.broadcast %173 : vector<1x8xf32> to vector<8x8xf32>
    %175 = arith.addf %172, %174 : vector<8x8xf32>
    %c0_108 = arith.constant 0 : index
    %c0_109 = arith.constant 0 : index
    %176 = vector.load %arg19[%c0_108, %c0_109] : memref<8x16xf32, #tpu.memory_space<vmem>>, vector<8x16xf32>
    %c0_110 = arith.constant 0 : index
    %c0_111 = arith.constant 0 : index
    %177 = vector.load %arg22[%c0_110, %c0_111] : memref<16x8xf32, #tpu.memory_space<vmem>>, vector<16x8xf32>
    %cst_112 = arith.constant dense<0.000000e+00> : vector<8x8xf32>
    %178 = tpu.matmul %176, %177, %cst_112 {dimension_numbers = #tpu.dot_dimension_numbers<[1], [0], [0], [1], [0, 0, 1, 1], [], []>} : vector<8x16xf32>, vector<16x8xf32>, vector<8x8xf32> -> vector<8x8xf32>
    %179 = arith.addf %175, %178 : vector<8x8xf32>
    %c0_113 = arith.constant 0 : index
    %c0_114 = arith.constant 0 : index
    %180 = vector.load %arg23[%c0_113, %c0_114] : memref<1x8xf32, #tpu.memory_space<vmem>>, vector<1x8xf32>
    %181 = vector.broadcast %180 : vector<1x8xf32> to vector<8x8xf32>
    %182 = arith.addf %179, %181 : vector<8x8xf32>
    %c0_115 = arith.constant 0 : index
    %c0_116 = arith.constant 0 : index
    %183 = vector.load %arg26[%c0_115, %c0_116] : memref<8x8xf32, #tpu.memory_space<vmem>>, vector<8x8xf32>
    %cst_117 = arith.constant dense<0.000000e+00> : vector<8x8xf32>
    %184 = tpu.matmul %182, %183, %cst_117 {dimension_numbers = #tpu.dot_dimension_numbers<[1], [0], [0], [1], [0, 0, 1, 1], [], []>} : vector<8x8xf32>, vector<8x8xf32>, vector<8x8xf32> -> vector<8x8xf32>
    %c0_118 = arith.constant 0 : index
    %c0_119 = arith.constant 0 : index
    %185 = vector.load %arg27[%c0_118, %c0_119] : memref<8x8xf32, #tpu.memory_space<vmem>>, vector<8x8xf32>
    %cst_120 = arith.constant dense<0.000000e+00> : vector<8x8xf32>
    %186 = tpu.matmul %169, %185, %cst_120 {dimension_numbers = #tpu.dot_dimension_numbers<[1], [0], [0], [1], [0, 0, 1, 1], [], []>} : vector<8x8xf32>, vector<8x8xf32>, vector<8x8xf32> -> vector<8x8xf32>
    %187 = arith.addf %184, %186 : vector<8x8xf32>
    %c0_121 = arith.constant 0 : index
    %c0_122 = arith.constant 0 : index
    %188 = vector.load %arg28[%c0_121, %c0_122] : memref<1x8xf32, #tpu.memory_space<vmem>>, vector<1x8xf32>
    %189 = vector.broadcast %188 : vector<1x8xf32> to vector<8x8xf32>
    %190 = arith.addf %187, %189 : vector<8x8xf32>
    %c0_123 = arith.constant 0 : index
    %c0_124 = arith.constant 0 : index
    %191 = vector.load %arg30[%c0_123, %c0_124] : memref<8x1xf32, #tpu.memory_space<vmem>>, vector<8x1xf32>
    %c0_125 = arith.constant 0 : index
    %c0_126 = arith.constant 0 : index
    %192 = vector.load %arg31[%c0_125, %c0_126] : memref<8x1xf32, #tpu.memory_space<vmem>>, vector<8x1xf32>
    %cst_127 = arith.constant 1.000000e-10 : f32
    %193 = vector.broadcast %cst_127 : f32 to vector<8x1xf32>
    %194 = arith.addf %192, %193 : vector<8x1xf32>
    %195 = arith.divf %191, %194 : vector<8x1xf32>
    %c0_128 = arith.constant 0 : index
    %c0_129 = arith.constant 0 : index
    %196 = vector.load %arg29[%c0_128, %c0_129] : memref<8x1xf32, #tpu.memory_space<vmem>>, vector<8x1xf32>
    %c0_130 = arith.constant 0 : index
    %c0_131 = arith.constant 0 : index
    %197 = vector.load %arg32[%c0_130, %c0_131] : memref<8x1xf32, #tpu.memory_space<vmem>>, vector<8x1xf32>
    %198 = arith.mulf %197, %195 : vector<8x1xf32>
    %199 = arith.subf %196, %198 : vector<8x1xf32>
    %200 = vector.broadcast %195 : vector<8x1xf32> to vector<8x8xf32>
    %201 = arith.mulf %182, %200 : vector<8x8xf32>
    %202 = vector.broadcast %199 : vector<8x1xf32> to vector<8x8xf32>
    %203 = arith.addf %201, %202 : vector<8x8xf32>
    %c0_132 = arith.constant 0 : index
    %c0_133 = arith.constant 0 : index
    %204 = vector.load %arg33[%c0_132, %c0_133] : memref<8x8xf32, #tpu.memory_space<vmem>>, vector<8x8xf32>
    tpu.vector_store %arg33[%c0_132, %c0_133], %203 {strides = array<i32>} : memref<8x8xf32, #tpu.memory_space<vmem>>, vector<8x8xf32>,
    %205 = vector.broadcast %195 : vector<8x1xf32> to vector<8x8xf32>
    %206 = arith.mulf %169, %205 : vector<8x8xf32>
    %207 = vector.broadcast %199 : vector<8x1xf32> to vector<8x8xf32>
    %208 = arith.addf %206, %207 : vector<8x8xf32>
    %c0_134 = arith.constant 0 : index
    %c0_135 = arith.constant 0 : index
    %209 = vector.load %arg34[%c0_134, %c0_135] : memref<8x8xf32, #tpu.memory_space<vmem>>, vector<8x8xf32>
    tpu.vector_store %arg34[%c0_134, %c0_135], %208 {strides = array<i32>} : memref<8x8xf32, #tpu.memory_space<vmem>>, vector<8x8xf32>,
    %210 = vector.broadcast %195 : vector<8x1xf32> to vector<8x8xf32>
    %211 = arith.mulf %190, %210 : vector<8x8xf32>
    %212 = vector.broadcast %199 : vector<8x1xf32> to vector<8x8xf32>
    %213 = arith.addf %211, %212 : vector<8x8xf32>
    %c0_136 = arith.constant 0 : index
    %c0_137 = arith.constant 0 : index
    %214 = vector.load %arg35[%c0_136, %c0_137] : memref<8x8xf32, #tpu.memory_space<vmem>>, vector<8x8xf32>
    tpu.vector_store %arg35[%c0_136, %c0_137], %213 {strides = array<i32>} : memref<8x8xf32, #tpu.memory_space<vmem>>, vector<8x8xf32>,
    return
  }
}

</mosaic_0001>

<bundles_post_ra>
// kernel: tile.8
= control target key start
LH: loop header
LB: loop body
LE: loop exit
PB: predicated region body
PF: predicated region fallthrough
CT: control target
= control target key end

     0   :  { %s82_s0 = inlined_call_operand.vmem [shape: f32[4,4], index: 0, kind: input, shape index: {}]   ;;  %s83_s1 = inlined_call_operand.vmem [shape: f32[2,4,2,4], index: 1, kind: output, shape index: {}]  }
   0x1   :  { %v4_v0 = vld [vmem:[%s82_s0] ss:$0 sm:$0xff]  ;;  %v27_v1 = vld [vmem:[%s82_s0 + $0x1] ss:$0 sm:$0xff]  ;;  %v30_v2 = vld [vmem:[%s82_s0 + $0x2] ss:$0 sm:$0xff] }
   0x2   :  { %5 = vst [vmem:[%s83_s1] sm:$0x3] %v4_v0  ;;  %26 = vst [vmem:[%s83_s1 + $0x8] sm:$0x3] %v4_v0  ;;  %v33_v3 = vld [vmem:[%s82_s0 + $0x3] ss:$0 sm:$0xff] }
   0x3   :  { %28 = vst [vmem:[%s83_s1 + $0x2] sm:$0x3] %v27_v1  ;;  %29 = vst [vmem:[%s83_s1 + $0xa] sm:$0x3] %v27_v1 }
   0x4   :  { %31 = vst [vmem:[%s83_s1 + $0x4] sm:$0x3] %v30_v2  ;;  %32 = vst [vmem:[%s83_s1 + $0xc] sm:$0x3] %v30_v2 }
   0x5   :  { %34 = vst [vmem:[%s83_s1 + $0x6] sm:$0x3] %v33_v3  ;;  %35 = vst [vmem:[%s83_s1 + $0xe] sm:$0x3] %v33_v3 }

// kernel: tile.9
= control target key start
LH: loop header
LB: loop body
LE: loop exit
PB: predicated region body
PF: predicated region fallthrough
CT: control target
= control target key end

     0   :  { %vm43_vm0 = vcmask 1047556   ;;  %vm45_vm1 = vcmask 31744   ;;  %vm55_vm2 = vcmask 64544   ;;  %s112_s0 = inlined_call_operand.vmem [shape: f32[2,4,2,4], index: 0, kind: input, shape index: {}]   ;;  %s113_s1 = inlined_call_operand.vmem [shape: f32[8,8], index: 1, kind: output, shape index: {}]  }
   0x1   :  { %v63_v0 = vld [vmem:[%s112_s0 + $0xe] sm:$0x3]  ;;  %v64_v1 = vld [vmem:[%s112_s0 + $0xc] sm:$0x3]  ;;  %v65_v2 = vld [vmem:[%s112_s0 + $0xa] sm:$0x3] }
   0x2   :  { %9 = vst [vmem:[#allocation0 + $0x38] sm:$0x3] %v63_v0  ;;  %14 = vst [vmem:[#allocation0 + $0x30] sm:$0x3] %v64_v1  ;;  %v66_v3 = vld [vmem:[%s112_s0 + $0x8] sm:$0x3] }
   0x3   :  { %19 = vst [vmem:[#allocation0 + $0x28] sm:$0x3] %v65_v2  ;;  %v67_v4 = vld [vmem:[%s112_s0 + $0x6] sm:$0x3]  ;;  %v68_v5 = vld [vmem:[%s112_s0 + $0x4] sm:$0x3] }
   0x4   :  { %24 = vst [vmem:[#allocation0 + $0x20] sm:$0x3] %v66_v3  ;;  %29 = vst [vmem:[#allocation0 + $0x18] sm:$0x3] %v67_v4  ;;  %v69_v6 = vld [vmem:[%s112_s0 + $0x2] sm:$0x3] }
   0x5   :  { %34 = vst [vmem:[#allocation0 + $0x10] sm:$0x3] %v68_v5  ;;  %v39_v7 = vld [vmem:[%s112_s0] sm:$0x3]  ;;  %38 = vst [vmem:[#allocation0 + $0x8] sm:$0x3] %v69_v6 }
   0x6   :  { %40 = vst [vmem:[#allocation0] sm:$0x3] %v39_v7  ;;  %s71_s0 = smov 4  }
   0xb   :  { %v42_v8 = vld [vmem:[#allocation0] ss:$8 sm:$0xf0]   ;;  %v50_v9 = vld [vmem:[#allocation0 + $0x1] ss:$8 sm:$0xf0]  }
   0xd   :  { %v41_v10 = vld [vmem:[#allocation0] ss:$8 sm:$0xf]   ;;  %v48_v11 = vld [vmem:[#allocation0 + $0x1] ss:$8 sm:$0xf]  }
   0xe   :  { %v44_v12 = vsel %vm43_vm0, %v42_v8, %v41_v10  ;;  %v52_v13 = vsel %vm43_vm0, %v50_v9, %v48_v11 }
   0xf   :  { %53 = vrot.lane.b32.xlu0 %v52_v13, %s71_s0  ;;  %46 = vst.msk [vmem:[%s113_s1] sm:$0xff] %vm45_vm1, %v44_v12  }
  0x81   :  { %v54_v14 = vpop.permute.xlu0 %53  }
  0x82   :  { %56 = vst.msk [vmem:[%s113_s1] sm:$0xff] %vm55_vm2, %v54_v14  }

// kernel: model_forward.3
= control target key start
LH: loop header
LB: loop body
LE: loop exit
PB: predicated region body
PF: predicated region fallthrough
CT: control target
= control target key end

     0   :  { %s2351_s6 = smov 1   ;;  %s2352_s10 = smov 2   ;;  %s2817_s0 = inlined_call_operand.smem [shape: u32[36], index: -1, kind: input, shape index: {}] }
   0x1   :  { %s2400_s5 = sld [smem:[%s2817_s0]]   ;;  %s2353_s14 = smov 3  }
   0x2   :  { %s2405_s9 = sld [smem:[%s2817_s0 + %s2351_s6]]   ;;  %s2354_s18 = smov 4  }
   0x3   :  { %s2410_s13 = sld [smem:[%s2817_s0 + %s2352_s10]]   ;;  %s2355_s22 = smov 5  }
   0x4   :  { %s2415_s17 = sld [smem:[%s2817_s0 + %s2353_s14]]   ;;  %s2356_s26 = smov 6  }
   0x5   :  { %s2420_s21 = sld [smem:[%s2817_s0 + %s2354_s18]]   ;;  %s2357_s30 = smov 7  }
   0x6   :  { %s2425_s25 = sld [smem:[%s2817_s0 + %s2355_s22]]   ;;  %s2358_s4 = smov 8  }
   0x7   :  { %s2430_s29 = sld [smem:[%s2817_s0 + %s2356_s26]]   ;;  %s2359_s10 = smov 9  }
   0x8   :  { %s2435_s3 = sld [smem:[%s2817_s0 + %s2357_s30]]   ;;  %s2360_s15 = smov 10  }
   0x9   :  { %s2440_s8 = sld [smem:[%s2817_s0 + %s2358_s4]]   ;;  %s2361_s20 = smov 11  }
   0xa   :  { %s2445_s14 = sld [smem:[%s2817_s0 + %s2359_s10]]   ;;  %s2362_s26 = smov 12  }
   0xb   :  { %s2450_s19 = sld [smem:[%s2817_s0 + %s2360_s15]]   ;;  %s2363_s1 = smov 13  }
   0xc   :  { %s2455_s24 = sld [smem:[%s2817_s0 + %s2361_s20]]   ;;  %s2364_s7 = smov 14  }
   0xd   :  { %s2460_s30 = sld [smem:[%s2817_s0 + %s2362_s26]]   ;;  %s2365_s15 = smov 15  }
   0xe   :  { %s2465_s6 = sld [smem:[%s2817_s0 + %s2363_s1]]   ;;  %s2366_s22 = smov 16  }
   0xf   :  { %s2470_s12 = sld [smem:[%s2817_s0 + %s2364_s7]]   ;;  %s2367_s28 = smov 17  }
  0x10   :  { %s2475_s20 = sld [smem:[%s2817_s0 + %s2365_s15]]   ;;  %s2368_s7 = smov 18  }
  0x11   :  { %s2480_s27 = sld [smem:[%s2817_s0 + %s2366_s22]]   ;;  %s2369_s15 = smov 19  }
  0x12   :  { %s2485_s4 = sld [smem:[%s2817_s0 + %s2367_s28]]   ;;  %s2370_s22 = smov 20  }
  0x13   :  { %s2371_s28 = smov 21  }
  0x14   :  { %2822 = sst [smem:[#allocation9_spill]] %s2465_s6 }
  0x15   :  { %s2490_s6 = sld [smem:[%s2817_s0 + %s2368_s7]]   ;;  %s2372_s7 = smov 22  }
  0x16   :  { %2823 = sst [smem:[#allocation10_spill]] %s2475_s20 }
  0x17   :  { %2824 = sst [smem:[#allocation11_spill]] %s2480_s27 }
  0x18   :  { %2825 = sst [smem:[#allocation12_spill]] %s2485_s4 }
  0x19   :  { %s2495_s20 = sld [smem:[%s2817_s0 + %s2369_s15]]   ;;  %s2373_s15 = smov 23  }
  0x1a   :  { %s2500_s27 = sld [smem:[%s2817_s0 + %s2370_s22]]   ;;  %s2374_s22 = smov 24  }
  0x1b   :  { %2826 = sst [smem:[#allocation13_spill]] %s2490_s6 }
  0x1c   :  { %s2505_s4 = sld [smem:[%s2817_s0 + %s2371_s28]]   ;;  %s2375_s28 = smov 25  }
  0x1d   :  { %s2510_s6 = sld [smem:[%s2817_s0 + %s2372_s7]]   ;;  %s2376_s7 = smov 26  }
  0x1f   :  { %2827 = sst [smem:[#allocation14_spill]] %s2495_s20 }
  0x20   :  { %2828 = sst [smem:[#allocation15_spill]] %s2500_s27 }
  0x21   :  { %s2515_s20 = sld [smem:[%s2817_s0 + %s2373_s15]]   ;;  %s2377_s15 = smov 27  }
  0x22   :  { %2829 = sst [smem:[#allocation16_spill]] %s2505_s4 }
  0x23   :  { %2830 = sst [smem:[#allocation17_spill]] %s2510_s6 }
  0x24   :  { %s2520_s27 = sld [smem:[%s2817_s0 + %s2374_s22]]   ;;  %s2378_s22 = smov 28  }
  0x25   :  { %s2525_s4 = sld [smem:[%s2817_s0 + %s2375_s28]]   ;;  %s2379_s28 = smov 29  }
  0x26   :  { %s2530_s6 = sld [smem:[%s2817_s0 + %s2376_s7]]   ;;  %s2380_s7 = smov 30  }
  0x27   :  { %2831 = sst [smem:[#allocation18_spill]] %s2515_s20 }
  0x28   :  { %s2535_s20 = sld [smem:[%s2817_s0 + %s2377_s15]]   ;;  %s2381_s15 = smov 31  }
  0x2a   :  { %2832 = sst [smem:[#allocation19_spill]] %s2520_s27 }
  0x2b   :  { %2833 = sst [smem:[#allocation20_spill]] %s2525_s4 }
  0x2c   :  { %2834 = sst [smem:[#allocation21_spill]] %s2530_s6 }
  0x2d   :  { %s2540_s27 = sld [smem:[%s2817_s0 + %s2378_s22]]   ;;  %s2382_s22 = smov 32  }
  0x2e   :  { %2835 = sst [smem:[#allocation22_spill]] %s2535_s20 }
  0x2f   :  { %s2545_s4 = sld [smem:[%s2817_s0 + %s2379_s28]]   ;;  %s2383_s28 = smov 33  }
  0x30   :  { %s2550_s6 = sld [smem:[%s2817_s0 + %s2380_s7]]   ;;  %s2384_s7 = smov 34  }
  0x31   :  { %s2555_s20 = sld [smem:[%s2817_s0 + %s2381_s15]]   ;;  %s2385_s15 = smov 35  }
  0x33   :  { %2836 = sst [smem:[#allocation23_spill]] %s2540_s27 }
  0x34   :  { %s2560_s27 = sld [smem:[%s2817_s0 + %s2382_s22]]  }
  0x35   :  { %2837 = sst [smem:[#allocation24_spill]] %s2545_s4 }
  0x36   :  { %2838 = sst [smem:[#allocation25_spill]] %s2550_s6 }
  0x37   :  { %2839 = sst [smem:[#allocation26_spill]] %s2555_s20 }
  0x38   :  { %s2565_s4 = sld [smem:[%s2817_s0 + %s2383_s28]]  }
  0x39   :  { %s2570_s6 = sld [smem:[%s2817_s0 + %s2384_s7]]  }
  0x3a   :  { %s2575_s20 = sld [smem:[%s2817_s0 + %s2385_s15]]  }
  0x3b   :  { %77 = vsyncpa [#allocation3], 0  ;;  %v150_v0 = vld [vmem:[%s2410_s13 + $0x18] sm:$0xff]  ;;  %v2386_v1 = vmov 0.0   ;;  %v149_v2 = vld [vmem:[%s2410_s13 + $0x10] sm:$0xff]  ;;  %vm2387_vm0 = vmmov 0  }
  0x3c   :  { %2070 = vmatprep.subr.mxu1 %v2386_v1  ;;  %2078 = vmatprep.mubr.msk.f32.mxu1 %vm2387_vm0, %v2386_v1  ;;  %v148_v3 = vld [vmem:[%s2410_s13 + $0x8] sm:$0xff] }
  0x3d   :  { %2071 = vmatpush3.msra.mxu1 %v150_v0  ;;  %2092 = vmatprep.subr.mxu0 %v2386_v1 }
  0x3e   :  { %2072 = vmatprep.subr.mxu1 %v2386_v1  ;;  %2100 = vmatprep.mubr.msk.f32.mxu0 %vm2387_vm0, %v2386_v1 }
  0x3f   :  { %78 = vsyncpa [#allocation5], 0  ;;  %2073 = vmatpush3.msra.mxu1 %v149_v2  ;;  %v147_v4 = vld [vmem:[%s2410_s13] sm:$0xff]  ;;  %vm158_vm1 = vcmask 261120   ;;  %v235_v6 = vld [vmem:[%s2420_s21 + $0x18] sm:$0xff]  ;;  %vm394_vm2 = vcmask 130048  }
  0x40   :  { %2074 = vmatprep.subr.mxu1 %v2386_v1  ;;  %v2590_v5 = vld [vmem:[%s2400_s5] sm:$0xff]  ;;  %v234_v7 = vld [vmem:[%s2420_s21 + $0x10] sm:$0xff]  ;;  %v233_v8 = vld [vmem:[%s2420_s21 + $0x8] sm:$0xff]  ;;  %vm473_vm3 = vcmask 64512   ;;  %s2840_s0 = sld [smem:[#allocation9_spill]]  ;;  %vm1267_vm4 = vcmask 523264  }
  0x41   :  { %2075 = vmatpush3.msra.mxu1 %v148_v3  ;;  %v232_v9 = vld [vmem:[%s2420_s21] sm:$0xff]  ;;  %v316_v18 = vld [vmem:[%s2430_s29 + $0x18] sm:$0xff]  ;;  %v315_v19 = vld [vmem:[%s2430_s29 + $0x10] sm:$0xff]  ;;  %s2841_s5 = sld [smem:[#allocation10_spill]]  ;;  %s2389_s23 = smov [#allocation4]  }
  0x42   :  { %2076 = vmatprep.subr.mxu1 %v2386_v1  ;;  %v1913_v12 = vld [vmem:[%s2425_s25] ss:$0 sm:$0xff]  ;;  %2093 = vmatpush3.msra.mxu0 %v316_v18  ;;  %v314_v20 = vld [vmem:[%s2430_s29 + $0x8] sm:$0xff]  ;;  %v1923_v37 = vld [vmem:[%s2410_s13 + $0x38] sm:$0xff]  ;;  %s2856_s22 = sld [smem:[#allocation18_spill]]  ;;  %s1851_s26 = sshll.u32 %s2389_s23, 4  ;;  %s1852_s26 = int_to_ptr.vmem [resolvable:$true] %s1851_s26 }
  0x43   :  { %2077 = vmatpush3.msra.mxu1 %v147_v4  ;;  %v1911_v14 = vld [vmem:[%s2415_s17] ss:$0 sm:$0xff]  ;;  %2094 = vmatprep.subr.mxu0 %v2386_v1  ;;  %v1922_v38 = vld [vmem:[%s2410_s13 + $0x30] sm:$0xff]  ;;  %v1921_v39 = vld [vmem:[%s2410_s13 + $0x28] sm:$0xff]  ;;  %s2390_s28 = smov [#allocation2]   ;;  %s2287_s2 = scalar_lea.vmem %s1852_s26, 128 }
  0x44   :  { %2079 = vmatmul.mubr.msk.f32.vlgmr.msra.gmra.mxu1 %vm158_vm1, %v2590_v5  ;;  %2081 = vmatprep.subr.mxu1 %v2386_v1  ;;  %v313_v21 = vld [vmem:[%s2430_s29] sm:$0xff]  ;;  %v1930_v44 = vld [vmem:[%s2420_s21 + $0x38] sm:$0xff]  ;;  %v1929_v45 = vld [vmem:[%s2420_s21 + $0x30] sm:$0xff]  ;;  %s1841_s1 = sshll.u32 %s2390_s28, 4  ;;  %p2288_p0 = scmp.ne.s32.totalorder %s1852_s26, %s2287_s2  ;;  %s1842_s1 = int_to_ptr.vmem [resolvable:$true] %s1841_s1 }
  0x45   :  { %2082 = vmatpush3.msra.mxu1 %v235_v6  ;;  %2089 = vmatprep.mubr.msk.f32.mxu1 %vm2387_vm0, %v2386_v1  ;;  %v2630_v23 = vld [vmem:[%s2405_s9] sm:$0xff]  ;;  %v1928_v46 = vld [vmem:[%s2420_s21 + $0x28] sm:$0xff]  ;;  %v1937_v58 = vld [vmem:[%s2430_s29 + $0x38] sm:$0xff]  ;;  %s2842_s9 = sld [smem:[#allocation19_spill]]  ;;  %p2292_p1 = scmp.lt.s32.totalorder %s1852_s26, %s1852_s26 }
  0x46   :  { %2083 = vmatprep.subr.mxu1 %v2386_v1  ;;  %2095 = vmatpush3.msra.mxu0 %v315_v19  ;;  %v1915_v33 = vld [vmem:[%s2435_s3] ss:$0 sm:$0xff]  ;;  %v1932_v52 = vld [vmem:[%s2425_s25 + $0x1] ss:$0 sm:$0xff]  ;;  %v1936_v59 = vld [vmem:[%s2430_s29 + $0x30] sm:$0xff]  ;;  %s2846_s25 = sld [smem:[#allocation26_spill]]  ;;  %p2293_p2 = scmp.lt.s32.totalorder %s2287_s2, %s2287_s2 }
  0x47   :  { %2084 = vmatpush3.msra.mxu1 %v234_v7  ;;  %2096 = vmatprep.subr.mxu0 %v2386_v1  ;;  %v1920_v40 = vld [vmem:[%s2410_s13 + $0x20] sm:$0xff]  ;;  %v1935_v60 = vld [vmem:[%s2430_s29 + $0x28] sm:$0xff]  ;;  %s2843_s13 = sld [smem:[#allocation15_spill]] }
  0x48   :  { %2085 = vmatprep.subr.mxu1 %v2386_v1  ;;  %2097 = vmatpush3.msra.mxu0 %v314_v20  ;;  %v1927_v47 = vld [vmem:[%s2420_s21 + $0x20] sm:$0xff]  ;;  %v559_v18 = vld [vmem:[%s2440_s8 + $0x8] sm:$0xff]  ;;  %v1944_v20 = vld [vmem:[%s2440_s8 + $0x10] sm:$0xff]  ;;  %s2845_s21 = sld [smem:[#allocation14_spill]]  ;;  %p2294_p3 = por %p2293_p2, %p2292_p1 }
  0x49   :  { %2086 = vmatpush3.msra.mxu1 %v233_v8  ;;  %2098 = vmatprep.subr.mxu0 %v2386_v1  ;;  %v1925_v53 = vld [vmem:[%s2415_s17 + $0x1] ss:$0 sm:$0xff]  ;;  %s2844_s17 = sld [smem:[#allocation17_spill]] }
  0x4a   :  { %2087 = vmatprep.subr.mxu1 %v2386_v1  ;;  %2099 = vmatpush3.msra.mxu0 %v313_v21  ;;  %v1934_v61 = vld [vmem:[%s2430_s29 + $0x20] sm:$0xff]  ;;  %s2847_s29 = sld [smem:[#allocation25_spill]]  ;;  %p2295_p4 = pnand %p2294_p3, %p2288_p0 }
  0x4b   :  { %2088 = vmatpush3.msra.mxu1 %v232_v9  ;;  %2101 = vmatmul.mubr.msk.f32.vlgmr.msra.gmra.mxu0 %vm158_vm1, %v2590_v5  ;;  %v558_v19 = vld [vmem:[%s2440_s8] sm:$0xff] }
  0x4c   :  { %2090 = vmatmul.mubr.msk.f32.vlgmr.msra.gmra.mxu1 %vm158_vm1, %v2590_v5  ;;  %2103 = vmatprep.subr.mxu1 %v2386_v1 }
  0x4d   :  { %2105 = vmatprep.mubr.msk.f32.mxu1 %vm2387_vm0, %v2386_v1  ;;  %2113 = vmatprep.subr.mxu0 %v2386_v1 }
  0x4e   :  { %2121 = vmatprep.mubr.msk.f32.mxu0 %vm2387_vm0, %v2386_v1  ;;  %2114 = vmatpush3.msra.mxu0 %v1923_v37  ;;  %v1162_v37 = vld [vmem:[%s2460_s30 + $0x18] sm:$0xff] }
  0x4f   :  { %2115 = vmatprep.subr.mxu0 %v2386_v1 }
  0x50   :  { %2116 = vmatpush3.msra.mxu0 %v1922_v38  ;;  %v1161_v38 = vld [vmem:[%s2460_s30 + $0x10] sm:$0xff] }
  0x51   :  { %2117 = vmatprep.subr.mxu0 %v2386_v1 }
  0x52   :  { %2118 = vmatpush3.msra.mxu0 %v1921_v39  ;;  %v1160_v39 = vld [vmem:[%s2460_s30 + $0x8] sm:$0xff] }
  0x53   :  { %2119 = vmatprep.subr.mxu0 %v2386_v1 }
  0x54   :  { %2120 = vmatpush3.msra.mxu0 %v1920_v40 }
  0x55   :  { %2122 = vmatmul.mubr.msk.f32.vlgmr.msra.gmra.mxu0 %vm158_vm1, %v2590_v5  ;;  %2135 = vmatprep.subr.mxu0 %v2386_v1 }
  0x56   :  { %2143 = vmatprep.mubr.msk.f32.mxu0 %vm2387_vm0, %v2386_v1  ;;  %2136 = vmatpush3.msra.mxu0 %v1937_v58 }
  0x57   :  { %2137 = vmatprep.subr.mxu0 %v2386_v1 }
  0x58   :  { %2138 = vmatpush3.msra.mxu0 %v1936_v59 }
  0x59   :  { %2139 = vmatprep.subr.mxu0 %v2386_v1 }
  0x5a   :  { %2140 = vmatpush3.msra.mxu0 %v1935_v60 }
  0x5b   :  { %2141 = vmatprep.subr.mxu0 %v2386_v1 }
  0x5c   :  { %2142 = vmatpush3.msra.mxu0 %v1934_v61 }
  0x5d   :  { %2144 = vmatmul.mubr.msk.f32.vlgmr.msra.gmra.mxu0 %vm158_vm1, %v2590_v5  ;;  %2156 = vmatprep.subr.mxu0 %v2386_v1 }
  0x5e   :  { %2160 = vmatprep.mubr.msk.f32.mxu0 %vm2387_vm0, %v2386_v1 }
 0x104   :  { %v228_v10 = vpop.f32.mrf.mxu1 }
 0x105   :  { %v229_v17 = vadd.f32 %v1911_v14, %v228_v10  ;;  %v1939_v10 = vld [vmem:[%s2435_s3 + $0x1] ss:$0 sm:$0xff]  ;;  %v1945_v14 = vld [vmem:[%s2440_s8 + $0x18] sm:$0xff]  ;;  %s2848_s3 = sld [smem:[#allocation24_spill]] }
 0x106   :  { %v2080_v11 = vpop.f32.mrf.mxu1  ;;  %2157 = vmatpush3.msra.mxu0 %v1945_v14  ;;  %s2849_s8 = sld [smem:[#allocation11_spill]] }
 0x107   :  { %2158 = vmatprep.subr.mxu0 %v2386_v1 }
 0x108   :  { %2159 = vmatpush3.msra.mxu0 %v1944_v20  ;;  %v1373_v20 = vld [vmem:[%s2842_s9 + $0x10] sm:$0xff] }
 0x109   :  { %2170 = vmatprep.subr.mxu0 %v2386_v1 }
 0x10b   :  { %v390_v34 = vpop.f32.mrf.mxu0 }
 0x10c   :  { %v309_v13 = vpop.f32.mrf.mxu1  ;;  %v391_v35 = vadd.f32 %v1915_v33, %v390_v34 }
 0x10d   :  { %v310_v15 = vadd.f32 %v1913_v12, %v309_v13  ;;  %v2102_v36 = vpop.f32.mrf.mxu0 }
 0x10e   :  { %v2091_v16 = vpop.f32.mrf.mxu1 }
 0x10f   :  { %2104 = vmatpush3.xpose.msk.msra.mxu1 %vm394_vm2, %v310_v15 }
 0x110   :  { %2108 = vmatprep.subr.mxu1 %v2386_v1 }
 0x112   :  { %2106 = vmatmul.mubr.msk.f32.vlgmr.msra.gmra.mxu1 %vm394_vm2, %v229_v17 }
 0x113   :  { %2110 = vmatprep.mubr.msk.f32.mxu1 %vm2387_vm0, %v2386_v1  ;;  %2109 = vmatpush3.msra.mxu1 %v391_v35 }
 0x114   :  { %2124 = vmatprep.subr.mxu1 %v2386_v1 }
 0x115   :  { %v639_v48 = vpop.f32.mrf.mxu0 }
 0x116   :  { %v640_v56 = vadd.f32 %v1925_v53, %v639_v48  ;;  %v1255_v53 = vld [vmem:[%s2470_s12 + $0x18] sm:$0xff] }
 0x117   :  { %v2123_v49 = vpop.f32.mrf.mxu0 }
 0x118   :  { %v1259_v49 = vld [vmem:[%s2470_s12 + $0x38] sm:$0xff] }
 0x11d   :  { %v805_v11 = vpop.f32.mrf.mxu0 }
 0x11e   :  { %v806_v12 = vadd.f32 %v1939_v10, %v805_v11 }
 0x11f   :  { %v2145_v13 = vpop.f32.mrf.mxu0 }
 0x1d2   :  { %v467_v22 = vpop.f32.mrf.mxu1 }
 0x1d3   :  { %v471_v24 = vmul.f32 0.25, %v467_v22 }
 0x1d4   :  { %v2107_v25 = vpop.f32.mrf.mxu1 }
 0x1d5   :  { %v472_v26 = vadd.f32 %v471_v24, %v2630_v23 }
 0x1d7   :  { %v474_v27 = vsel %vm473_vm3, %v472_v26, -inf }
 0x1d8   :  { %475 = vmax.xlane.f32.xlu0 %v474_v27 }
 0x261   :  { %v476_v28 = vpop.xlane.xlu0 %475 }
 0x262   :  { %v477_v29 = vsub.f32 %v472_v26, %v476_v28  ;;  %v1948_v26 = vld [vmem:[%s2445_s14] ss:$0 sm:$0xff]  ;;  %s2850_s14 = sld [smem:[#allocation12_spill]] }
 0x264   :  { %v478_v30 = vmul.f32 1.442695, %v477_v29 }
 0x266   :  { %2271 = vpow2.f32 %v478_v30 }
 0x273   :  { %v2272_v31 = vpop.eup %2271 }
 0x274   :  { %v480_v32 = vsel %vm473_vm3, %v2272_v31, 0.0 }
 0x275   :  { %481 = vadd.xlane.f32.xlu0 %v480_v32 }
 0x2fe   :  { %v482_v41 = vpop.xlane.xlu0 %481 }
 0x2ff   :  { %2273 = vrcp.f32 %v482_v41 }
 0x30c   :  { %v2274_v42 = vpop.eup %2273 }
 0x30d   :  { %v484_v43 = vmul.f32 %v2274_v42, %v2272_v31 }
 0x30f   :  { %2111 = vmatmul.mubr.msk.f32.vlgmr.msra.gmra.mxu1 %vm473_vm3, %v484_v43 }
 0x310   :  { %2125 = vmatpush3.msra.mxu1 %v1930_v44  ;;  %2132 = vmatprep.mubr.msk.f32.mxu1 %vm2387_vm0, %v2386_v1  ;;  %v1949_v44 = vld [vmem:[%s2450_s19] ss:$0 sm:$0xff]  ;;  %s2851_s19 = sld [smem:[#allocation13_spill]] }
 0x311   :  { %2126 = vmatprep.subr.mxu1 %v2386_v1 }
 0x312   :  { %2127 = vmatpush3.msra.mxu1 %v1929_v45 }
 0x313   :  { %2128 = vmatprep.subr.mxu1 %v2386_v1 }
 0x314   :  { %2129 = vmatpush3.msra.mxu1 %v1928_v46  ;;  %v1950_v46 = vld [vmem:[%s2455_s24] ss:$0 sm:$0xff]  ;;  %s2852_s24 = sld [smem:[#allocation22_spill]] }
 0x315   :  { %2130 = vmatprep.subr.mxu1 %v2386_v1 }
 0x316   :  { %2131 = vmatpush3.msra.mxu1 %v1927_v47 }
 0x317   :  { %2133 = vmatmul.mubr.msk.f32.vlgmr.msra.gmra.mxu1 %vm158_vm1, %v2590_v5  ;;  %2146 = vmatprep.subr.mxu1 %v2386_v1 }
 0x318   :  { %2148 = vmatprep.mubr.msk.f32.mxu1 %vm2387_vm0, %v2386_v1 }
 0x3cf   :  { %v554_v50 = vpop.f32.mrf.mxu1 }
 0x3d1   :  { %v2112_v51 = vpop.f32.mrf.mxu1 }
 0x3d2   :  { %v1257_v51 = vld [vmem:[%s2470_s12 + $0x28] sm:$0xff] }
 0x3d7   :  { %v722_v54 = vpop.f32.mrf.mxu1 }
 0x3d8   :  { %v723_v55 = vadd.f32 %v1932_v52, %v722_v54  ;;  %v1256_v52 = vld [vmem:[%s2470_s12 + $0x20] sm:$0xff]  ;;  %v1254_v54 = vld [vmem:[%s2470_s12 + $0x10] sm:$0xff] }
 0x3d9   :  { %v2134_v57 = vpop.f32.mrf.mxu1 }
 0x3da   :  { %2147 = vmatpush3.xpose.msk.msra.mxu1 %vm394_vm2, %v723_v55  ;;  %v1253_v55 = vld [vmem:[%s2470_s12 + $0x8] sm:$0xff]  ;;  %v1951_v57 = vld [vmem:[%s2840_s0] ss:$0 sm:$0xff] }
 0x3db   :  { %2151 = vmatprep.subr.mxu1 %v2386_v1 }
 0x3dd   :  { %2149 = vmatmul.mubr.msk.f32.vlgmr.msra.gmra.mxu1 %vm394_vm2, %v640_v56  ;;  %v1252_v56 = vld [vmem:[%s2470_s12] sm:$0xff] }
 0x3de   :  { %2153 = vmatprep.mubr.msk.f32.mxu1 %vm2387_vm0, %v2386_v1  ;;  %2152 = vmatpush3.msra.mxu1 %v806_v12 }
 0x3df   :  { %2163 = vmatprep.subr.mxu1 %v2386_v1 }
 0x49d   :  { %v881_v62 = vpop.f32.mrf.mxu1 }
 0x49e   :  { %v885_v63 = vmul.f32 0.25, %v881_v62 }
 0x49f   :  { %v2150_v0 = vpop.f32.mrf.mxu1 }
 0x4a0   :  { %v886_v2 = vadd.f32 %v885_v63, %v2630_v23 }
 0x4a2   :  { %v887_v3 = vsel %vm473_vm3, %v886_v2, -inf }
 0x4a3   :  { %888 = vmax.xlane.f32.xlu1 %v887_v3 }
 0x52c   :  { %v889_v4 = vpop.xlane.xlu1 %888 }
 0x52d   :  { %v890_v6 = vsub.f32 %v886_v2, %v889_v4 }
 0x52f   :  { %v891_v7 = vmul.f32 1.442695, %v890_v6 }
 0x531   :  { %2275 = vpow2.f32 %v891_v7 }
 0x53e   :  { %v2276_v8 = vpop.eup %2275 }
 0x53f   :  { %v893_v9 = vsel %vm473_vm3, %v2276_v8, 0.0 }
 0x540   :  { %894 = vadd.xlane.f32.xlu1 %v893_v9 }
 0x5c9   :  { %v895_v15 = vpop.xlane.xlu1 %894 }
 0x5ca   :  { %2277 = vrcp.f32 %v895_v15 }
 0x5d7   :  { %v2278_v16 = vpop.eup %2277 }
 0x5d8   :  { %v897_v17 = vmul.f32 %v2278_v16, %v2276_v8  ;;  %v1953_v8 = vld [vmem:[%s2841_s5] ss:$0 sm:$0xff] }
 0x5da   :  { %2154 = vmatmul.mubr.msk.f32.vlgmr.msra.gmra.mxu1 %vm473_vm3, %v897_v17 }
 0x5db   :  { %2164 = vmatpush3.msra.mxu1 %v559_v18  ;;  %2167 = vmatprep.mubr.msk.f32.mxu1 %vm2387_vm0, %v2386_v1 }
 0x5dc   :  { %2165 = vmatprep.subr.mxu1 %v2386_v1 }
 0x5dd   :  { %2166 = vmatpush3.msra.mxu1 %v558_v19  ;;  %v1374_v19 = vld [vmem:[%s2842_s9 + $0x18] sm:$0xff] }
 0x5de   :  { %2168 = vmatmul.mubr.msk.f32.vlgmr.msra.gmra.mxu1 %vm394_vm2, %v554_v50  ;;  %2181 = vmatprep.subr.mxu1 %v2386_v1  ;;  %v1258_v50 = vld [vmem:[%s2470_s12 + $0x30] sm:$0xff]  ;;  %s2854_s12 = sld [smem:[#allocation21_spill]] }
 0x5df   :  { %2197 = vmatprep.mubr.msk.f32.mxu1 %vm2387_vm0, %v2386_v1  ;;  %2182 = vmatpush3.msra.mxu1 %v1259_v49  ;;  %v1486_v49 = vld [vmem:[%s2843_s13 + $0xe8] sm:$0xff] }
 0x5e0   :  { %2183 = vmatprep.subr.mxu1 %v2386_v1 }
 0x5e1   :  { %2184 = vmatpush3.msra.mxu1 %v1258_v50  ;;  %v1470_v50 = vld [vmem:[%s2843_s13 + $0x68] sm:$0xff] }
 0x5e2   :  { %2185 = vmatprep.subr.mxu1 %v2386_v1 }
 0x5e3   :  { %2186 = vmatpush3.msra.mxu1 %v1257_v51  ;;  %v1485_v51 = vld [vmem:[%s2843_s13 + $0xe0] sm:$0xff] }
 0x5e4   :  { %2187 = vmatprep.subr.mxu1 %v2386_v1 }
 0x5e5   :  { %2188 = vmatpush3.msra.mxu1 %v1256_v52  ;;  %v1469_v52 = vld [vmem:[%s2843_s13 + $0x60] sm:$0xff] }
 0x5e6   :  { %2189 = vmatprep.subr.mxu1 %v2386_v1 }
 0x5e7   :  { %2190 = vmatpush3.msra.mxu1 %v1255_v53  ;;  %v1484_v53 = vld [vmem:[%s2843_s13 + $0xd8] sm:$0xff] }
 0x5e8   :  { %2191 = vmatprep.subr.mxu1 %v2386_v1 }
 0x5e9   :  { %2192 = vmatpush3.msra.mxu1 %v1254_v54  ;;  %v1468_v54 = vld [vmem:[%s2843_s13 + $0x58] sm:$0xff] }
 0x5ea   :  { %2193 = vmatprep.subr.mxu1 %v2386_v1 }
 0x5eb   :  { %2194 = vmatpush3.msra.mxu1 %v1253_v55  ;;  %v1483_v55 = vld [vmem:[%s2843_s13 + $0xd0] sm:$0xff] }
 0x5ec   :  { %2195 = vmatprep.subr.mxu1 %v2386_v1 }
 0x5ed   :  { %2196 = vmatpush3.msra.mxu1 %v1252_v56  ;;  %v1467_v56 = vld [vmem:[%s2843_s13 + $0x50] sm:$0xff] }
 0x5ee   :  { %2211 = vmatprep.subr.mxu1 %v2386_v1 }
 0x69a   :  { %v967_v21 = vpop.f32.mrf.mxu1 }
 0x69b   :  { %2161 = vmatmul.mubr.msk.f32.vlgmr.msra.gmra.mxu0 %vm394_vm2, %v967_v21  ;;  %v1372_v21 = vld [vmem:[%s2842_s9 + $0x8] sm:$0xff] }
 0x69c   :  { %v2155_v22 = vpop.f32.mrf.mxu1  ;;  %2178 = vmatprep.mubr.msk.f32.mxu0 %vm2387_vm0, %v2386_v1  ;;  %2171 = vmatpush3.msra.mxu0 %v1162_v37 }
 0x69d   :  { %2172 = vmatprep.subr.mxu0 %v2386_v1  ;;  %v1371_v22 = vld [vmem:[%s2842_s9] sm:$0xff] }
 0x69e   :  { %v1116_v23 = vpop.f32.mrf.mxu1  ;;  %2173 = vmatpush3.msra.mxu0 %v1161_v38 }
 0x69f   :  { %2174 = vmatprep.subr.mxu0 %v2386_v1 }
 0x6a0   :  { %v2169_v24 = vpop.f32.mrf.mxu1  ;;  %2175 = vmatpush3.msra.mxu0 %v1160_v39 }
 0x6a1   :  { %2176 = vmatprep.subr.mxu0 %v2386_v1  ;;  %v1568_v24 = vld [vmem:[%s2844_s17 + $0x8] sm:$0xff] }
 0x75b   :  { %v1043_v25 = vpop.f32.mrf.mxu0 }
 0x75c   :  { %v1117_v27 = vadd.f32 %v1116_v23, %v1043_v25  ;;  %v1488_v23 = vld [vmem:[%s2843_s13 + $0xf8] sm:$0xff]  ;;  %v1567_v25 = vld [vmem:[%s2844_s17] sm:$0xff] }
 0x75d   :  { %v2162_v28 = vpop.f32.mrf.mxu0 }
 0x75e   :  { %v1127_v29 = vadd.f32 %v1948_v26, %v1117_v27  ;;  %v1566_v26 = vld [vmem:[%s2845_s21] sm:$0xff]  ;;  %v2388_v27 = vmov 0  }
 0x75f   :  { %2269 = vset.pattern.permute.xlu0 %v2388_v27  ;;  %v1808_v28 = vld [vmem:[%s2846_s25] sm:$0xff]  ;;  %2270 = vset.pattern.permute.xlu1 %v2388_v27 }
 0x760   :  { %v1128_v30 = vadd.f32 %v1127_v29, %v2590_v5  ;;  %v1159_v5 = vld [vmem:[%s2460_s30] sm:$0xff]  ;;  %v1809_v29 = vadd.f32 1e-10, %v1808_v28  ;;  %s2853_s30 = sld [smem:[#allocation20_spill]] }
 0x761   :  { %2177 = vmatpush3.msra.mxu0 %v1159_v5 }
 0x762   :  { %v1131_v31 = vsel %vm158_vm1, %v1128_v30, 0.0  ;;  %2200 = vmatprep.subr.mxu0 %v2386_v1 }
 0x763   :  { %1132 = vadd.xlane.f32.xlu0 %v1131_v31 }
 0x7ec   :  { %v1133_v32 = vpop.xlane.xlu0 %1132 }
 0x7ed   :  { %v1135_v33 = vmul.f32 0.03125, %v1133_v32  ;;  %v1813_v32 = vld [vmem:[%s2560_s27] sm:$0xff]  ;;  %s2855_s27 = sld [smem:[#allocation16_spill]] }
 0x7ef   :  { %v1136_v34 = vsub.f32 %v1128_v30, %v1135_v33  ;;  %v1807_v30 = vld [vmem:[%s2847_s29] sm:$0xff] }
 0x7f1   :  { %v1137_v35 = vmul.f32 %v1136_v34, %v1136_v34 }
 0x7f3   :  { %v1138_v36 = vsel %vm158_vm1, %v1137_v35, 0.0 }
 0x7f4   :  { %1139 = vadd.xlane.f32.xlu1 %v1138_v36 }
 0x87d   :  { %v1140_v40 = vpop.xlane.xlu1 %1139 }
 0x87e   :  { %v1141_v41 = vmul.f32 0.03125, %v1140_v40  ;;  %v1955_v40 = vld [vmem:[%s2849_s8] ss:$0 sm:$0xff] }
 0x880   :  { %v1142_v42 = vadd.f32 1e-05, %v1141_v41 }
 0x882   :  { %2279 = vrsqrt.f32 %v1142_v42  ;;  %v1956_v42 = vld [vmem:[%s2850_s14] ss:$0 sm:$0xff] }
 0x88f   :  { %v2280_v43 = vpop.eup %2279 }
 0x890   :  { %v1144_v45 = vmul.f32 %v2280_v43, %v1136_v34  ;;  %v1812_v34 = vld [vmem:[%s2848_s3] sm:$0xff] }
 0x892   :  { %v1151_v47 = vmul.f32 %v1949_v44, %v1144_v45  ;;  %v1472_v45 = vld [vmem:[%s2843_s13 + $0x78] sm:$0xff] }
 0x894   :  { %v1158_v48 = vadd.f32 %v1950_v46, %v1151_v47  ;;  %v1456_v46 = vld [vmem:[%s2851_s19 + $0x8] sm:$0xff]  ;;  %v1487_v47 = vld [vmem:[%s2843_s13 + $0xf0] sm:$0xff] }
 0x896   :  { %2179 = vmatmul.mubr.msk.f32.vlgmr.msra.gmra.mxu0 %vm158_vm1, %v1158_v48 }
 0x897   :  { %2208 = vmatprep.mubr.msk.f32.mxu0 %vm2387_vm0, %v2386_v1  ;;  %2201 = vmatpush3.msra.mxu0 %v1374_v19  ;;  %v1957_v19 = vld [vmem:[%s2853_s30] ss:$0 sm:$0xff] }
 0x898   :  { %2202 = vmatprep.subr.mxu0 %v2386_v1 }
 0x899   :  { %2203 = vmatpush3.msra.mxu0 %v1373_v20 }
 0x89a   :  { %2204 = vmatprep.subr.mxu0 %v2386_v1 }
 0x89b   :  { %2205 = vmatpush3.msra.mxu0 %v1372_v21 }
 0x89c   :  { %2206 = vmatprep.subr.mxu0 %v2386_v1 }
 0x89d   :  { %2207 = vmatpush3.msra.mxu0 %v1371_v22 }
 0x89e   :  { %2028 = vmatprep.subr.mxu0 %v1488_v23  ;;  %v1651_v23 = vld [vmem:[%s2854_s12] sm:$0xff] }
 0x956   :  { %v1239_v58 = vpop.f32.mrf.mxu0 }
 0x957   :  { %v1240_v59 = vadd.f32 %v1951_v57, %v1239_v58  ;;  %v1482_v57 = vld [vmem:[%s2843_s13 + $0xc8] sm:$0xff] }
 0x958   :  { %v2180_v60 = vpop.f32.mrf.mxu0  ;;  %v1466_v58 = vld [vmem:[%s2843_s13 + $0x48] sm:$0xff] }
 0x959   :  { %v1243_v61 = vmul.f32 %v1240_v59, %v1240_v59  ;;  %v1465_v60 = vld [vmem:[%s2843_s13 + $0x40] sm:$0xff] }
 0x95b   :  { %v1244_v62 = vmul.f32 %v1243_v61, %v1240_v59  ;;  %v1480_v61 = vld [vmem:[%s2843_s13 + $0xb8] sm:$0xff] }
 0x95d   :  { %v1245_v63 = vmul.f32 0.044715, %v1244_v62  ;;  %v1464_v62 = vld [vmem:[%s2843_s13 + $0x38] sm:$0xff] }
 0x95f   :  { %v1246_v0 = vadd.f32 %v1245_v63, %v1240_v59  ;;  %v1479_v63 = vld [vmem:[%s2843_s13 + $0xb0] sm:$0xff] }
 0x961   :  { %v1247_v2 = vmul.f32 0.7978846, %v1246_v0  ;;  %v1463_v0 = vld [vmem:[%s2843_s13 + $0x30] sm:$0xff] }
 0x963   :  { %2281 = vtanh.f32 %v1247_v2  ;;  %v1478_v2 = vld [vmem:[%s2843_s13 + $0xa8] sm:$0xff] }
 0x964   :  { %2283 = vrcp.f32 %v1809_v29 }
 0x970   :  { %v2282_v3 = vpop.eup %2281 }
 0x971   :  { %v1249_v4 = vadd.f32 1.0, %v2282_v3  ;;  %v2284_v31 = vpop.eup %2283  ;;  %v1462_v3 = vld [vmem:[%s2843_s13 + $0x28] sm:$0xff] }
 0x972   :  { %v1811_v33 = vmul.f32 %v2284_v31, %v1807_v30  ;;  %v1959_v30 = vld [vmem:[%s2855_s27] ss:$0 sm:$0xff] }
 0x973   :  { %v1250_v6 = vmul.f32 0.5, %v1249_v4  ;;  %v1477_v4 = vld [vmem:[%s2843_s13 + $0xa0] sm:$0xff] }
 0x974   :  { %v1814_v35 = vmul.f32 %v1813_v32, %v1811_v33 }
 0x975   :  { %v1251_v7 = vmul.f32 %v1250_v6, %v1240_v59  ;;  %v1481_v59 = vld [vmem:[%s2843_s13 + $0xc0] sm:$0xff] }
 0x976   :  { %v1815_v36 = vsub.f32 %v1812_v34, %v1814_v35  ;;  %v1461_v6 = vld [vmem:[%s2843_s13 + $0x20] sm:$0xff] }
 0x977   :  { %2198 = vmatmul.mubr.msk.f32.vlgmr.msra.gmra.mxu1 %vm1267_vm4, %v1251_v7  ;;  %v1476_v7 = vld [vmem:[%s2843_s13 + $0x98] sm:$0xff] }
 0x978   :  { %2215 = vmatprep.mubr.msk.f32.mxu1 %vm2387_vm0, %v2386_v1  ;;  %2212 = vmatpush3.msra.mxu1 %v1568_v24 }
 0x979   :  { %2213 = vmatprep.subr.mxu1 %v2386_v1 }
 0x97a   :  { %2214 = vmatpush3.msra.mxu1 %v1567_v25 }
 0x97b   :  { %2216 = vmatmul.mubr.msk.f32.vlgmr.msra.gmra.mxu1 %vm394_vm2, %v1566_v26  ;;  %2218 = vmatprep.subr.mxu1 %v2386_v1 }
 0x97c   :  { %2220 = vmatprep.mubr.msk.f32.mxu1 %vm2387_vm0, %v2386_v1 }
 0xa37   :  { %v1337_v9 = vpop.f32.mrf.mxu1 }
 0xa38   :  { %v1338_v10 = vadd.f32 %v1953_v8, %v1337_v9  ;;  %v1460_v8 = vld [vmem:[%s2843_s13 + $0x18] sm:$0xff]  ;;  %v1475_v9 = vld [vmem:[%s2843_s13 + $0x90] sm:$0xff] }
 0xa39   :  { %v2199_v11 = vpop.f32.mrf.mxu1 }
 0xa3a   :  { %v1341_v12 = vadd.f32 %v1338_v10, %v1158_v48  ;;  %v1471_v48 = vld [vmem:[%s2843_s13 + $0x70] sm:$0xff]  ;;  %v1474_v11 = vld [vmem:[%s2843_s13 + $0x88] sm:$0xff] }
 0xa3b   :  { %v1459_v10 = vld [vmem:[%s2843_s13 + $0x10] sm:$0xff] }
 0xa3c   :  { %v1344_v13 = vsel %vm158_vm1, %v1341_v12, 0.0 }
 0xa3d   :  { %1345 = vadd.xlane.f32.xlu0 %v1344_v13  ;;  %v1473_v13 = vld [vmem:[%s2843_s13 + $0x80] sm:$0xff] }
 0xa53   :  { %1818 = vperm.xlu0 %2269, %v1811_v33   ;;  %v1961_v33 = vld [vmem:[%s2856_s22] ss:$0 sm:$0xff] }
 0xac6   :  { %v1346_v14 = vpop.xlane.xlu0 %1345 }
 0xac7   :  { %v1347_v15 = vmul.f32 0.03125, %v1346_v14  ;;  %v1457_v14 = vld [vmem:[%s2843_s13] sm:$0xff] }
 0xac9   :  { %v1348_v16 = vsub.f32 %v1341_v12, %v1347_v15  ;;  %v1458_v12 = vld [vmem:[%s2843_s13 + $0x8] sm:$0xff]  ;;  %v1455_v15 = vld [vmem:[%s2851_s19] sm:$0xff] }
 0xacb   :  { %v1349_v17 = vmul.f32 %v1348_v16, %v1348_v16 }
 0xacd   :  { %v1350_v18 = vsel %vm158_vm1, %v1349_v17, 0.0  ;;  %v1638_v17 = vpop.f32.mrf.mxu1 }
 0xace   :  { %1351 = vadd.xlane.f32.xlu1 %v1350_v18  ;;  %v1819_v21 = vpop.permute.xlu0 %1818 }
 0xacf   :  { %v2217_v18 = vpop.f32.mrf.mxu1 }
 0xadf   :  { %1824 = vperm.xlu1 %2270, %v1815_v36  }
 0xb57   :  { %v1352_v37 = vpop.xlane.xlu1 %1351 }
 0xb58   :  { %v1353_v38 = vmul.f32 0.03125, %v1352_v37 }
 0xb5a   :  { %v1354_v39 = vadd.f32 1e-05, %v1353_v38 }
 0xb5b   :  { %v1825_v25 = vpop.permute.xlu1 %1824 }
 0xb5c   :  { %2285 = vrsqrt.f32 %v1354_v39 }
 0xb69   :  { %v2286_v5 = vpop.eup %2285 }
 0xb6a   :  { %v1356_v41 = vmul.f32 %v2286_v5, %v1348_v16  ;;  %v1652_v16 = vld [vmem:[%s2852_s24] sm:$0xff] }
 0xb6b   :  { %2219 = vmatpush3.msra.mxu1 %v1652_v16 }
 0xb6c   :  { %v1363_v43 = vmul.f32 %v1955_v40, %v1356_v41  ;;  %2223 = vmatprep.subr.mxu1 %v2386_v1 }
 0xb6e   :  { %v1370_v44 = vadd.f32 %v1956_v42, %v1363_v43 }
 0xb70   :  { %2209 = vmatmul.mubr.msk.f32.vlgmr.msra.gmra.mxu0 %vm158_vm1, %v1370_v44 }
 0xb71   :  { %2029 = vmatpush3.msra.mxu0 %v1472_v45  ;;  %1560 = vmatprep.mubr.f32.mxu0 %v1456_v46 }
 0xb72   :  { %2030 = vmatprep.subr.mxu0 %v1487_v47 }
 0xb73   :  { %2031 = vmatpush3.msra.mxu0 %v1471_v48 }
 0xb74   :  { %2032 = vmatprep.subr.mxu0 %v1486_v49 }
 0xb75   :  { %2033 = vmatpush3.msra.mxu0 %v1470_v50 }
 0xb76   :  { %2034 = vmatprep.subr.mxu0 %v1485_v51 }
 0xb77   :  { %2035 = vmatpush3.msra.mxu0 %v1469_v52 }
 0xb78   :  { %2036 = vmatprep.subr.mxu0 %v1484_v53 }
 0xb79   :  { %2037 = vmatpush3.msra.mxu0 %v1468_v54 }
 0xb7a   :  { %2038 = vmatprep.subr.mxu0 %v1483_v55 }
 0xb7b   :  { %2039 = vmatpush3.msra.mxu0 %v1467_v56 }
 0xb7c   :  { %2040 = vmatprep.subr.mxu0 %v1482_v57 }
 0xb7d   :  { %2041 = vmatpush3.msra.mxu0 %v1466_v58 }
 0xb7e   :  { %2042 = vmatprep.subr.mxu0 %v1481_v59 }
 0xb7f   :  { %2043 = vmatpush3.msra.mxu0 %v1465_v60 }
 0xb80   :  { %2044 = vmatprep.subr.mxu0 %v1480_v61 }
 0xb81   :  { %2045 = vmatpush3.msra.mxu0 %v1464_v62 }
 0xb82   :  { %2046 = vmatprep.subr.mxu0 %v1479_v63 }
 0xb83   :  { %2047 = vmatpush3.msra.mxu0 %v1463_v0 }
 0xb84   :  { %2048 = vmatprep.subr.mxu0 %v1478_v2 }
 0xb85   :  { %2049 = vmatpush3.msra.mxu0 %v1462_v3 }
 0xb86   :  { %2050 = vmatprep.subr.mxu0 %v1477_v4 }
 0xb87   :  { %2051 = vmatpush3.msra.mxu0 %v1461_v6 }
 0xb88   :  { %2052 = vmatprep.subr.mxu0 %v1476_v7 }
 0xb89   :  { %2053 = vmatpush3.msra.mxu0 %v1460_v8 }
 0xb8a   :  { %2054 = vmatprep.subr.mxu0 %v1475_v9 }
 0xb8b   :  { %2055 = vmatpush3.msra.mxu0 %v1459_v10 }
 0xb8c   :  { %2056 = vmatprep.subr.mxu0 %v1474_v11 }
 0xb8d   :  { %2057 = vmatpush3.msra.mxu0 %v1458_v12 }
 0xb8e   :  { %2058 = vmatprep.subr.mxu0 %v1473_v13 }
 0xb8f   :  { %2059 = vmatpush3.msra.mxu0 %v1457_v14 }
 0xb90   :  { %1561 = vmatmul.mubr.f32.vlgmr.msra.gmra.mxu0 %v1455_v15 }
 0xc30   :  { %v1451_v20 = vpop.f32.mrf.mxu0 }
 0xc31   :  { %v1452_v22 = vadd.f32 %v1957_v19, %v1451_v20 }
 0xc32   :  { %v2210_v24 = vpop.f32.mrf.mxu0 }
 0xc33   :  { %v1829_v26 = vmul.f32 %v1819_v21, %v1452_v22  ;;  %2221 = vmatmul.mubr.msk.f32.vlgmr.msra.gmra.mxu1 %vm473_vm3, %v1452_v22 }
 0xc34   :  { %2224 = vmatpush3.msra.mxu1 %v1651_v23  ;;  %2225 = vmatprep.mubr.msk.f32.mxu1 %vm2387_vm0, %v2386_v1 }
 0xc35   :  { %v1830_v27 = vadd.f32 %v1829_v26, %v1825_v25 }
 0xc37   :  { %1831 = vst.msk [vmem:[#allocation4] sm:$0xff] %vm473_vm3, %v1830_v27 }
 0xc50   :  { %v2060_v28 = vpop.f32.mrf.mxu0 }
 0xc52   :  { %v2061_v29 = vpop.f32.mrf.mxu0 }
 0xc53   :  { %v2062_v31 = vadd.f32 %v2061_v29, %v2060_v28 }
 0xc55   :  { %v1563_v32 = vadd.f32 %v2062_v31, %v1959_v30 }
 0xc57   :  { %v1642_v34 = vadd.f32 %v1638_v17, %v1563_v32 }
 0xc59   :  { %v1650_v35 = vadd.f32 %v1961_v33, %v1642_v34 }
 0xc5b   :  { %2226 = vmatmul.mubr.msk.f32.vlgmr.msra.gmra.mxu1 %vm473_vm3, %v1650_v35  ;;  %v1821_v36 = vmul.f32 %v1819_v21, %v1650_v35 }
 0xc5d   :  { %v1827_v37 = vadd.f32 %v1825_v25, %v1821_v36 }
 0xc5f   :  { %1828 = vst.msk [vmem:[#allocation2] sm:$0xff] %vm473_vm3, %v1827_v37 }
 0xc60   :  { %2298 = shalt.err (!%p2295_p4)
}
 0xc61   :  { %1854 = dma.vmem_to_hbm [thread:$0]  %s1852_s26, 128, %s2570_s6, [#allocation5]  }
 0xc62   :  { %s2307_s7 = scalar_lea.vmem %s1842_s1, 128  ;;  %p2312_p6 = scmp.lt.s32.totalorder %s1842_s1, %s1842_s1 }
 0xc63   :  { %p2308_p5 = scmp.ne.s32.totalorder %s1842_s1, %s2307_s7  ;;  %p2313_p7 = scmp.lt.s32.totalorder %s2307_s7, %s2307_s7 }
 0xc65   :  { %p2314_p8 = por %p2313_p7, %p2312_p6 }
 0xc67   :  { %p2315_p9 = pnand %p2314_p8, %p2308_p5 }
 0xc69   :  { %2318 = shalt.err (!%p2315_p9)
}
 0xc6a   :  { %s2857_s10 = sld [smem:[#allocation23_spill]]  ;;  %s2391_s11 = smov [#allocation6]  }
 0xc6b   :  { %1844 = dma.vmem_to_hbm [thread:$0]  %s1842_s1, 128, %s2565_s4, [#allocation3]  }
 0xc6c   :  { %s1861_s15 = sshll.u32 %s2391_s11, 4  ;;  %s1862_s15 = int_to_ptr.vmem [resolvable:$true] %s1861_s15 }
 0xc6d   :  { %s2327_s6 = scalar_lea.vmem %s1862_s15, 128  ;;  %p2332_p11 = scmp.lt.s32.totalorder %s1862_s15, %s1862_s15 }
 0xc6e   :  { %p2328_p10 = scmp.ne.s32.totalorder %s1862_s15, %s2327_s6  ;;  %p2333_p12 = scmp.lt.s32.totalorder %s2327_s6, %s2327_s6 }
 0xc70   :  { %v1964_v5 = vld [vmem:[%s2857_s10] ss:$0 sm:$0xff]  ;;  %p2334_p13 = por %p2333_p12, %p2332_p11 }
 0xc72   :  { %p2335_p0 = pnand %p2334_p13, %p2328_p10 }
 0xcf3   :  { %v1722_v1 = vpop.f32.mrf.mxu1 }
 0xcf5   :  { %v2222_v38 = vpop.f32.mrf.mxu1 }
 0xd1b   :  { %v1795_v39 = vpop.f32.mrf.mxu1 }
 0xd1c   :  { %v1796_v40 = vadd.f32 %v1795_v39, %v1722_v1 }
 0xd1d   :  { %v2227_v41 = vpop.f32.mrf.mxu1 }
 0xd1e   :  { %v1806_v42 = vadd.f32 %v1964_v5, %v1796_v40 }
 0xd20   :  { %v1832_v43 = vmul.f32 %v1819_v21, %v1806_v42 }
 0xd22   :  { %v1833_v44 = vadd.f32 %v1832_v43, %v1825_v25 }
 0xd24   :  { %1834 = vst.msk [vmem:[#allocation6] sm:$0xff] %vm473_vm3, %v1833_v44 }
 0xd25   :  { %2338 = shalt.err (!%p2335_p0)
}
 0xd26   :  { %1864 = dma.vmem_to_hbm [thread:$0]  %s1862_s15, 128, %s2575_s20, [#allocation5]  }
 0xd27   :  { %2347 = dma.done.wait [#allocation3], 128  }
 0xd28   :  { %2348 = vsyncadd [#allocation3], 4294967168 }
 0xd29   :  { %2349 = dma.done.wait [#allocation5], 256  }
 0xd2a   :  { %2350 = vsyncadd [#allocation5], 4294967040 }
 0xd2b   :  { %1874 = vsyncpa [#allocation3], 1 }
 0xd2c   :  { %1875 = vsyncpa [#allocation5], 1 }

// kernel: model_forward.2
= control target key start
LH: loop header
LB: loop body
LE: loop exit
PB: predicated region body
PF: predicated region fallthrough
CT: control target
= control target key end

     0   :  { %vm142_vm0 = vcmask 130048   ;;  %v6624_v2 = vmov 0   ;;  %s6625_s6 = smov 1   ;;  %s6626_s10 = smov 2   ;;  %vm178_vm1 = vcmask 7168   ;;  %v6630_v10 = vmov 0.0   ;;  %s8776_s0 = inlined_call_operand.smem [shape: u32[37], index: -1, kind: input, shape index: {}] }
   0x1   :  { %s1_s5 = sld [smem:[%s8776_s0]]   ;;  %6351 = vset.pattern.permute.xlu1 %v6624_v2  ;;  %6352 = vset.pattern.permute.xlu0 %v6624_v2  ;;  %s6627_s14 = smov 35   ;;  %vm6631_vm2 = vmmov 0   ;;  %vm356_vm5 = vcmask 64512   ;;  %vm338_vm6 = vcmask 261120   ;;  %vm3971_vm7 = vcmask 523264  }
   0x2   :  { %s4933_s9 = sld [smem:[%s8776_s0 + %s6625_s6]]   ;;  %s6628_s18 = smov 3   ;;  %5666 = vmatprep.subr.mxu0 %v6630_v10  ;;  %5673 = vmatprep.subr.mxu1 %v6630_v10 }
   0x3   :  { %s4934_s13 = sld [smem:[%s8776_s0 + %s6626_s10]]   ;;  %s6629_s22 = smov 4   ;;  %5670 = vmatprep.mubr.msk.f32.mxu0 %vm6631_vm2, %v6630_v10  ;;  %5677 = vmatprep.mubr.msk.f32.mxu1 %vm6631_vm2, %v6630_v10 }
   0x4   :  { %s4967_s17 = sld [smem:[%s8776_s0 + %s6627_s14]]   ;;  %s6632_s26 = smov 36  }
   0x5   :  { %s4935_s21 = sld [smem:[%s8776_s0 + %s6628_s18]]   ;;  %s6633_s30 = smov 32  }
   0x6   :  { %s4936_s25 = sld [smem:[%s8776_s0 + %s6629_s22]]   ;;  %s6634_s4 = smov 6  }
   0x7   :  { %v141_v0 = vld [vmem:[%s1_s5] sm:$0xff]  ;;  %s4968_s29 = sld [smem:[%s8776_s0 + %s6632_s26]]   ;;  %s6635_s8 = smov 5  }
   0x8   :  { %v143_v1 = vsel %vm142_vm0, %v141_v0, 0.0  ;;  %v164_v3 = vld [vmem:[%s4933_s9] sm:$0xff]  ;;  %s4964_s3 = sld [smem:[%s8776_s0 + %s6633_s30]]   ;;  %s6636_s12 = smov 33  }
   0x9   :  { %144 = vadd.xlane.f32.xlu0 %v143_v1  ;;  %167 = vperm.xlu1 %6351, %v164_v3   ;;  %v171_v4 = vld [vmem:[%s4934_s13] sm:$0xff]  ;;  %s6702_s7 = sld [smem:[%s8776_s0 + %s6634_s4]]   ;;  %s6637_s16 = smov 34  }
   0xa   :  { %s4937_s11 = sld [smem:[%s8776_s0 + %s6635_s8]]   ;;  %s6638_s20 = smov 9  }
   0xb   :  { %v183_v11 = vld [vmem:[%s4935_s21 + $0x8] sm:$0xff]  ;;  %v182_v13 = vld [vmem:[%s4935_s21] sm:$0xff]  ;;  %s4965_s15 = sld [smem:[%s8776_s0 + %s6636_s12]]   ;;  %s6639_s24 = smov 13  }
   0xc   :  { %5667 = vmatpush3.msra.mxu0 %v183_v11  ;;  %v260_v12 = vld [vmem:[%s4936_s25 + $0x8] sm:$0xff]  ;;  %v259_v14 = vld [vmem:[%s4936_s25] sm:$0xff]  ;;  %s4966_s19 = sld [smem:[%s8776_s0 + %s6637_s16]]   ;;  %s6640_s28 = smov 11  }
   0xd   :  { %174 = vperm.xlu1 %6351, %v171_v4   ;;  %5674 = vmatpush3.msra.mxu1 %v260_v12  ;;  %s6720_s23 = sld [smem:[%s8776_s0 + %s6638_s20]]   ;;  %s6641_s2 = smov 7  }
   0xe   :  { %5668 = vmatprep.subr.mxu0 %v6630_v10  ;;  %5675 = vmatprep.subr.mxu1 %v6630_v10  ;;  %s6757_s27 = sld [smem:[%s8776_s0 + %s6639_s24]]   ;;  %s6642_s6 = smov 15  }
   0xf   :  { %5669 = vmatpush3.msra.mxu0 %v182_v13  ;;  %5676 = vmatpush3.msra.mxu1 %v259_v14  ;;  %v340_v29 = vld [vmem:[%s6702_s7] sm:$0xff]  ;;  %v341_v38 = vld [vmem:[%s6702_s7 + $0x8] sm:$0xff]  ;;  %v342_v40 = vld [vmem:[%s6702_s7 + $0x10] sm:$0xff]  ;;  %s6762_s1 = sld [smem:[%s8776_s0 + %s6640_s28]]   ;;  %s6643_s10 = smov 8  }
  0x10   :  { %v348_v30 = vld [vmem:[%s6702_s7 + $0x40] sm:$0xff]  ;;  %v349_v39 = vld [vmem:[%s6702_s7 + $0x48] sm:$0xff]  ;;  %v350_v41 = vld [vmem:[%s6702_s7 + $0x50] sm:$0xff]  ;;  %s6769_s5 = sld [smem:[%s8776_s0 + %s6641_s2]]   ;;  %s6644_s14 = smov 12  }
  0x11   :  { %v4970_v31 = vld [vmem:[%s4937_s11] ss:$0 sm:$0xff]  ;;  %v343_v43 = vld [vmem:[%s6702_s7 + $0x18] sm:$0xff]  ;;  %v345_v47 = vld [vmem:[%s6702_s7 + $0x28] sm:$0xff]  ;;  %s6812_s9 = sld [smem:[%s8776_s0 + %s6642_s6]]   ;;  %s6645_s18 = smov 14  }
  0x12   :  { %v351_v44 = vld [vmem:[%s6702_s7 + $0x58] sm:$0xff]  ;;  %v344_v45 = vld [vmem:[%s6702_s7 + $0x20] sm:$0xff]  ;;  %v353_v48 = vld [vmem:[%s6702_s7 + $0x68] sm:$0xff]  ;;  %s6818_s13 = sld [smem:[%s8776_s0 + %s6643_s10]]   ;;  %s6646_s22 = smov 16  }
  0x13   :  { %v583_v42 = vld [vmem:[%s6720_s23 + $0x8] sm:$0xff]  ;;  %v352_v46 = vld [vmem:[%s6702_s7 + $0x60] sm:$0xff]  ;;  %v346_v49 = vld [vmem:[%s6702_s7 + $0x30] sm:$0xff]  ;;  %s7019_s21 = sld [smem:[%s8776_s0 + %s6645_s18]]   ;;  %s6647_s26 = smov 10  }
  0x14   :  { %v354_v50 = vld [vmem:[%s6702_s7 + $0x70] sm:$0xff]  ;;  %v347_v51 = vld [vmem:[%s6702_s7 + $0x38] sm:$0xff]  ;;  %v582_v53 = vld [vmem:[%s6720_s23] sm:$0xff]  ;;  %s7072_s25 = sld [smem:[%s8776_s0 + %s6646_s22]]   ;;  %s6648_s30 = smov 17  }
  0x15   :  { %v355_v52 = vld [vmem:[%s6702_s7 + $0x78] sm:$0xff]  ;;  %v1015_v4 = vld [vmem:[%s6757_s27 + $0x10] sm:$0xff]  ;;  %s6649_s4 = smov 18   ;;  %s6650_s8 = smov 21  }
  0x16   :  { %v1016_v54 = vld [vmem:[%s6757_s27 + $0x18] sm:$0xff]  ;;  %v550_v57 = vld [vmem:[%s6769_s5] sm:$0xff]  ;;  %v551_v59 = vld [vmem:[%s6769_s5 + $0x8] sm:$0xff]  ;;  %s4950_s7 = sld [smem:[%s8776_s0 + %s6649_s4]]   ;;  %s6651_s12 = smov 19  }
  0x17   :  { %v812_v55 = vld [vmem:[%s6762_s1 + $0x18] sm:$0xff]  ;;  %v552_v1 = vld [vmem:[%s6769_s5 + $0x10] sm:$0xff]  ;;  %v554_v10 = vld [vmem:[%s6769_s5 + $0x20] sm:$0xff]  ;;  %s7862_s11 = sld [smem:[%s8776_s0 + %s6650_s8]]   ;;  %s6652_s16 = smov 20  }
  0x18   :  { %v553_v3 = vld [vmem:[%s6769_s5 + $0x18] sm:$0xff]  ;;  %v555_v12 = vld [vmem:[%s6769_s5 + $0x28] sm:$0xff]  ;;  %s6653_s20 = smov 23   ;;  %s6654_s24 = smov 22  }
  0x19   :  { %s4955_s23 = sld [smem:[%s8776_s0 + %s6653_s20]]   ;;  %s6655_s28 = smov 24  }
  0x1a   :  { %s6656_s2 = smov 25   ;;  %s6657_s6 = smov 26  }
  0x1b   :  { %s6658_s10 = smov 29   ;;  %s6660_s18 = smov 28  }
  0x1c   :  { %s6661_s22 = smov 30  }
  0x84   :  { %v168_v23 = vpop.permute.xlu1 %167 }
  0x88   :  { %v175_v27 = vpop.permute.xlu1 %174 }
  0x92   :  { %v145_v5 = vpop.xlane.xlu0 %144 }
  0x93   :  { %v147_v6 = vmul.f32 0.0625, %v145_v5 }
  0x95   :  { %v148_v7 = vsub.f32 %v141_v0, %v147_v6  ;;  %179 = vst.msk [vmem:[%s4967_s17] sm:$0xff] %vm178_vm1, %v147_v6  ;;  %s6970_s17 = sld [smem:[%s8776_s0 + %s6644_s14]]   ;;  %s6659_s14 = smov 27  }
  0x97   :  { %v149_v8 = vmul.f32 %v148_v7, %v148_v7 }
  0x99   :  { %v150_v9 = vsel %vm142_vm0, %v149_v8, 0.0 }
  0x9a   :  { %151 = vadd.xlane.f32.xlu0 %v150_v9 }
 0x123   :  { %v152_v15 = vpop.xlane.xlu0 %151 }
 0x124   :  { %v153_v16 = vmul.f32 0.0625, %v152_v15 }
 0x126   :  { %v154_v17 = vadd.f32 1e-05, %v153_v16 }
 0x128   :  { %6353 = vrsqrt.f32 %v154_v17  ;;  %vm157_vm3 = vcmp.eq.f32.partialorder %v154_v17, inf  ;;  %v160_v20 = vand.u32 2147483648, %v154_v17  ;;  %vm159_vm4 = vcmp.eq.f32.partialorder %v154_v17, 0.0 }
 0x135   :  { %v6354_v18 = vpop.eup %6353 }
 0x136   :  { %v156_v19 = vmul.f32 %v6354_v18, %v154_v17  ;;  %v558_v18 = vld [vmem:[%s6769_s5 + $0x40] sm:$0xff] }
 0x138   :  { %v158_v21 = vsel %vm157_vm3, %v154_v17, %v156_v19  ;;  %v556_v17 = vld [vmem:[%s6769_s5 + $0x30] sm:$0xff] }
 0x139   :  { %v161_v22 = vsel %vm159_vm4, %v160_v20, %v158_v21  ;;  %v557_v20 = vld [vmem:[%s6769_s5 + $0x38] sm:$0xff] }
 0x13a   :  { %6355 = vrcp.f32 %v161_v22  ;;  %180 = vst.msk [vmem:[%s4968_s29] sm:$0xff] %vm178_vm1, %v161_v22  ;;  %s7213_s29 = sld [smem:[%s8776_s0 + %s6647_s26]]   ;;  %s6662_s26 = smov 31  }
 0x147   :  { %v6356_v24 = vpop.eup %6355 }
 0x148   :  { %v163_v25 = vmul.f32 %v6356_v24, %v148_v7  ;;  %v1014_v7 = vld [vmem:[%s6757_s27 + $0x8] sm:$0xff] }
 0x14a   :  { %v170_v26 = vmul.f32 %v168_v23, %v163_v25  ;;  %v560_v25 = vld [vmem:[%s6769_s5 + $0x50] sm:$0xff] }
 0x14c   :  { %v177_v28 = vadd.f32 %v175_v27, %v170_v26  ;;  %v559_v27 = vld [vmem:[%s6769_s5 + $0x48] sm:$0xff] }
 0x14e   :  { %181 = vst.msk [vmem:[%s4964_s3] sm:$0xff] %vm142_vm0, %v177_v28  ;;  %5671 = vmatmul.mubr.msk.f32.vlgmr.msra.gmra.mxu0 %vm142_vm0, %v177_v28  ;;  %5678 = vmatmul.mubr.msk.f32.vlgmr.msra.gmra.mxu1 %vm142_vm0, %v177_v28  ;;  %s7498_s3 = sld [smem:[%s8776_s0 + %s6648_s30]]  }
 0x14f   :  { %5682 = vmatprep.mubr.msk.f32.mxu0 %vm356_vm5, %v340_v29  ;;  %5694 = vmatprep.mubr.msk.f32.mxu1 %vm356_vm5, %v348_v30  ;;  %v562_v30 = vld [vmem:[%s6769_s5 + $0x60] sm:$0xff] }
 0x20e   :  { %v253_v32 = vpop.f32.mrf.mxu0  ;;  %v334_v33 = vpop.f32.mrf.mxu1 }
 0x20f   :  { %v257_v34 = vsub.f32 %v177_v28, %v253_v32  ;;  %258 = vst.msk [vmem:[%s4965_s15] sm:$0xff] %vm142_vm0, %v253_v32  ;;  %v335_v35 = vadd.f32 %v4970_v31, %v334_v33  ;;  %v561_v32 = vld [vmem:[%s6769_s5 + $0x58] sm:$0xff]  ;;  %s4951_s15 = sld [smem:[%s8776_s0 + %s6651_s12]]  }
 0x210   :  { %v5672_v36 = vpop.f32.mrf.mxu0  ;;  %v5679_v37 = vpop.f32.mrf.mxu1 }
 0x211   :  { %339 = vst.msk [vmem:[%s4966_s19] sm:$0xff] %vm338_vm6, %v335_v35  ;;  %5680 = vmatprep.subr.mxu0 %v257_v34  ;;  %6310 = vmatprep.subr.mxu1 %v257_v34  ;;  %v564_v36 = vld [vmem:[%s6769_s5 + $0x70] sm:$0xff]  ;;  %v563_v37 = vld [vmem:[%s6769_s5 + $0x68] sm:$0xff]  ;;  %s4952_s19 = sld [smem:[%s8776_s0 + %s6652_s16]]  }
 0x212   :  { %5681 = vmatpush3.msra.mxu0 %v257_v34  ;;  %6311 = vmatpush3.msra.mxu1 %v257_v34 }
 0x213   :  { %5683 = vmatmul.mubr.msk.f32.vlgmr.msra.gmra.mxu0 %vm356_vm5, %v341_v38  ;;  %5695 = vmatmul.mubr.msk.f32.vlgmr.msra.gmra.mxu1 %vm356_vm5, %v349_v39 }
 0x214   :  { %5685 = vmatprep.mubr.msk.f32.mxu0 %vm356_vm5, %v342_v40  ;;  %5697 = vmatprep.mubr.msk.f32.mxu1 %vm356_vm5, %v350_v41  ;;  %v565_v40 = vld [vmem:[%s6769_s5 + $0x78] sm:$0xff]  ;;  %s4957_s5 = sld [smem:[%s8776_s0 + %s6656_s2]]  }
 0x215   :  { %5706 = vmatprep.subr.mxu1 %v583_v42  ;;  %5734 = vmatprep.subr.mxu0 %v812_v55 }
 0x216   :  { %5707 = vmatpush3.msra.mxu1 %v583_v42  ;;  %5735 = vmatpush3.msra.mxu0 %v812_v55  ;;  %v811_v42 = vld [vmem:[%s6762_s1 + $0x10] sm:$0xff]  ;;  %v587_v55 = vld [vmem:[%s6818_s13 + $0x18] sm:$0xff] }
 0x217   :  { %5686 = vmatmul.mubr.msk.f32.gmra.mxu0 %vm356_vm5, %v343_v43  ;;  %5698 = vmatmul.mubr.msk.f32.gmra.mxu1 %vm356_vm5, %v351_v44  ;;  %v1013_v43 = vld [vmem:[%s6757_s27] sm:$0xff]  ;;  %v810_v44 = vld [vmem:[%s6762_s1 + $0x8] sm:$0xff] }
 0x218   :  { %5688 = vmatprep.mubr.msk.f32.mxu0 %vm356_vm5, %v344_v45  ;;  %5700 = vmatprep.mubr.msk.f32.mxu1 %vm356_vm5, %v352_v46  ;;  %v809_v45 = vld [vmem:[%s6762_s1] sm:$0xff]  ;;  %v1172_v46 = vld [vmem:[%s6812_s9 + $0x18] sm:$0xff] }
 0x219   :  { %5708 = vmatprep.subr.mxu1 %v582_v53  ;;  %5736 = vmatprep.subr.mxu0 %v811_v42 }
 0x21a   :  { %5709 = vmatpush3.msra.mxu1 %v582_v53  ;;  %5737 = vmatpush3.msra.mxu0 %v811_v42 }
 0x21b   :  { %5689 = vmatmul.mubr.msk.f32.gmra.mxu0 %vm356_vm5, %v345_v47  ;;  %5701 = vmatmul.mubr.msk.f32.gmra.mxu1 %vm356_vm5, %v353_v48  ;;  %v584_v48 = vld [vmem:[%s6818_s13] sm:$0xff] }
 0x21c   :  { %5691 = vmatprep.mubr.msk.f32.mxu0 %vm356_vm5, %v346_v49  ;;  %5703 = vmatprep.mubr.msk.f32.mxu1 %vm356_vm5, %v354_v50  ;;  %v585_v49 = vld [vmem:[%s6818_s13 + $0x8] sm:$0xff] }
 0x21d   :  { %5766 = vmatprep.subr.mxu1 %v1016_v54  ;;  %5738 = vmatprep.subr.mxu0 %v810_v44 }
 0x21e   :  { %5739 = vmatpush3.msra.mxu0 %v810_v44 }
 0x21f   :  { %5692 = vmatmul.mubr.msk.f32.gmra.mxu0 %vm356_vm5, %v347_v51  ;;  %5704 = vmatmul.mubr.msk.f32.gmra.mxu1 %vm356_vm5, %v355_v52 }
 0x220   :  { %5740 = vmatprep.subr.mxu0 %v809_v45 }
 0x221   :  { %5741 = vmatpush3.msra.mxu0 %v809_v45 }
 0x222   :  { %5798 = vmatprep.subr.mxu0 %v1172_v46 }
 0x2d3   :  { %v5684_v56 = vpop.f32.mrf.mxu0  ;;  %v5696_v58 = vpop.f32.mrf.mxu1 }
 0x2d4   :  { %v567_v63 = vmul.f32 %v5684_v56, %v551_v59  ;;  %v575_v29 = vmul.f32 %v5696_v58, %v559_v27  ;;  %v1171_v56 = vld [vmem:[%s6812_s9 + $0x10] sm:$0xff] }
 0x2d5   :  { %v471_v60 = vpop.f32.mrf.mxu0  ;;  %v511_v61 = vpop.f32.mrf.mxu1 }
 0x2d6   :  { %v566_v62 = vmul.f32 %v550_v57, %v471_v60  ;;  %v574_v23 = vmul.f32 %v558_v18, %v511_v61  ;;  %v588_v61 = vld [vmem:[%s6818_s13 + $0x20] sm:$0xff]  ;;  %v595_v18 = vld [vmem:[%s6818_s13 + $0x58] sm:$0xff] }
 0x2d7   :  { %v5687_v0 = vpop.f32.mrf.mxu0  ;;  %v5699_v2 = vpop.f32.mrf.mxu1 }
 0x2d8   :  { %5710 = vmatprep.mubr.msk.f32.mxu1 %vm142_vm0, %v566_v62  ;;  %v569_v8 = vmul.f32 %v5687_v0, %v553_v3  ;;  %v577_v34 = vmul.f32 %v5699_v2, %v561_v32  ;;  %v589_v62 = vld [vmem:[%s6818_s13 + $0x28] sm:$0xff] }
 0x2d9   :  { %v481_v5 = vpop.f32.mrf.mxu0  ;;  %5711 = vmatmul.mubr.msk.f32.vlgmr.msra.gmra.mxu1 %vm142_vm0, %v567_v63  ;;  %v521_v11 = vpop.f32.mrf.mxu1  ;;  %v1170_v63 = vld [vmem:[%s6812_s9 + $0x8] sm:$0xff] }
 0x2da   :  { %v568_v6 = vmul.f32 %v552_v1, %v481_v5  ;;  %5767 = vmatpush3.msra.mxu1 %v1016_v54  ;;  %v576_v28 = vmul.f32 %v560_v25, %v521_v11  ;;  %v586_v54 = vld [vmem:[%s6818_s13 + $0x10] sm:$0xff]  ;;  %v591_v5 = vld [vmem:[%s6818_s13 + $0x38] sm:$0xff]  ;;  %v592_v11 = vld [vmem:[%s6818_s13 + $0x40] sm:$0xff] }
 0x2db   :  { %v5690_v9 = vpop.f32.mrf.mxu0  ;;  %5768 = vmatprep.subr.mxu1 %v1015_v4  ;;  %v5702_v19 = vpop.f32.mrf.mxu1 }
 0x2dc   :  { %5713 = vmatprep.mubr.msk.f32.mxu1 %vm142_vm0, %v568_v6  ;;  %5769 = vmatpush3.msra.mxu1 %v1015_v4  ;;  %v571_v15 = vmul.f32 %v5690_v9, %v555_v12  ;;  %v579_v39 = vmul.f32 %v5702_v19, %v563_v37  ;;  %v590_v4 = vld [vmem:[%s6818_s13 + $0x30] sm:$0xff]  ;;  %v1169_v6 = vld [vmem:[%s6812_s9] sm:$0xff]  ;;  %v593_v12 = vld [vmem:[%s6818_s13 + $0x48] sm:$0xff] }
 0x2dd   :  { %v491_v13 = vpop.f32.mrf.mxu0  ;;  %5714 = vmatmul.mubr.msk.f32.gmra.mxu1 %vm142_vm0, %v569_v8  ;;  %5770 = vmatprep.subr.mxu1 %v1014_v7  ;;  %v531_v26 = vpop.f32.mrf.mxu1 }
 0x2de   :  { %v570_v14 = vmul.f32 %v554_v10, %v491_v13  ;;  %5771 = vmatpush3.msra.mxu1 %v1014_v7  ;;  %v578_v33 = vmul.f32 %v562_v30, %v531_v26  ;;  %v599_v30 = vld [vmem:[%s6818_s13 + $0x78] sm:$0xff] }
 0x2df   :  { %v5693_v16 = vpop.f32.mrf.mxu0  ;;  %v5705_v31 = vpop.f32.mrf.mxu1  ;;  %5772 = vmatprep.subr.mxu1 %v1013_v43 }
 0x2e0   :  { %5716 = vmatprep.mubr.msk.f32.mxu1 %vm142_vm0, %v570_v14  ;;  %v573_v24 = vmul.f32 %v5693_v16, %v557_v20  ;;  %v581_v41 = vmul.f32 %v5705_v31, %v565_v40  ;;  %5773 = vmatpush3.msra.mxu1 %v1013_v43 }
 0x2e1   :  { %v501_v21 = vpop.f32.mrf.mxu0  ;;  %5717 = vmatmul.mubr.msk.f32.gmra.mxu1 %vm142_vm0, %v571_v15  ;;  %v541_v35 = vpop.f32.mrf.mxu1 }
 0x2e2   :  { %v572_v22 = vmul.f32 %v556_v17, %v501_v21  ;;  %v580_v38 = vmul.f32 %v564_v36, %v541_v35  ;;  %v594_v17 = vld [vmem:[%s6818_s13 + $0x50] sm:$0xff] }
 0x2e4   :  { %5719 = vmatprep.mubr.msk.f32.mxu1 %vm142_vm0, %v572_v22 }
 0x2e5   :  { %5720 = vmatmul.mubr.msk.f32.gmra.mxu1 %vm142_vm0, %v573_v24  ;;  %v597_v24 = vld [vmem:[%s6818_s13 + $0x68] sm:$0xff] }
 0x2e6   :  { %5722 = vmatprep.mubr.msk.f32.mxu1 %vm142_vm0, %v574_v23  ;;  %v596_v23 = vld [vmem:[%s6818_s13 + $0x60] sm:$0xff] }
 0x2e9   :  { %5723 = vmatmul.mubr.msk.f32.gmra.mxu1 %vm142_vm0, %v575_v29  ;;  %v598_v29 = vld [vmem:[%s6818_s13 + $0x70] sm:$0xff]  ;;  %s8560_s13 = sld [smem:[%s8776_s0 + %s6658_s10]]  }
 0x2ea   :  { %5725 = vmatprep.mubr.msk.f32.mxu1 %vm142_vm0, %v576_v28 }
 0x2ed   :  { %5726 = vmatmul.mubr.msk.f32.gmra.mxu1 %vm142_vm0, %v577_v34  ;;  %v6973_v34 = vld [vmem:[%s6970_s17] ss:$0 sm:$0xff] }
 0x2ee   :  { %5728 = vmatprep.mubr.msk.f32.mxu1 %vm142_vm0, %v578_v33 }
 0x2f1   :  { %5729 = vmatmul.mubr.msk.f32.gmra.mxu1 %vm142_vm0, %v579_v39 }
 0x2f2   :  { %5731 = vmatprep.mubr.msk.f32.mxu1 %vm142_vm0, %v580_v38 }
 0x2f5   :  { %5732 = vmatmul.mubr.msk.f32.gmra.mxu1 %vm142_vm0, %v581_v41 }
 0x399   :  { %v5712_v47 = vpop.f32.mrf.mxu1 }
 0x39a   :  { %v6824_v52 = vadd.f32 %v5712_v47, %v585_v49 }
 0x39b   :  { %v714_v50 = vpop.f32.mrf.mxu1 }
 0x39c   :  { %v6822_v51 = vadd.f32 %v714_v50, %v584_v48 }
 0x39d   :  { %v5715_v53 = vpop.f32.mrf.mxu1 }
 0x39e   :  { %5742 = vmatprep.mubr.msk.f32.mxu0 %vm338_vm6, %v6822_v51  ;;  %5774 = vmatprep.mubr.msk.f32.mxu1 %vm338_vm6, %v6822_v51  ;;  %v6839_v59 = vadd.f32 %v5715_v53, %v587_v55 }
 0x39f   :  { %v724_v57 = vpop.f32.mrf.mxu1  ;;  %5743 = vmatmul.mubr.msk.f32.vlgmr.msra.gmra.mxu0 %vm338_vm6, %v6824_v52  ;;  %5775 = vmatmul.mubr.msk.f32.vlgmr.msra.gmra.mxu1 %vm338_vm6, %v6824_v52 }
 0x3a0   :  { %v6837_v58 = vadd.f32 %v724_v57, %v586_v54  ;;  %5799 = vmatpush3.msra.mxu0 %v1172_v46 }
 0x3a1   :  { %v5718_v60 = vpop.f32.mrf.mxu1  ;;  %5800 = vmatprep.subr.mxu0 %v1171_v56 }
 0x3a2   :  { %5745 = vmatprep.mubr.msk.f32.mxu0 %vm338_vm6, %v6837_v58  ;;  %5777 = vmatprep.mubr.msk.f32.mxu1 %vm338_vm6, %v6837_v58  ;;  %v6854_v2 = vadd.f32 %v5718_v60, %v589_v62 }
 0x3a3   :  { %v734_v0 = vpop.f32.mrf.mxu1  ;;  %5746 = vmatmul.mubr.msk.f32.gmra.mxu0 %vm338_vm6, %v6839_v59  ;;  %5778 = vmatmul.mubr.msk.f32.gmra.mxu1 %vm338_vm6, %v6839_v59 }
 0x3a4   :  { %v6852_v1 = vadd.f32 %v734_v0, %v588_v61  ;;  %5801 = vmatpush3.msra.mxu0 %v1171_v56 }
 0x3a5   :  { %v5721_v3 = vpop.f32.mrf.mxu1  ;;  %5802 = vmatprep.subr.mxu0 %v1170_v63 }
 0x3a6   :  { %5748 = vmatprep.mubr.msk.f32.mxu0 %vm338_vm6, %v6852_v1  ;;  %5780 = vmatprep.mubr.msk.f32.mxu1 %vm338_vm6, %v6852_v1  ;;  %v6869_v9 = vadd.f32 %v5721_v3, %v591_v5 }
 0x3a7   :  { %v744_v7 = vpop.f32.mrf.mxu1  ;;  %5749 = vmatmul.mubr.msk.f32.gmra.mxu0 %vm338_vm6, %v6854_v2  ;;  %5781 = vmatmul.mubr.msk.f32.gmra.mxu1 %vm338_vm6, %v6854_v2 }
 0x3a8   :  { %v6867_v8 = vadd.f32 %v744_v7, %v590_v4  ;;  %5803 = vmatpush3.msra.mxu0 %v1170_v63 }
 0x3a9   :  { %v5724_v10 = vpop.f32.mrf.mxu1  ;;  %5804 = vmatprep.subr.mxu0 %v1169_v6 }
 0x3aa   :  { %5751 = vmatprep.mubr.msk.f32.mxu0 %vm338_vm6, %v6867_v8  ;;  %5783 = vmatprep.mubr.msk.f32.mxu1 %vm338_vm6, %v6867_v8  ;;  %v6883_v15 = vadd.f32 %v5724_v10, %v593_v12 }
 0x3ab   :  { %v754_v13 = vpop.f32.mrf.mxu1  ;;  %5752 = vmatmul.mubr.msk.f32.gmra.mxu0 %vm338_vm6, %v6869_v9  ;;  %5784 = vmatmul.mubr.msk.f32.gmra.mxu1 %vm338_vm6, %v6869_v9 }
 0x3ac   :  { %v6881_v14 = vadd.f32 %v754_v13, %v592_v11  ;;  %5805 = vmatpush3.msra.mxu0 %v1169_v6 }
 0x3ad   :  { %v5727_v16 = vpop.f32.mrf.mxu1 }
 0x3ae   :  { %5754 = vmatprep.mubr.msk.f32.mxu0 %vm338_vm6, %v6881_v14  ;;  %5786 = vmatprep.mubr.msk.f32.mxu1 %vm338_vm6, %v6881_v14  ;;  %v6897_v21 = vadd.f32 %v5727_v16, %v595_v18 }
 0x3af   :  { %v764_v19 = vpop.f32.mrf.mxu1  ;;  %5755 = vmatmul.mubr.msk.f32.gmra.mxu0 %vm338_vm6, %v6883_v15  ;;  %5787 = vmatmul.mubr.msk.f32.gmra.mxu1 %vm338_vm6, %v6883_v15 }
 0x3b0   :  { %v6895_v20 = vadd.f32 %v764_v19, %v594_v17  ;;  %v7032_v17 = vld [vmem:[%s7019_s21] ss:$0 sm:$0xff] }
 0x3b1   :  { %v5730_v22 = vpop.f32.mrf.mxu1 }
 0x3b2   :  { %5757 = vmatprep.mubr.msk.f32.mxu0 %vm338_vm6, %v6895_v20  ;;  %5789 = vmatprep.mubr.msk.f32.mxu1 %vm338_vm6, %v6895_v20  ;;  %v6911_v27 = vadd.f32 %v5730_v22, %v597_v24 }
 0x3b3   :  { %v774_v25 = vpop.f32.mrf.mxu1  ;;  %5758 = vmatmul.mubr.msk.f32.gmra.mxu0 %vm338_vm6, %v6897_v21  ;;  %5790 = vmatmul.mubr.msk.f32.gmra.mxu1 %vm338_vm6, %v6897_v21 }
 0x3b4   :  { %v6909_v26 = vadd.f32 %v774_v25, %v596_v23 }
 0x3b5   :  { %v5733_v28 = vpop.f32.mrf.mxu1 }
 0x3b6   :  { %5760 = vmatprep.mubr.msk.f32.mxu0 %vm338_vm6, %v6909_v26  ;;  %5792 = vmatprep.mubr.msk.f32.mxu1 %vm338_vm6, %v6909_v26  ;;  %v6925_v33 = vadd.f32 %v5733_v28, %v599_v30 }
 0x3b7   :  { %v784_v31 = vpop.f32.mrf.mxu1  ;;  %5761 = vmatmul.mubr.msk.f32.gmra.mxu0 %vm338_vm6, %v6911_v27  ;;  %5793 = vmatmul.mubr.msk.f32.gmra.mxu1 %vm338_vm6, %v6911_v27 }
 0x3b8   :  { %v6923_v32 = vadd.f32 %v784_v31, %v598_v29 }
 0x3ba   :  { %5763 = vmatprep.mubr.msk.f32.mxu0 %vm338_vm6, %v6923_v32  ;;  %5795 = vmatprep.mubr.msk.f32.mxu1 %vm338_vm6, %v6923_v32 }
 0x3bb   :  { %5764 = vmatmul.mubr.msk.f32.gmra.mxu0 %vm338_vm6, %v6925_v33  ;;  %5796 = vmatmul.mubr.msk.f32.gmra.mxu1 %vm338_vm6, %v6925_v33 }
 0x3bc   :  { %5806 = vmatprep.mubr.msk.f32.mxu0 %vm338_vm6, %v6822_v51 }
 0x3bf   :  { %5807 = vmatmul.mubr.msk.f32.vlgmr.msra.gmra.mxu0 %vm338_vm6, %v6824_v52 }
 0x3c0   :  { %5809 = vmatprep.mubr.msk.f32.mxu0 %vm338_vm6, %v6837_v58 }
 0x3c3   :  { %5810 = vmatmul.mubr.msk.f32.gmra.mxu0 %vm338_vm6, %v6839_v59 }
 0x3c4   :  { %5812 = vmatprep.mubr.msk.f32.mxu0 %vm338_vm6, %v6852_v1 }
 0x3c7   :  { %5813 = vmatmul.mubr.msk.f32.gmra.mxu0 %vm338_vm6, %v6854_v2 }
 0x3c8   :  { %5815 = vmatprep.mubr.msk.f32.mxu0 %vm338_vm6, %v6867_v8 }
 0x3cb   :  { %5816 = vmatmul.mubr.msk.f32.gmra.mxu0 %vm338_vm6, %v6869_v9 }
 0x3cc   :  { %5818 = vmatprep.mubr.msk.f32.mxu0 %vm338_vm6, %v6881_v14 }
 0x3cf   :  { %5819 = vmatmul.mubr.msk.f32.gmra.mxu0 %vm338_vm6, %v6883_v15 }
 0x3d0   :  { %5821 = vmatprep.mubr.msk.f32.mxu0 %vm338_vm6, %v6895_v20 }
 0x3d3   :  { %5822 = vmatmul.mubr.msk.f32.gmra.mxu0 %vm338_vm6, %v6897_v21 }
 0x3d4   :  { %5824 = vmatprep.mubr.msk.f32.mxu0 %vm338_vm6, %v6909_v26 }
 0x3d7   :  { %5825 = vmatmul.mubr.msk.f32.gmra.mxu0 %vm338_vm6, %v6911_v27 }
 0x3d8   :  { %5827 = vmatprep.mubr.msk.f32.mxu0 %vm338_vm6, %v6923_v32 }
 0x3db   :  { %5828 = vmatmul.mubr.msk.f32.gmra.mxu0 %vm338_vm6, %v6925_v33 }
 0x45f   :  { %v5744_v35 = vpop.f32.mrf.mxu0  ;;  %v6975_v36 = vpop.f32.mrf.mxu1 }
 0x460   :  { %v6978_v37 = vadd.f32 %v5744_v35, %v6973_v34 }
 0x461   :  { %v934_v38 = vpop.f32.mrf.mxu0  ;;  %v6980_v39 = vpop.f32.mrf.mxu1 }
 0x462   :  { %v935_v40 = vadd.f32 %v6973_v34, %v934_v38 }
 0x463   :  { %v5747_v41 = vpop.f32.mrf.mxu0  ;;  %v6983_v42 = vpop.f32.mrf.mxu1 }
 0x464   :  { %v6986_v43 = vadd.f32 %v5747_v41, %v6973_v34  ;;  %5862 = vmatprep.mubr.msk.f32.mxu1 %vm142_vm0, %v935_v40 }
 0x465   :  { %v6989_v44 = vpop.f32.mrf.mxu0  ;;  %v6991_v45 = vpop.f32.mrf.mxu1 }
 0x467   :  { %v5750_v46 = vpop.f32.mrf.mxu0  ;;  %v6993_v47 = vpop.f32.mrf.mxu1 }
 0x468   :  { %v6996_v48 = vadd.f32 %v5750_v46, %v6973_v34 }
 0x469   :  { %v6998_v49 = vpop.f32.mrf.mxu0  ;;  %v7000_v50 = vpop.f32.mrf.mxu1 }
 0x46b   :  { %v5753_v53 = vpop.f32.mrf.mxu0  ;;  %v7002_v54 = vpop.f32.mrf.mxu1 }
 0x46c   :  { %v7005_v55 = vadd.f32 %v5753_v53, %v6973_v34 }
 0x46d   :  { %v7007_v56 = vpop.f32.mrf.mxu0  ;;  %v7009_v57 = vpop.f32.mrf.mxu1 }
 0x46f   :  { %v5756_v60 = vpop.f32.mrf.mxu0  ;;  %v5788_v61 = vpop.f32.mrf.mxu1 }
 0x470   :  { %v7012_v62 = vadd.f32 %v5756_v60, %v6973_v34 }
 0x471   :  { %v7014_v63 = vpop.f32.mrf.mxu0  ;;  %v1130_v0 = vpop.f32.mrf.mxu1 }
 0x473   :  { %v5759_v3 = vpop.f32.mrf.mxu0  ;;  %v5791_v4 = vpop.f32.mrf.mxu1 }
 0x474   :  { %v7022_v5 = vadd.f32 %v5759_v3, %v6973_v34  ;;  %v1146_v53 = vadd.f32 %v5791_v4, %v7032_v17 }
 0x475   :  { %v7024_v6 = vpop.f32.mrf.mxu0  ;;  %v1140_v7 = vpop.f32.mrf.mxu1 }
 0x477   :  { %v5762_v10 = vpop.f32.mrf.mxu0  ;;  %v5794_v11 = vpop.f32.mrf.mxu1 }
 0x478   :  { %v7027_v12 = vadd.f32 %v5762_v10, %v6973_v34  ;;  %v1156_v31 = vadd.f32 %v5794_v11, %v7032_v17  ;;  %v1141_v10 = vadd.f32 %v7032_v17, %v1140_v7 }
 0x479   :  { %v7029_v13 = vpop.f32.mrf.mxu0  ;;  %v1150_v16 = vpop.f32.mrf.mxu1 }
 0x47a   :  { %v1151_v40 = vadd.f32 %v7032_v17, %v1150_v16 }
 0x47b   :  { %v5765_v18 = vpop.f32.mrf.mxu0  ;;  %v5797_v19 = vpop.f32.mrf.mxu1 }
 0x47c   :  { %v7035_v22 = vadd.f32 %v5765_v18, %v6973_v34  ;;  %v1166_v23 = vadd.f32 %v5797_v19, %v7032_v17  ;;  %v1136_v18 = vadd.f32 %v5788_v61, %v7032_v17  ;;  %v1131_v19 = vadd.f32 %v7032_v17, %v1130_v0 }
 0x47d   :  { %v7038_v24 = vpop.f32.mrf.mxu0  ;;  %v1160_v25 = vpop.f32.mrf.mxu1  ;;  %v1121_v0 = vadd.f32 %v7032_v17, %v7009_v57 }
 0x47e   :  { %v1161_v28 = vadd.f32 %v7032_v17, %v1160_v25  ;;  %5830 = vmatprep.subr.msk.mxu1 %vm142_vm0, %v1166_v23  ;;  %v1126_v25 = vadd.f32 %v7002_v54, %v7032_v17 }
 0x47f   :  { %v7042_v29 = vpop.f32.mrf.mxu0  ;;  %5831 = vmatpush3.xpose.msk.msra.mxu1 %vm142_vm0, %v1166_v23 }
 0x480   :  { %5832 = vmatprep.subr.msk.mxu1 %vm142_vm0, %v1161_v28 }
 0x481   :  { %v7046_v30 = vpop.f32.mrf.mxu0 }
 0x483   :  { %v7049_v35 = vpop.f32.mrf.mxu0  ;;  %5833 = vmatpush3.xpose.msk.msra.mxu1 %vm142_vm0, %v1161_v28  ;;  %v7082_v28 = vld [vmem:[%s7072_s25] ss:$0 sm:$0xff] }
 0x484   :  { %5834 = vmatprep.subr.msk.mxu1 %vm142_vm0, %v1156_v31 }
 0x485   :  { %v7053_v38 = vpop.f32.mrf.mxu0 }
 0x487   :  { %v7056_v41 = vpop.f32.mrf.mxu0  ;;  %5835 = vmatpush3.xpose.msk.msra.mxu1 %vm142_vm0, %v1156_v31 }
 0x488   :  { %5836 = vmatprep.subr.msk.mxu1 %vm142_vm0, %v1151_v40 }
 0x489   :  { %v7060_v46 = vpop.f32.mrf.mxu0 }
 0x48b   :  { %v5817_v60 = vpop.f32.mrf.mxu0  ;;  %5837 = vmatpush3.xpose.msk.msra.mxu1 %vm142_vm0, %v1151_v40 }
 0x48c   :  { %5838 = vmatprep.subr.msk.mxu1 %vm142_vm0, %v1146_v53 }
 0x48d   :  { %v1276_v3 = vpop.f32.mrf.mxu0 }
 0x48f   :  { %v5820_v11 = vpop.f32.mrf.mxu0  ;;  %5839 = vmatpush3.xpose.msk.msra.mxu1 %vm142_vm0, %v1146_v53 }
 0x490   :  { %5840 = vmatprep.subr.msk.mxu1 %vm142_vm0, %v1141_v10 }
 0x491   :  { %v1286_v16 = vpop.f32.mrf.mxu0 }
 0x493   :  { %v5823_v4 = vpop.f32.mrf.mxu0  ;;  %5841 = vmatpush3.xpose.msk.msra.mxu1 %vm142_vm0, %v1141_v10 }
 0x494   :  { %5842 = vmatprep.subr.msk.mxu1 %vm142_vm0, %v1136_v18  ;;  %v1302_v57 = vadd.f32 %v5823_v4, %v7082_v28  ;;  %v1106_v4 = vadd.f32 %v6983_v42, %v7032_v17  ;;  %v1272_v42 = vadd.f32 %v7056_v41, %v7082_v28  ;;  %v1091_v41 = vadd.f32 %v7032_v17, %v6980_v39 }
 0x495   :  { %v1296_v7 = vpop.f32.mrf.mxu0  ;;  %v1247_v39 = vadd.f32 %v7082_v28, %v7046_v30  ;;  %v955_v30 = vadd.f32 %v6973_v34, %v6998_v49  ;;  %v1005_v49 = vadd.f32 %v6973_v34, %v7038_v24 }
 0x497   :  { %v5826_v23 = vpop.f32.mrf.mxu0  ;;  %5843 = vmatpush3.xpose.msk.msra.mxu1 %vm142_vm0, %v1136_v18  ;;  %v1116_v18 = vadd.f32 %v6993_v47, %v7032_v17  ;;  %v1292_v47 = vadd.f32 %v5820_v11, %v7082_v28  ;;  %v1101_v11 = vadd.f32 %v7032_v17, %v6991_v45  ;;  %v1262_v45 = vadd.f32 %v7049_v35, %v7082_v28  ;;  %v5112_v35 = vld [vmem:[%s6757_s27 + $0x38] sm:$0xff] }
 0x498   :  { %5844 = vmatprep.subr.msk.mxu1 %vm142_vm0, %v1131_v19  ;;  %v1312_v54 = vadd.f32 %v5826_v23, %v7082_v28  ;;  %v1111_v23 = vadd.f32 %v7032_v17, %v7000_v50  ;;  %v1282_v50 = vadd.f32 %v5817_v60, %v7082_v28  ;;  %v1096_v60 = vadd.f32 %v6975_v36, %v7032_v17 }
 0x499   :  { %v1306_v61 = vpop.f32.mrf.mxu0  ;;  %v1257_v36 = vadd.f32 %v7082_v28, %v7053_v38  ;;  %v945_v17 = vadd.f32 %v6973_v34, %v6989_v44  ;;  %v5110_v38 = vld [vmem:[%s6757_s27 + $0x28] sm:$0xff]  ;;  %v975_v44 = vadd.f32 %v6973_v34, %v7014_v63  ;;  %v793_v63 = vld [vmem:[%s7213_s29] sm:$0xff] }
 0x49b   :  { %v5829_v31 = vpop.f32.mrf.mxu0  ;;  %5845 = vmatpush3.xpose.msk.msra.mxu1 %vm142_vm0, %v1131_v19  ;;  %v1307_v19 = vadd.f32 %v7082_v28, %v1306_v61  ;;  %v1287_v61 = vadd.f32 %v7082_v28, %v1286_v16  ;;  %v1267_v16 = vadd.f32 %v7082_v28, %v7060_v46  ;;  %v1252_v46 = vadd.f32 %v7042_v29, %v7082_v28  ;;  %v5111_v29 = vld [vmem:[%s6757_s27 + $0x30] sm:$0xff] }
 0x49c   :  { %v1322_v40 = vadd.f32 %v5829_v31, %v7082_v28  ;;  %5846 = vmatprep.subr.msk.mxu1 %vm142_vm0, %v1126_v25 }
 0x49d   :  { %v1316_v53 = vpop.f32.mrf.mxu0 }
 0x49e   :  { %v1317_v10 = vadd.f32 %v7082_v28, %v1316_v53  ;;  %5886 = vmatprep.subr.mxu0 %v1322_v40 }
 0x49f   :  { %5847 = vmatpush3.xpose.msk.msra.mxu1 %vm142_vm0, %v1126_v25  ;;  %5887 = vmatpush3.msra.mxu0 %v1322_v40  ;;  %v1297_v25 = vadd.f32 %v7082_v28, %v1296_v7  ;;  %v1277_v7 = vadd.f32 %v7082_v28, %v1276_v3  ;;  %v5109_v3 = vld [vmem:[%s6757_s27 + $0x20] sm:$0xff]  ;;  %v796_v28 = vld [vmem:[%s7213_s29 + $0x18] sm:$0xff]  ;;  %s4954_s27 = sld [smem:[%s8776_s0 + %s6654_s24]]  }
 0x4a0   :  { %5848 = vmatprep.subr.msk.mxu1 %vm142_vm0, %v1121_v0  ;;  %5888 = vmatprep.subr.mxu0 %v1317_v10 }
 0x4a1   :  { %5889 = vmatpush3.msra.mxu0 %v1317_v10  ;;  %v795_v10 = vld [vmem:[%s7213_s29 + $0x10] sm:$0xff] }
 0x4a2   :  { %5890 = vmatprep.subr.mxu0 %v1312_v54 }
 0x4a3   :  { %5849 = vmatpush3.xpose.msk.msra.mxu1 %vm142_vm0, %v1121_v0  ;;  %5891 = vmatpush3.msra.mxu0 %v1312_v54 }
 0x4a4   :  { %5850 = vmatprep.subr.msk.mxu1 %vm142_vm0, %v1116_v18  ;;  %5892 = vmatprep.subr.mxu0 %v1307_v19 }
 0x4a5   :  { %5893 = vmatpush3.msra.mxu0 %v1307_v19 }
 0x4a6   :  { %5894 = vmatprep.subr.mxu0 %v1302_v57 }
 0x4a7   :  { %5851 = vmatpush3.xpose.msk.msra.mxu1 %vm142_vm0, %v1116_v18  ;;  %5895 = vmatpush3.msra.mxu0 %v1302_v57 }
 0x4a8   :  { %5852 = vmatprep.subr.msk.mxu1 %vm142_vm0, %v1111_v23  ;;  %5896 = vmatprep.subr.mxu0 %v1297_v25 }
 0x4a9   :  { %5897 = vmatpush3.msra.mxu0 %v1297_v25 }
 0x4aa   :  { %5898 = vmatprep.subr.mxu0 %v1292_v47 }
 0x4ab   :  { %5853 = vmatpush3.xpose.msk.msra.mxu1 %vm142_vm0, %v1111_v23  ;;  %5899 = vmatpush3.msra.mxu0 %v1292_v47  ;;  %v798_v23 = vld [vmem:[%s7213_s29 + $0x28] sm:$0xff] }
 0x4ac   :  { %5854 = vmatprep.subr.msk.mxu1 %vm142_vm0, %v1106_v4  ;;  %5900 = vmatprep.subr.mxu0 %v1287_v61 }
 0x4ad   :  { %5901 = vmatpush3.msra.mxu0 %v1287_v61 }
 0x4ae   :  { %5902 = vmatprep.subr.mxu0 %v1282_v50 }
 0x4af   :  { %5855 = vmatpush3.xpose.msk.msra.mxu1 %vm142_vm0, %v1106_v4  ;;  %5903 = vmatpush3.msra.mxu0 %v1282_v50  ;;  %v797_v50 = vld [vmem:[%s7213_s29 + $0x20] sm:$0xff] }
 0x4b0   :  { %5856 = vmatprep.subr.msk.mxu1 %vm142_vm0, %v1101_v11  ;;  %5904 = vmatprep.subr.mxu0 %v1277_v7 }
 0x4b1   :  { %5905 = vmatpush3.msra.mxu0 %v1277_v7  ;;  %v804_v7 = vld [vmem:[%s7213_s29 + $0x58] sm:$0xff] }
 0x4b2   :  { %5906 = vmatprep.subr.mxu0 %v1272_v42 }
 0x4b3   :  { %5857 = vmatpush3.xpose.msk.msra.mxu1 %vm142_vm0, %v1101_v11  ;;  %5907 = vmatpush3.msra.mxu0 %v1272_v42 }
 0x4b4   :  { %5858 = vmatprep.subr.msk.mxu1 %vm142_vm0, %v1096_v60  ;;  %5908 = vmatprep.subr.mxu0 %v1267_v16 }
 0x4b5   :  { %5909 = vmatpush3.msra.mxu0 %v1267_v16 }
 0x4b6   :  { %5910 = vmatprep.subr.mxu0 %v1262_v45 }
 0x4b7   :  { %5859 = vmatpush3.xpose.msk.msra.mxu1 %vm142_vm0, %v1096_v60  ;;  %5911 = vmatpush3.msra.mxu0 %v1262_v45 }
 0x4b8   :  { %5860 = vmatprep.subr.msk.mxu1 %vm142_vm0, %v1091_v41  ;;  %5912 = vmatprep.subr.mxu0 %v1257_v36 }
 0x4b9   :  { %5913 = vmatpush3.msra.mxu0 %v1257_v36 }
 0x4ba   :  { %5914 = vmatprep.subr.mxu0 %v1252_v46 }
 0x4bb   :  { %5861 = vmatpush3.xpose.msk.msra.mxu1 %vm142_vm0, %v1091_v41  ;;  %5915 = vmatpush3.msra.mxu0 %v1252_v46  ;;  %v800_v41 = vld [vmem:[%s7213_s29 + $0x38] sm:$0xff] }
 0x4bc   :  { %5916 = vmatprep.subr.mxu0 %v1247_v39  ;;  %5974 = vmatprep.subr.mxu1 %v5112_v35 }
 0x4bd   :  { %5917 = vmatpush3.msra.mxu0 %v1247_v39 }
 0x4be   :  { %5863 = vmatmul.mubr.msk.f32.vlgmr.msra.gmra.mxu1 %vm142_vm0, %v6978_v37  ;;  %v965_v37 = vadd.f32 %v6973_v34, %v7007_v56 }
 0x4bf   :  { %5865 = vmatprep.mubr.msk.f32.mxu1 %vm142_vm0, %v945_v17  ;;  %5975 = vmatpush3.msra.mxu1 %v5112_v35  ;;  %v806_v35 = vld [vmem:[%s7213_s29 + $0x68] sm:$0xff] }
 0x4c0   :  { %5976 = vmatprep.subr.mxu1 %v5111_v29 }
 0x4c1   :  { %5977 = vmatpush3.msra.mxu1 %v5111_v29 }
 0x4c2   :  { %5866 = vmatmul.mubr.msk.f32.gmra.mxu1 %vm142_vm0, %v6986_v43  ;;  %5978 = vmatprep.subr.mxu1 %v5110_v38  ;;  %v985_v43 = vadd.f32 %v6973_v34, %v7024_v6 }
 0x4c3   :  { %5868 = vmatprep.mubr.msk.f32.mxu1 %vm142_vm0, %v955_v30  ;;  %5979 = vmatpush3.msra.mxu1 %v5110_v38  ;;  %v799_v30 = vld [vmem:[%s7213_s29 + $0x30] sm:$0xff] }
 0x4c4   :  { %5980 = vmatprep.subr.mxu1 %v5109_v3 }
 0x4c5   :  { %5981 = vmatpush3.msra.mxu1 %v5109_v3 }
 0x4c6   :  { %5869 = vmatmul.mubr.msk.f32.gmra.mxu1 %vm142_vm0, %v6996_v48  ;;  %v995_v48 = vadd.f32 %v6973_v34, %v7029_v13 }
 0x4c7   :  { %5871 = vmatprep.mubr.msk.f32.mxu1 %vm142_vm0, %v965_v37 }
 0x4ca   :  { %5872 = vmatmul.mubr.msk.f32.gmra.mxu1 %vm142_vm0, %v7005_v55  ;;  %v794_v55 = vld [vmem:[%s7213_s29 + $0x8] sm:$0xff] }
 0x4cb   :  { %5874 = vmatprep.mubr.msk.f32.mxu1 %vm142_vm0, %v975_v44  ;;  %v808_v44 = vld [vmem:[%s7213_s29 + $0x78] sm:$0xff] }
 0x4ce   :  { %5875 = vmatmul.mubr.msk.f32.gmra.mxu1 %vm142_vm0, %v7012_v62 }
 0x4cf   :  { %5877 = vmatprep.mubr.msk.f32.mxu1 %vm142_vm0, %v985_v43 }
 0x4d2   :  { %5878 = vmatmul.mubr.msk.f32.gmra.mxu1 %vm142_vm0, %v7022_v5 }
 0x4d3   :  { %5880 = vmatprep.mubr.msk.f32.mxu1 %vm142_vm0, %v995_v48 }
 0x4d6   :  { %5881 = vmatmul.mubr.msk.f32.gmra.mxu1 %vm142_vm0, %v7027_v12 }
 0x4d7   :  { %5883 = vmatprep.mubr.msk.f32.mxu1 %vm142_vm0, %v1005_v49 }
 0x4da   :  { %5884 = vmatmul.mubr.msk.f32.gmra.mxu1 %vm142_vm0, %v7035_v22 }
 0x4db   :  { %5982 = vmatprep.mubr.msk.f32.mxu1 %vm338_vm6, %v6822_v51 }
 0x4de   :  { %5983 = vmatmul.mubr.msk.f32.vlgmr.msra.gmra.mxu1 %vm338_vm6, %v6824_v52 }
 0x4df   :  { %5985 = vmatprep.mubr.msk.f32.mxu1 %vm338_vm6, %v6837_v58 }
 0x4e2   :  { %5986 = vmatmul.mubr.msk.f32.gmra.mxu1 %vm338_vm6, %v6839_v59 }
 0x4e3   :  { %5988 = vmatprep.mubr.msk.f32.mxu1 %vm338_vm6, %v6852_v1 }
 0x4e6   :  { %5989 = vmatmul.mubr.msk.f32.gmra.mxu1 %vm338_vm6, %v6854_v2 }
 0x4e7   :  { %5991 = vmatprep.mubr.msk.f32.mxu1 %vm338_vm6, %v6867_v8 }
 0x4ea   :  { %5992 = vmatmul.mubr.msk.f32.gmra.mxu1 %vm338_vm6, %v6869_v9 }
 0x4eb   :  { %5994 = vmatprep.mubr.msk.f32.mxu1 %vm338_vm6, %v6881_v14 }
 0x4ee   :  { %5995 = vmatmul.mubr.msk.f32.gmra.mxu1 %vm338_vm6, %v6883_v15 }
 0x4ef   :  { %5997 = vmatprep.mubr.msk.f32.mxu1 %vm338_vm6, %v6895_v20 }
 0x4f2   :  { %5998 = vmatmul.mubr.msk.f32.gmra.mxu1 %vm338_vm6, %v6897_v21 }
 0x4f3   :  { %6000 = vmatprep.mubr.msk.f32.mxu1 %vm338_vm6, %v6909_v26 }
 0x4f6   :  { %6001 = vmatmul.mubr.msk.f32.gmra.mxu1 %vm338_vm6, %v6911_v27 }
 0x4f7   :  { %6003 = vmatprep.mubr.msk.f32.mxu1 %vm338_vm6, %v6923_v32 }
 0x4fa   :  { %6004 = vmatmul.mubr.msk.f32.gmra.mxu1 %vm338_vm6, %v6925_v33 }
 0x57e   :  { %v5864_v34 = vpop.f32.mrf.mxu1 }
 0x57f   :  { %v1567_v56 = vmul.f32 0.25, %v5864_v34 }
 0x580   :  { %v1487_v62 = vpop.f32.mrf.mxu1 }
 0x581   :  { %v1566_v5 = vmul.f32 0.25, %v1487_v62  ;;  %v7217_v6 = vadd.f32 %v1567_v56, %v794_v55  ;;  %v7256_v55 = vld [vmem:[%s7213_s29 + $0x48] sm:$0xff] }
 0x582   :  { %v5867_v12 = vpop.f32.mrf.mxu1 }
 0x583   :  { %v1569_v13 = vmul.f32 0.25, %v5867_v12  ;;  %1600 = vmax.xlane.f32.xlu1 %v7217_v6  ;;  %v7220_v22 = vadd.f32 %v1566_v5, %v793_v63 }
 0x584   :  { %v1497_v24 = vpop.f32.mrf.mxu1 }
 0x585   :  { %1598 = vmax.xlane.f32.xlu0 %v7220_v22  ;;  %v1568_v40 = vmul.f32 0.25, %v1497_v24  ;;  %v7224_v53 = vadd.f32 %v1569_v13, %v796_v28  ;;  %v7270_v13 = vld [vmem:[%s7213_s29 + $0x40] sm:$0xff] }
 0x586   :  { %v5870_v31 = vpop.f32.mrf.mxu1 }
 0x587   :  { %v1571_v18 = vmul.f32 0.25, %v5870_v31  ;;  %v7228_v19 = vadd.f32 %v1568_v40, %v795_v10 }
 0x588   :  { %v1507_v0 = vpop.f32.mrf.mxu1 }
 0x589   :  { %1604 = vmax.xlane.f32.xlu0 %v7224_v53  ;;  %v1570_v47 = vmul.f32 0.25, %v1507_v0  ;;  %v7232_v4 = vadd.f32 %v1571_v18, %v798_v23  ;;  %v7281_v0 = vld [vmem:[%s7213_s29 + $0x50] sm:$0xff]  ;;  %v7288_v23 = vld [vmem:[%s7213_s29 + $0x60] sm:$0xff] }
 0x58a   :  { %v5873_v54 = vpop.f32.mrf.mxu1 }
 0x58b   :  { %v1573_v42 = vmul.f32 0.25, %v5873_v54  ;;  %v7237_v16 = vadd.f32 %v1570_v47, %v797_v50 }
 0x58c   :  { %v1517_v57 = vpop.f32.mrf.mxu1 }
 0x58d   :  { %1602 = vmax.xlane.f32.xlu0 %v7228_v19  ;;  %v1572_v39 = vmul.f32 0.25, %v1517_v57  ;;  %v7245_v29 = vadd.f32 %v1573_v42, %v800_v41 }
 0x58e   :  { %v5876_v25 = vpop.f32.mrf.mxu1 }
 0x58f   :  { %v1575_v43 = vmul.f32 0.25, %v5876_v25  ;;  %v7253_v49 = vadd.f32 %v1572_v39, %v799_v30  ;;  %v5114_v39 = vld [vmem:[%s7019_s21 + $0x1] ss:$0 sm:$0xff]  ;;  %s4960_s21 = sld [smem:[%s8776_s0 + %s6660_s18]]  }
 0x590   :  { %v1527_v61 = vpop.f32.mrf.mxu1 }
 0x591   :  { %1608 = vmax.xlane.f32.xlu0 %v7232_v4  ;;  %v1574_v63 = vmul.f32 0.25, %v1527_v61  ;;  %v7265_v5 = vadd.f32 %v1575_v43, %v7256_v55 }
 0x592   :  { %v5879_v11 = vpop.f32.mrf.mxu1 }
 0x593   :  { %v1577_v60 = vmul.f32 0.25, %v5879_v11  ;;  %v7276_v31 = vadd.f32 %v1574_v63, %v7270_v13  ;;  %v7295_v11 = vld [vmem:[%s7213_s29 + $0x70] sm:$0xff] }
 0x594   :  { %v1537_v45 = vpop.f32.mrf.mxu1 }
 0x595   :  { %1606 = vmax.xlane.f32.xlu0 %v7237_v16  ;;  %v7241_v36 = vadd.f32 %v1577_v60, %v804_v7  ;;  %v1576_v28 = vmul.f32 0.25, %v1537_v45 }
 0x596   :  { %v5882_v46 = vpop.f32.mrf.mxu1 }
 0x597   :  { %v1579_v17 = vmul.f32 0.25, %v5882_v46  ;;  %1620 = vmax.xlane.f32.xlu1 %v7241_v36  ;;  %v7285_v18 = vadd.f32 %v1576_v28, %v7281_v0 }
 0x598   :  { %v1547_v38 = vpop.f32.mrf.mxu1 }
 0x599   :  { %1612 = vmax.xlane.f32.xlu0 %v7245_v29  ;;  %v7249_v3 = vadd.f32 %v1579_v17, %v806_v35  ;;  %v1578_v54 = vmul.f32 0.25, %v1547_v38 }
 0x59a   :  { %v5885_v37 = vpop.f32.mrf.mxu1 }
 0x59b   :  { %v1581_v48 = vmul.f32 0.25, %v5885_v37  ;;  %1624 = vmax.xlane.f32.xlu1 %v7249_v3  ;;  %v7292_v61 = vadd.f32 %v1578_v54, %v7288_v23 }
 0x59c   :  { %v1557_v34 = vpop.f32.mrf.mxu1 }
 0x59d   :  { %1610 = vmax.xlane.f32.xlu0 %v7253_v49  ;;  %v7259_v56 = vadd.f32 %v1581_v48, %v808_v44  ;;  %v1580_v47 = vmul.f32 0.25, %v1557_v34 }
 0x59e   :  { %v7261_v62 = vpop.f32.mrf.mxu1 }
 0x59f   :  { %1628 = vmax.xlane.f32.xlu1 %v7259_v56  ;;  %v7299_v42 = vadd.f32 %v1580_v47, %v7295_v11 }
 0x5a0   :  { %v7267_v12 = vpop.f32.mrf.mxu1 }
 0x5a1   :  { %1616 = vmax.xlane.f32.xlu0 %v7265_v5 }
 0x5a2   :  { %v7273_v24 = vpop.f32.mrf.mxu1 }
 0x5a4   :  { %v7278_v40 = vpop.f32.mrf.mxu1 }
 0x5a5   :  { %1614 = vmax.xlane.f32.xlu0 %v7276_v31 }
 0x5a6   :  { %v5990_v10 = vpop.f32.mrf.mxu1 }
 0x5a8   :  { %v2146_v57 = vpop.f32.mrf.mxu1 }
 0x5a9   :  { %1618 = vmax.xlane.f32.xlu0 %v7285_v18 }
 0x5aa   :  { %v5993_v25 = vpop.f32.mrf.mxu1 }
 0x5ab   :  { %v2162_v54 = vadd.f32 %v5993_v25, %v5114_v39  ;;  %v2142_v25 = vadd.f32 %v7273_v24, %v5114_v39 }
 0x5ac   :  { %v2156_v50 = vpop.f32.mrf.mxu1 }
 0x5ad   :  { %1622 = vmax.xlane.f32.xlu0 %v7292_v61  ;;  %v2157_v47 = vadd.f32 %v5114_v39, %v2156_v50  ;;  %v2137_v50 = vadd.f32 %v5114_v39, %v7278_v40 }
 0x5ae   :  { %v5996_v7 = vpop.f32.mrf.mxu1 }
 0x5af   :  { %v2172_v63 = vadd.f32 %v5996_v7, %v5114_v39  ;;  %v2152_v7 = vadd.f32 %v5990_v10, %v5114_v39  ;;  %v2132_v10 = vadd.f32 %v7261_v62, %v5114_v39 }
 0x5b0   :  { %v2166_v60 = vpop.f32.mrf.mxu1 }
 0x5b1   :  { %1626 = vmax.xlane.f32.xlu0 %v7299_v42  ;;  %v2167_v28 = vadd.f32 %v5114_v39, %v2166_v60  ;;  %v2147_v60 = vadd.f32 %v5114_v39, %v2146_v57  ;;  %v2127_v57 = vadd.f32 %v5114_v39, %v7267_v12 }
 0x5b2   :  { %v5999_v45 = vpop.f32.mrf.mxu1 }
 0x5b3   :  { %v2182_v48 = vadd.f32 %v5999_v45, %v5114_v39 }
 0x5b4   :  { %v2176_v41 = vpop.f32.mrf.mxu1 }
 0x5b5   :  { %v2177_v34 = vadd.f32 %v5114_v39, %v2176_v41 }
 0x5b6   :  { %v6002_v46 = vpop.f32.mrf.mxu1 }
 0x5b7   :  { %v2192_v44 = vadd.f32 %v6002_v46, %v5114_v39 }
 0x5b8   :  { %v2186_v35 = vpop.f32.mrf.mxu1 }
 0x5b9   :  { %v2187_v43 = vadd.f32 %v5114_v39, %v2186_v35 }
 0x5ba   :  { %v6005_v17 = vpop.f32.mrf.mxu1 }
 0x5bb   :  { %v2202_v38 = vadd.f32 %v6005_v17, %v5114_v39 }
 0x5bc   :  { %v2196_v30 = vpop.f32.mrf.mxu1 }
 0x5bd   :  { %v2197_v37 = vadd.f32 %v5114_v39, %v2196_v30  ;;  %6038 = vmatprep.subr.msk.mxu1 %vm142_vm0, %v2202_v38 }
 0x5be   :  { %6039 = vmatpush3.xpose.msk.msra.mxu1 %vm142_vm0, %v2202_v38 }
 0x5bf   :  { %6040 = vmatprep.subr.msk.mxu1 %vm142_vm0, %v2197_v37 }
 0x5c2   :  { %6041 = vmatpush3.xpose.msk.msra.mxu1 %vm142_vm0, %v2197_v37 }
 0x5c3   :  { %6042 = vmatprep.subr.msk.mxu1 %vm142_vm0, %v2192_v44 }
 0x5c6   :  { %6043 = vmatpush3.xpose.msk.msra.mxu1 %vm142_vm0, %v2192_v44 }
 0x5c7   :  { %6044 = vmatprep.subr.msk.mxu1 %vm142_vm0, %v2187_v43 }
 0x5ca   :  { %6045 = vmatpush3.xpose.msk.msra.mxu1 %vm142_vm0, %v2187_v43 }
 0x5cb   :  { %6046 = vmatprep.subr.msk.mxu1 %vm142_vm0, %v2182_v48 }
 0x5ce   :  { %6047 = vmatpush3.xpose.msk.msra.mxu1 %vm142_vm0, %v2182_v48 }
 0x5cf   :  { %6048 = vmatprep.subr.msk.mxu1 %vm142_vm0, %v2177_v34 }
 0x5d2   :  { %6049 = vmatpush3.xpose.msk.msra.mxu1 %vm142_vm0, %v2177_v34 }
 0x5d3   :  { %6050 = vmatprep.subr.msk.mxu1 %vm142_vm0, %v2172_v63 }
 0x5d6   :  { %6051 = vmatpush3.xpose.msk.msra.mxu1 %vm142_vm0, %v2172_v63 }
 0x5d7   :  { %6052 = vmatprep.subr.msk.mxu1 %vm142_vm0, %v2167_v28 }
 0x5da   :  { %6053 = vmatpush3.xpose.msk.msra.mxu1 %vm142_vm0, %v2167_v28 }
 0x5db   :  { %6054 = vmatprep.subr.msk.mxu1 %vm142_vm0, %v2162_v54 }
 0x5de   :  { %6055 = vmatpush3.xpose.msk.msra.mxu1 %vm142_vm0, %v2162_v54 }
 0x5df   :  { %6056 = vmatprep.subr.msk.mxu1 %vm142_vm0, %v2157_v47 }
 0x5e2   :  { %6057 = vmatpush3.xpose.msk.msra.mxu1 %vm142_vm0, %v2157_v47 }
 0x5e3   :  { %6058 = vmatprep.subr.msk.mxu1 %vm142_vm0, %v2152_v7 }
 0x5e6   :  { %6059 = vmatpush3.xpose.msk.msra.mxu1 %vm142_vm0, %v2152_v7 }
 0x5e7   :  { %6060 = vmatprep.subr.msk.mxu1 %vm142_vm0, %v2147_v60 }
 0x5ea   :  { %6061 = vmatpush3.xpose.msk.msra.mxu1 %vm142_vm0, %v2147_v60 }
 0x5eb   :  { %6062 = vmatprep.subr.msk.mxu1 %vm142_vm0, %v2142_v25 }
 0x5ee   :  { %6063 = vmatpush3.xpose.msk.msra.mxu1 %vm142_vm0, %v2142_v25 }
 0x5ef   :  { %6064 = vmatprep.subr.msk.mxu1 %vm142_vm0, %v2137_v50 }
 0x5f2   :  { %6065 = vmatpush3.xpose.msk.msra.mxu1 %vm142_vm0, %v2137_v50 }
 0x5f3   :  { %6066 = vmatprep.subr.msk.mxu1 %vm142_vm0, %v2132_v10 }
 0x5f6   :  { %6067 = vmatpush3.xpose.msk.msra.mxu1 %vm142_vm0, %v2132_v10 }
 0x5f7   :  { %6068 = vmatprep.subr.msk.mxu1 %vm142_vm0, %v2127_v57 }
 0x5fa   :  { %6069 = vmatpush3.xpose.msk.msra.mxu1 %vm142_vm0, %v2127_v57 }
 0x60c   :  { %v1601_v24 = vpop.xlane.xlu1 %1600 }
 0x60d   :  { %v1631_v40 = vsub.f32 %v7217_v6, %v1601_v24 }
 0x60e   :  { %v1599_v45 = vpop.xlane.xlu0 %1598 }
 0x60f   :  { %v1648_v41 = vmul.f32 1.442695, %v1631_v40  ;;  %v1630_v46 = vsub.f32 %v7220_v22, %v1599_v45 }
 0x611   :  { %6357 = vpow2.f32 %v1648_v41  ;;  %v1646_v62 = vmul.f32 1.442695, %v1630_v46 }
 0x612   :  { %v1605_v35 = vpop.xlane.xlu0 %1604 }
 0x613   :  { %6359 = vpow2.f32 %v1646_v62  ;;  %v1633_v17 = vsub.f32 %v7224_v53, %v1605_v35 }
 0x615   :  { %v1652_v12 = vmul.f32 1.442695, %v1633_v17 }
 0x616   :  { %v1603_v39 = vpop.xlane.xlu0 %1602 }
 0x617   :  { %6361 = vpow2.f32 %v1652_v12  ;;  %v1632_v38 = vsub.f32 %v7228_v19, %v1603_v39 }
 0x619   :  { %v1650_v30 = vmul.f32 1.442695, %v1632_v38 }
 0x61a   :  { %v1609_v37 = vpop.xlane.xlu0 %1608 }
 0x61b   :  { %6363 = vpow2.f32 %v1650_v30  ;;  %v1635_v6 = vsub.f32 %v7232_v4, %v1609_v37 }
 0x61d   :  { %v1656_v44 = vmul.f32 1.442695, %v1635_v6 }
 0x61e   :  { %v7344_v43 = vpop.eup %6357  ;;  %v1607_v22 = vpop.xlane.xlu0 %1606 }
 0x61f   :  { %6365 = vpow2.f32 %v1656_v44  ;;  %v1634_v48 = vsub.f32 %v7237_v16, %v1607_v22  ;;  %1680 = vadd.xlane.f32.xlu1 %v7344_v43 }
 0x620   :  { %v7348_v53 = vpop.eup %6359  ;;  %v1621_v63 = vpop.xlane.xlu1 %1620 }
 0x621   :  { %v1654_v34 = vmul.f32 1.442695, %v1634_v48  ;;  %1678 = vadd.xlane.f32.xlu0 %v7348_v53  ;;  %v1641_v50 = vsub.f32 %v7241_v36, %v1621_v63 }
 0x622   :  { %v1613_v19 = vpop.xlane.xlu0 %1612 }
 0x623   :  { %6367 = vpow2.f32 %v1654_v34  ;;  %v1637_v28 = vsub.f32 %v7245_v29, %v1613_v19  ;;  %v1668_v40 = vmul.f32 1.442695, %v1641_v50 }
 0x624   :  { %v7352_v4 = vpop.eup %6361  ;;  %v1625_v60 = vpop.xlane.xlu1 %1624 }
 0x625   :  { %v1660_v54 = vmul.f32 1.442695, %v1637_v28  ;;  %1684 = vadd.xlane.f32.xlu1 %v7352_v4 }
 0x626   :  { %v1611_v47 = vpop.xlane.xlu0 %1610 }
 0x627   :  { %6369 = vpow2.f32 %v1660_v54  ;;  %v1636_v16 = vsub.f32 %v7253_v49, %v1611_v47  ;;  %v1643_v49 = vsub.f32 %v7249_v3, %v1625_v60  ;;  %v5090_v54 = vld [vmem:[%s6762_s1 + $0x38] sm:$0xff] }
 0x628   :  { %v7356_v7 = vpop.eup %6363  ;;  %v1629_v41 = vpop.xlane.xlu1 %1628  ;;  %5942 = vmatprep.subr.mxu0 %v5090_v54 }
 0x629   :  { %v1658_v25 = vmul.f32 1.442695, %v1636_v16  ;;  %1682 = vadd.xlane.f32.xlu0 %v7356_v7  ;;  %v1645_v35 = vsub.f32 %v7259_v56, %v1629_v41  ;;  %v5088_v41 = vld [vmem:[%s6762_s1 + $0x28] sm:$0xff] }
 0x62a   :  { %v1617_v10 = vpop.xlane.xlu0 %1616 }
 0x62b   :  { %6371 = vpow2.f32 %v1658_v25  ;;  %v1639_v29 = vsub.f32 %v7265_v5, %v1617_v10  ;;  %v1672_v5 = vmul.f32 1.442695, %v1643_v49 }
 0x62c   :  { %v7361_v57 = vpop.eup %6365 }
 0x62d   :  { %v1664_v24 = vmul.f32 1.442695, %v1639_v29  ;;  %1688 = vadd.xlane.f32.xlu1 %v7361_v57 }
 0x62e   :  { %v1615_v45 = vpop.xlane.xlu0 %1614 }
 0x62f   :  { %6373 = vpow2.f32 %v1664_v24  ;;  %v1638_v46 = vsub.f32 %v7276_v31, %v1615_v45  ;;  %v1676_v31 = vmul.f32 1.442695, %v1645_v35  ;;  %v5089_v45 = vld [vmem:[%s6762_s1 + $0x30] sm:$0xff] }
 0x630   :  { %v7366_v62 = vpop.eup %6367  ;;  %6375 = vpow2.f32 %v1668_v40 }
 0x631   :  { %v1662_v36 = vmul.f32 1.442695, %v1638_v46  ;;  %1686 = vadd.xlane.f32.xlu0 %v7366_v62 }
 0x632   :  { %v1619_v17 = vpop.xlane.xlu0 %1618 }
 0x633   :  { %6377 = vpow2.f32 %v1662_v36  ;;  %v1640_v12 = vsub.f32 %v7285_v18, %v1619_v17  ;;  %v7411_v17 = vld [vmem:[%s6812_s9 + $0x38] sm:$0xff] }
 0x634   :  { %v7371_v39 = vpop.eup %6369  ;;  %6379 = vpow2.f32 %v1672_v5  ;;  %v5087_v5 = vld [vmem:[%s6762_s1 + $0x20] sm:$0xff]  ;;  %s4956_s1 = sld [smem:[%s8776_s0 + %s6655_s28]]  }
 0x635   :  { %v1666_v3 = vmul.f32 1.442695, %v1640_v12  ;;  %1692 = vadd.xlane.f32.xlu1 %v7371_v39 }
 0x636   :  { %v1623_v38 = vpop.xlane.xlu0 %1622 }
 0x637   :  { %6381 = vpow2.f32 %v1666_v3  ;;  %v1642_v30 = vsub.f32 %v7292_v61, %v1623_v38 }
 0x638   :  { %v7375_v37 = vpop.eup %6371  ;;  %6383 = vpow2.f32 %v1676_v31 }
 0x639   :  { %v1670_v6 = vmul.f32 1.442695, %v1642_v30  ;;  %1690 = vadd.xlane.f32.xlu0 %v7375_v37 }
 0x63a   :  { %v1627_v56 = vpop.xlane.xlu0 %1626 }
 0x63b   :  { %6385 = vpow2.f32 %v1670_v6  ;;  %v1644_v18 = vsub.f32 %v7299_v42, %v1627_v56 }
 0x63c   :  { %v7379_v44 = vpop.eup %6373 }
 0x63d   :  { %v1674_v22 = vmul.f32 1.442695, %v1644_v18  ;;  %1696 = vadd.xlane.f32.xlu1 %v7379_v44  ;;  %v7382_v48 = vpop.eup %6375 }
 0x63f   :  { %6387 = vpow2.f32 %v1674_v22 }
 0x640   :  { %v7384_v61 = vpop.eup %6377 }
 0x641   :  { %1700 = vadd.xlane.f32.xlu1 %v7382_v48  ;;  %1694 = vadd.xlane.f32.xlu0 %v7384_v61  ;;  %v7388_v34 = vpop.eup %6379 }
 0x644   :  { %v7390_v19 = vpop.eup %6381 }
 0x645   :  { %1704 = vadd.xlane.f32.xlu1 %v7388_v34  ;;  %1698 = vadd.xlane.f32.xlu0 %v7390_v19  ;;  %v7394_v42 = vpop.eup %6383 }
 0x648   :  { %v7396_v63 = vpop.eup %6385 }
 0x649   :  { %1708 = vadd.xlane.f32.xlu1 %v7394_v42  ;;  %1702 = vadd.xlane.f32.xlu0 %v7396_v63 }
 0x64c   :  { %v7400_v28 = vpop.eup %6387 }
 0x64d   :  { %1706 = vadd.xlane.f32.xlu0 %v7400_v28 }
 0x6a8   :  { %v1681_v47 = vpop.xlane.xlu1 %1680 }
 0x6a9   :  { %6389 = vrcp.f32 %v1681_v47 }
 0x6aa   :  { %v1679_v16 = vpop.xlane.xlu0 %1678 }
 0x6ab   :  { %6391 = vrcp.f32 %v1679_v16 }
 0x6ae   :  { %v1685_v60 = vpop.xlane.xlu1 %1684 }
 0x6af   :  { %6393 = vrcp.f32 %v1685_v60 }
 0x6b2   :  { %v1683_v25 = vpop.xlane.xlu0 %1682 }
 0x6b3   :  { %6395 = vrcp.f32 %v1683_v25 }
 0x6b6   :  { %v6390_v50 = vpop.eup %6389  ;;  %v1689_v10 = vpop.xlane.xlu1 %1688 }
 0x6b7   :  { %6397 = vrcp.f32 %v1689_v10  ;;  %v1727_v49 = vmul.f32 %v6390_v50, %v7344_v43 }
 0x6b8   :  { %v6392_v29 = vpop.eup %6391 }
 0x6b9   :  { %v1726_v24 = vmul.f32 %v6392_v29, %v7348_v53 }
 0x6ba   :  { %v1687_v40 = vpop.xlane.xlu0 %1686 }
 0x6bb   :  { %6399 = vrcp.f32 %v1687_v40  ;;  %5918 = vmatprep.mubr.f32.mxu0 %v1726_v24 }
 0x6bc   :  { %5919 = vmatmul.mubr.f32.vlgmr.msra.gmra.mxu0 %v1727_v49  ;;  %v6394_v46 = vpop.eup %6393 }
 0x6bd   :  { %5943 = vmatpush3.msra.mxu0 %v5090_v54  ;;  %v1729_v12 = vmul.f32 %v6394_v46, %v7352_v4 }
 0x6be   :  { %5944 = vmatprep.subr.mxu0 %v5089_v45  ;;  %v1693_v36 = vpop.xlane.xlu1 %1692 }
 0x6bf   :  { %5945 = vmatpush3.msra.mxu0 %v5089_v45  ;;  %6401 = vrcp.f32 %v1693_v36 }
 0x6c0   :  { %v6396_v35 = vpop.eup %6395  ;;  %5946 = vmatprep.subr.mxu0 %v5088_v41 }
 0x6c1   :  { %v1728_v53 = vmul.f32 %v6396_v35, %v7356_v7  ;;  %5947 = vmatpush3.msra.mxu0 %v5088_v41 }
 0x6c2   :  { %v1691_v43 = vpop.xlane.xlu0 %1690  ;;  %5948 = vmatprep.subr.mxu0 %v5087_v5 }
 0x6c3   :  { %6403 = vrcp.f32 %v1691_v43  ;;  %5921 = vmatprep.mubr.f32.mxu0 %v1728_v53  ;;  %5949 = vmatpush3.msra.mxu0 %v5087_v5 }
 0x6c4   :  { %5922 = vmatmul.mubr.f32.gmra.mxu0 %v1729_v12  ;;  %6006 = vmatprep.subr.mxu0 %v7411_v17  ;;  %v6398_v31 = vpop.eup %6397 }
 0x6c5   :  { %v1731_v56 = vmul.f32 %v6398_v31, %v7361_v57 }
 0x6c6   :  { %v1697_v3 = vpop.xlane.xlu1 %1696 }
 0x6c7   :  { %6405 = vrcp.f32 %v1697_v3 }
 0x6c8   :  { %v6400_v38 = vpop.eup %6399 }
 0x6c9   :  { %v1730_v30 = vmul.f32 %v6400_v38, %v7366_v62 }
 0x6ca   :  { %v1701_v7 = vpop.xlane.xlu1 %1700  ;;  %v1695_v6 = vpop.xlane.xlu0 %1694 }
 0x6cb   :  { %5924 = vmatprep.mubr.f32.mxu0 %v1730_v30  ;;  %6407 = vrcp.f32 %v1695_v6 }
 0x6cc   :  { %5925 = vmatmul.mubr.f32.gmra.mxu0 %v1731_v56  ;;  %v6402_v22 = vpop.eup %6401  ;;  %6409 = vrcp.f32 %v1701_v7 }
 0x6cd   :  { %v1733_v60 = vmul.f32 %v6402_v22, %v7371_v39 }
 0x6ce   :  { %v1705_v4 = vpop.xlane.xlu1 %1704  ;;  %v1699_v18 = vpop.xlane.xlu0 %1698 }
 0x6cf   :  { %6411 = vrcp.f32 %v1699_v18 }
 0x6d0   :  { %v6404_v54 = vpop.eup %6403  ;;  %6413 = vrcp.f32 %v1705_v4 }
 0x6d1   :  { %v1732_v47 = vmul.f32 %v6404_v54, %v7375_v37  ;;  %v5092_v54 = vld [vmem:[%s6970_s17 + $0x1] ss:$0 sm:$0xff]  ;;  %s4959_s17 = sld [smem:[%s8776_s0 + %s6659_s14]]  }
 0x6d2   :  { %v1703_v16 = vpop.xlane.xlu0 %1702  ;;  %v1709_v62 = vpop.xlane.xlu1 %1708 }
 0x6d3   :  { %5927 = vmatprep.mubr.f32.mxu0 %v1732_v47  ;;  %6415 = vrcp.f32 %v1703_v16 }
 0x6d4   :  { %5928 = vmatmul.mubr.f32.gmra.mxu0 %v1733_v60  ;;  %6417 = vrcp.f32 %v1709_v62  ;;  %v6406_v25 = vpop.eup %6405 }
 0x6d5   :  { %v1735_v29 = vmul.f32 %v6406_v25, %v7379_v44 }
 0x6d6   :  { %v1707_v57 = vpop.xlane.xlu0 %1706 }
 0x6d7   :  { %6419 = vrcp.f32 %v1707_v57  ;;  %v1887_v57 = vld [vmem:[%s7498_s3] sm:$0xff] }
 0x6d8   :  { %v6408_v50 = vpop.eup %6407 }
 0x6d9   :  { %v1734_v10 = vmul.f32 %v6408_v50, %v7384_v61  ;;  %v6410_v24 = vpop.eup %6409 }
 0x6da   :  { %v1737_v40 = vmul.f32 %v6410_v24, %v7382_v48 }
 0x6db   :  { %5930 = vmatprep.mubr.f32.mxu0 %v1734_v10 }
 0x6dc   :  { %v6412_v37 = vpop.eup %6411  ;;  %5931 = vmatmul.mubr.f32.gmra.mxu0 %v1735_v29 }
 0x6dd   :  { %v1736_v39 = vmul.f32 %v6412_v37, %v7390_v19  ;;  %v6414_v49 = vpop.eup %6413  ;;  %v5133_v19 = vld [vmem:[%s6812_s9 + $0x30] sm:$0xff] }
 0x6de   :  { %v1739_v61 = vmul.f32 %v6414_v49, %v7388_v34  ;;  %v5132_v34 = vld [vmem:[%s6812_s9 + $0x28] sm:$0xff] }
 0x6df   :  { %5933 = vmatprep.mubr.f32.mxu0 %v1736_v39 }
 0x6e0   :  { %v6416_v45 = vpop.eup %6415  ;;  %5934 = vmatmul.mubr.f32.gmra.mxu0 %v1737_v40 }
 0x6e1   :  { %v1738_v41 = vmul.f32 %v6416_v45, %v7396_v63  ;;  %v6418_v46 = vpop.eup %6417  ;;  %v5131_v63 = vld [vmem:[%s6812_s9 + $0x20] sm:$0xff]  ;;  %s4958_s9 = sld [smem:[%s8776_s0 + %s6657_s6]]  }
 0x6e2   :  { %v1741_v48 = vmul.f32 %v6418_v46, %v7394_v42  ;;  %v1888_v42 = vld [vmem:[%s7498_s3 + $0x8] sm:$0xff] }
 0x6e3   :  { %5936 = vmatprep.mubr.f32.mxu0 %v1738_v41  ;;  %6178 = vmatprep.subr.mxu1 %v1888_v42 }
 0x6e4   :  { %v6420_v44 = vpop.eup %6419  ;;  %5937 = vmatmul.mubr.f32.gmra.mxu0 %v1739_v61 }
 0x6e5   :  { %v1740_v36 = vmul.f32 %v6420_v44, %v7400_v28 }
 0x6e7   :  { %5939 = vmatprep.mubr.f32.mxu0 %v1740_v36 }
 0x6e8   :  { %5940 = vmatmul.mubr.f32.gmra.mxu0 %v1741_v48 }
 0x6e9   :  { %5950 = vmatprep.mubr.msk.f32.mxu0 %vm338_vm6, %v6822_v51 }
 0x6ec   :  { %5951 = vmatmul.mubr.msk.f32.vlgmr.msra.gmra.mxu0 %vm338_vm6, %v6824_v52 }
 0x6ed   :  { %5953 = vmatprep.mubr.msk.f32.mxu0 %vm338_vm6, %v6837_v58  ;;  %6007 = vmatpush3.msra.mxu0 %v7411_v17 }
 0x6ee   :  { %6008 = vmatprep.subr.mxu0 %v5133_v19 }
 0x6ef   :  { %6009 = vmatpush3.msra.mxu0 %v5133_v19 }
 0x6f0   :  { %5954 = vmatmul.mubr.msk.f32.gmra.mxu0 %vm338_vm6, %v6839_v59  ;;  %6010 = vmatprep.subr.mxu0 %v5132_v34 }
 0x6f1   :  { %5956 = vmatprep.mubr.msk.f32.mxu0 %vm338_vm6, %v6852_v1  ;;  %6011 = vmatpush3.msra.mxu0 %v5132_v34 }
 0x6f2   :  { %6012 = vmatprep.subr.mxu0 %v5131_v63 }
 0x6f3   :  { %6013 = vmatpush3.msra.mxu0 %v5131_v63 }
 0x6f4   :  { %5957 = vmatmul.mubr.msk.f32.gmra.mxu0 %vm338_vm6, %v6854_v2 }
 0x6f5   :  { %5959 = vmatprep.mubr.msk.f32.mxu0 %vm338_vm6, %v6867_v8 }
 0x6f8   :  { %5960 = vmatmul.mubr.msk.f32.gmra.mxu0 %vm338_vm6, %v6869_v9 }
 0x6f9   :  { %5962 = vmatprep.mubr.msk.f32.mxu0 %vm338_vm6, %v6881_v14 }
 0x6fc   :  { %5963 = vmatmul.mubr.msk.f32.gmra.mxu0 %vm338_vm6, %v6883_v15 }
 0x6fd   :  { %5965 = vmatprep.mubr.msk.f32.mxu0 %vm338_vm6, %v6895_v20 }
 0x700   :  { %5966 = vmatmul.mubr.msk.f32.gmra.mxu0 %vm338_vm6, %v6897_v21 }
 0x701   :  { %5968 = vmatprep.mubr.msk.f32.mxu0 %vm338_vm6, %v6909_v26 }
 0x704   :  { %5969 = vmatmul.mubr.msk.f32.gmra.mxu0 %vm338_vm6, %v6911_v27 }
 0x705   :  { %5971 = vmatprep.mubr.msk.f32.mxu0 %vm338_vm6, %v6923_v32 }
 0x708   :  { %5972 = vmatmul.mubr.msk.f32.gmra.mxu0 %vm338_vm6, %v6925_v33 }
 0x709   :  { %6014 = vmatprep.mubr.msk.f32.mxu0 %vm338_vm6, %v6822_v51 }
 0x70c   :  { %6015 = vmatmul.mubr.msk.f32.vlgmr.msra.gmra.mxu0 %vm338_vm6, %v6824_v52 }
 0x70d   :  { %6017 = vmatprep.mubr.msk.f32.mxu0 %vm338_vm6, %v6837_v58 }
 0x710   :  { %6018 = vmatmul.mubr.msk.f32.gmra.mxu0 %vm338_vm6, %v6839_v59 }
 0x711   :  { %6020 = vmatprep.mubr.msk.f32.mxu0 %vm338_vm6, %v6852_v1 }
 0x714   :  { %6021 = vmatmul.mubr.msk.f32.gmra.mxu0 %vm338_vm6, %v6854_v2 }
 0x715   :  { %6023 = vmatprep.mubr.msk.f32.mxu0 %vm338_vm6, %v6867_v8 }
 0x718   :  { %6024 = vmatmul.mubr.msk.f32.gmra.mxu0 %vm338_vm6, %v6869_v9 }
 0x719   :  { %6026 = vmatprep.mubr.msk.f32.mxu0 %vm338_vm6, %v6881_v14 }
 0x71c   :  { %6027 = vmatmul.mubr.msk.f32.gmra.mxu0 %vm338_vm6, %v6883_v15 }
 0x71d   :  { %6029 = vmatprep.mubr.msk.f32.mxu0 %vm338_vm6, %v6895_v20 }
 0x720   :  { %6030 = vmatmul.mubr.msk.f32.gmra.mxu0 %vm338_vm6, %v6897_v21 }
 0x721   :  { %6032 = vmatprep.mubr.msk.f32.mxu0 %vm338_vm6, %v6909_v26 }
 0x724   :  { %6033 = vmatmul.mubr.msk.f32.gmra.mxu0 %vm338_vm6, %v6911_v27 }
 0x725   :  { %6035 = vmatprep.mubr.msk.f32.mxu0 %vm338_vm6, %v6923_v32 }
 0x728   :  { %6036 = vmatmul.mubr.msk.f32.gmra.mxu0 %vm338_vm6, %v6925_v33 }
 0x77c   :  { %v7501_v28 = vpop.f32.mrf.mxu0 }
 0x77e   :  { %v7503_v5 = vpop.f32.mrf.mxu0 }
 0x784   :  { %v7505_v35 = vpop.f32.mrf.mxu0 }
 0x786   :  { %v7507_v53 = vpop.f32.mrf.mxu0 }
 0x78c   :  { %v7509_v17 = vpop.f32.mrf.mxu0 }
 0x78e   :  { %v7511_v43 = vpop.f32.mrf.mxu0 }
 0x794   :  { %v7513_v12 = vpop.f32.mrf.mxu0 }
 0x796   :  { %v7515_v3 = vpop.f32.mrf.mxu0 }
 0x79c   :  { %v7517_v31 = vpop.f32.mrf.mxu0 }
 0x79e   :  { %v7519_v38 = vpop.f32.mrf.mxu0 }
 0x7a0   :  { %v7521_v30 = vpop.f32.mrf.mxu0 }
 0x7a2   :  { %v7523_v7 = vpop.f32.mrf.mxu0 }
 0x7a4   :  { %v7525_v6 = vpop.f32.mrf.mxu0 }
 0x7a6   :  { %v7527_v56 = vpop.f32.mrf.mxu0 }
 0x7a8   :  { %v7529_v4 = vpop.f32.mrf.mxu0 }
 0x7aa   :  { %v7531_v18 = vpop.f32.mrf.mxu0 }
 0x7ac   :  { %v5952_v22 = vpop.f32.mrf.mxu0 }
 0x7ad   :  { %v1974_v60 = vadd.f32 %v5952_v22, %v5092_v54 }
 0x7ae   :  { %v1968_v47 = vpop.f32.mrf.mxu0 }
 0x7af   :  { %v1969_v16 = vadd.f32 %v5092_v54, %v1968_v47 }
 0x7b0   :  { %v5955_v62 = vpop.f32.mrf.mxu0 }
 0x7b1   :  { %6070 = vmatprep.mubr.msk.f32.mxu1 %vm142_vm0, %v1969_v16  ;;  %v1984_v10 = vadd.f32 %v5955_v62, %v5092_v54 }
 0x7b2   :  { %v1978_v25 = vpop.f32.mrf.mxu0  ;;  %6071 = vmatmul.mubr.msk.f32.vlgmr.msra.gmra.mxu1 %vm142_vm0, %v1974_v60 }
 0x7b3   :  { %v1979_v50 = vadd.f32 %v5092_v54, %v1978_v25  ;;  %6179 = vmatpush3.msra.mxu1 %v1888_v42 }
 0x7b4   :  { %v5958_v29 = vpop.f32.mrf.mxu0  ;;  %6180 = vmatprep.subr.mxu1 %v1887_v57 }
 0x7b5   :  { %6073 = vmatprep.mubr.msk.f32.mxu1 %vm142_vm0, %v1979_v50  ;;  %6181 = vmatpush3.msra.mxu1 %v1887_v57  ;;  %v1994_v39 = vadd.f32 %v5958_v29, %v5092_v54 }
 0x7b6   :  { %v1988_v24 = vpop.f32.mrf.mxu0  ;;  %6074 = vmatmul.mubr.msk.f32.gmra.mxu1 %vm142_vm0, %v1984_v10 }
 0x7b7   :  { %v1989_v37 = vadd.f32 %v5092_v54, %v1988_v24 }
 0x7b8   :  { %v5961_v40 = vpop.f32.mrf.mxu0 }
 0x7b9   :  { %6076 = vmatprep.mubr.msk.f32.mxu1 %vm142_vm0, %v1989_v37  ;;  %v2004_v41 = vadd.f32 %v5961_v40, %v5092_v54 }
 0x7ba   :  { %v1998_v49 = vpop.f32.mrf.mxu0  ;;  %6077 = vmatmul.mubr.msk.f32.gmra.mxu1 %vm142_vm0, %v1994_v39 }
 0x7bb   :  { %v1999_v45 = vadd.f32 %v5092_v54, %v1998_v49 }
 0x7bc   :  { %v5964_v46 = vpop.f32.mrf.mxu0 }
 0x7bd   :  { %6079 = vmatprep.mubr.msk.f32.mxu1 %vm142_vm0, %v1999_v45  ;;  %v2014_v36 = vadd.f32 %v5964_v46, %v5092_v54 }
 0x7be   :  { %v2008_v61 = vpop.f32.mrf.mxu0  ;;  %6080 = vmatmul.mubr.msk.f32.gmra.mxu1 %vm142_vm0, %v2004_v41 }
 0x7bf   :  { %v2009_v44 = vadd.f32 %v5092_v54, %v2008_v61 }
 0x7c0   :  { %v5967_v48 = vpop.f32.mrf.mxu0 }
 0x7c1   :  { %6082 = vmatprep.mubr.msk.f32.mxu1 %vm142_vm0, %v2009_v44  ;;  %v2024_v63 = vadd.f32 %v5967_v48, %v5092_v54 }
 0x7c2   :  { %v2018_v19 = vpop.f32.mrf.mxu0  ;;  %6083 = vmatmul.mubr.msk.f32.gmra.mxu1 %vm142_vm0, %v2014_v36 }
 0x7c3   :  { %v2019_v34 = vadd.f32 %v5092_v54, %v2018_v19 }
 0x7c4   :  { %v5970_v42 = vpop.f32.mrf.mxu0 }
 0x7c5   :  { %6085 = vmatprep.mubr.msk.f32.mxu1 %vm142_vm0, %v2019_v34  ;;  %v2034_v16 = vadd.f32 %v5970_v42, %v5092_v54 }
 0x7c6   :  { %v2028_v22 = vpop.f32.mrf.mxu0  ;;  %6086 = vmatmul.mubr.msk.f32.gmra.mxu1 %vm142_vm0, %v2024_v63 }
 0x7c7   :  { %v2029_v47 = vadd.f32 %v5092_v54, %v2028_v22 }
 0x7c8   :  { %v5973_v60 = vpop.f32.mrf.mxu0 }
 0x7c9   :  { %6088 = vmatprep.mubr.msk.f32.mxu1 %vm142_vm0, %v2029_v47  ;;  %v2044_v25 = vadd.f32 %v5973_v60, %v5092_v54  ;;  %v6613_v47 = vld [vmem:[%s7213_s29 + $0x8] sm:$0xff] }
 0x7ca   :  { %v2038_v62 = vpop.f32.mrf.mxu0  ;;  %6089 = vmatmul.mubr.msk.f32.gmra.mxu1 %vm142_vm0, %v2034_v16 }
 0x7cb   :  { %v2039_v57 = vadd.f32 %v5092_v54, %v2038_v62 }
 0x7cc   :  { %v7549_v50 = vpop.f32.mrf.mxu0 }
 0x7cd   :  { %6091 = vmatprep.mubr.msk.f32.mxu1 %vm142_vm0, %v2039_v57  ;;  %v6614_v57 = vld [vmem:[%s7213_s29] sm:$0xff] }
 0x7ce   :  { %v7552_v10 = vpop.f32.mrf.mxu0  ;;  %6092 = vmatmul.mubr.msk.f32.gmra.mxu1 %vm142_vm0, %v2044_v25 }
 0x7cf   :  { %6182 = vmatprep.mubr.msk.f32.mxu1 %vm142_vm0, %v7503_v5 }
 0x7d0   :  { %v7557_v29 = vpop.f32.mrf.mxu0 }
 0x7d2   :  { %v7559_v24 = vpop.f32.mrf.mxu0  ;;  %6183 = vmatmul.mubr.msk.f32.vlgmr.msra.gmra.mxu1 %vm142_vm0, %v7501_v28 }
 0x7d3   :  { %6185 = vmatprep.mubr.msk.f32.mxu1 %vm142_vm0, %v7507_v53 }
 0x7d4   :  { %v6022_v54 = vpop.f32.mrf.mxu0 }
 0x7d6   :  { %v2304_v37 = vpop.f32.mrf.mxu0  ;;  %6186 = vmatmul.mubr.msk.f32.gmra.mxu1 %vm142_vm0, %v7505_v35 }
 0x7d7   :  { %6188 = vmatprep.mubr.msk.f32.mxu1 %vm142_vm0, %v7511_v43 }
 0x7d8   :  { %v6025_v39 = vpop.f32.mrf.mxu0 }
 0x7da   :  { %v2314_v5 = vpop.f32.mrf.mxu0  ;;  %6189 = vmatmul.mubr.msk.f32.gmra.mxu1 %vm142_vm0, %v7509_v17 }
 0x7db   :  { %6191 = vmatprep.mubr.msk.f32.mxu1 %vm142_vm0, %v7515_v3 }
 0x7dc   :  { %v6028_v28 = vpop.f32.mrf.mxu0 }
 0x7de   :  { %v2324_v40 = vpop.f32.mrf.mxu0  ;;  %6192 = vmatmul.mubr.msk.f32.gmra.mxu1 %vm142_vm0, %v7513_v12  ;;  %v5136_v12 = vld [vmem:[%s7072_s25 + $0x1] ss:$0 sm:$0xff]  ;;  %s4962_s25 = sld [smem:[%s8776_s0 + %s6661_s22]]  }
 0x7df   :  { %6194 = vmatprep.mubr.msk.f32.mxu1 %vm142_vm0, %v7519_v38  ;;  %v2320_v41 = vadd.f32 %v6025_v39, %v5136_v12  ;;  %v2315_v46 = vadd.f32 %v5136_v12, %v2314_v5  ;;  %v2305_v61 = vadd.f32 %v5136_v12, %v2304_v37  ;;  %v2300_v44 = vadd.f32 %v7557_v29, %v5136_v12  ;;  %v6615_v29 = vld [vmem:[%s7213_s29 + $0x18] sm:$0xff]  ;;  %v6616_v39 = vld [vmem:[%s7213_s29 + $0x10] sm:$0xff] }
 0x7e0   :  { %v6031_v35 = vpop.f32.mrf.mxu0  ;;  %v2295_v36 = vadd.f32 %v5136_v12, %v7559_v24  ;;  %v2290_v48 = vadd.f32 %v7549_v50, %v5136_v12  ;;  %v2285_v19 = vadd.f32 %v5136_v12, %v7552_v10 }
 0x7e2   :  { %v2334_v53 = vpop.f32.mrf.mxu0  ;;  %6195 = vmatmul.mubr.msk.f32.gmra.mxu1 %vm142_vm0, %v7517_v31 }
 0x7e3   :  { %6197 = vmatprep.mubr.msk.f32.mxu1 %vm142_vm0, %v7523_v7  ;;  %v2340_v7 = vadd.f32 %v6031_v35, %v5136_v12  ;;  %v6617_v35 = vld [vmem:[%s7213_s29 + $0x28] sm:$0xff] }
 0x7e4   :  { %v6034_v17 = vpop.f32.mrf.mxu0 }
 0x7e5   :  { %v2350_v31 = vadd.f32 %v6034_v17, %v5136_v12 }
 0x7e6   :  { %v2344_v43 = vpop.f32.mrf.mxu0  ;;  %6198 = vmatmul.mubr.msk.f32.gmra.mxu1 %vm142_vm0, %v7521_v30 }
 0x7e7   :  { %6200 = vmatprep.mubr.msk.f32.mxu1 %vm142_vm0, %v7527_v56  ;;  %v2345_v30 = vadd.f32 %v5136_v12, %v2344_v43  ;;  %v2335_v56 = vadd.f32 %v5136_v12, %v2334_v53 }
 0x7e8   :  { %v6037_v3 = vpop.f32.mrf.mxu0 }
 0x7e9   :  { %v2360_v49 = vadd.f32 %v6037_v3, %v5136_v12 }
 0x7ea   :  { %v2354_v38 = vpop.f32.mrf.mxu0  ;;  %6201 = vmatmul.mubr.msk.f32.gmra.mxu1 %vm142_vm0, %v7525_v6  ;;  %v2330_v6 = vadd.f32 %v6028_v28, %v5136_v12 }
 0x7eb   :  { %v2355_v45 = vadd.f32 %v5136_v12, %v2354_v38  ;;  %6094 = vmatprep.subr.mxu0 %v2360_v49  ;;  %6203 = vmatprep.mubr.msk.f32.mxu1 %vm142_vm0, %v7531_v18  ;;  %v2325_v18 = vadd.f32 %v5136_v12, %v2324_v40 }
 0x7ec   :  { %6095 = vmatpush3.msra.mxu0 %v2360_v49 }
 0x7ed   :  { %6096 = vmatprep.subr.mxu0 %v2355_v45 }
 0x7ee   :  { %6097 = vmatpush3.msra.mxu0 %v2355_v45  ;;  %6204 = vmatmul.mubr.msk.f32.gmra.mxu1 %vm142_vm0, %v7529_v4  ;;  %v2310_v4 = vadd.f32 %v6022_v54, %v5136_v12  ;;  %v6618_v12 = vld [vmem:[%s7213_s29 + $0x20] sm:$0xff]  ;;  %v6619_v45 = vld [vmem:[%s7213_s29 + $0x38] sm:$0xff] }
 0x7ef   :  { %6098 = vmatprep.subr.mxu0 %v2350_v31 }
 0x7f0   :  { %6099 = vmatpush3.msra.mxu0 %v2350_v31 }
 0x7f1   :  { %6100 = vmatprep.subr.mxu0 %v2345_v30 }
 0x7f2   :  { %6101 = vmatpush3.msra.mxu0 %v2345_v30 }
 0x7f3   :  { %6102 = vmatprep.subr.mxu0 %v2340_v7 }
 0x7f4   :  { %6103 = vmatpush3.msra.mxu0 %v2340_v7 }
 0x7f5   :  { %6104 = vmatprep.subr.mxu0 %v2335_v56 }
 0x7f6   :  { %6105 = vmatpush3.msra.mxu0 %v2335_v56  ;;  %v6620_v56 = vld [vmem:[%s7213_s29 + $0x30] sm:$0xff] }
 0x7f7   :  { %6106 = vmatprep.subr.mxu0 %v2330_v6 }
 0x7f8   :  { %6107 = vmatpush3.msra.mxu0 %v2330_v6 }
 0x7f9   :  { %6108 = vmatprep.subr.mxu0 %v2325_v18 }
 0x7fa   :  { %6109 = vmatpush3.msra.mxu0 %v2325_v18 }
 0x7fb   :  { %6110 = vmatprep.subr.mxu0 %v2320_v41 }
 0x7fc   :  { %6111 = vmatpush3.msra.mxu0 %v2320_v41 }
 0x7fd   :  { %6112 = vmatprep.subr.mxu0 %v2315_v46 }
 0x7fe   :  { %6113 = vmatpush3.msra.mxu0 %v2315_v46 }
 0x7ff   :  { %6114 = vmatprep.subr.mxu0 %v2310_v4 }
 0x800   :  { %6115 = vmatpush3.msra.mxu0 %v2310_v4 }
 0x801   :  { %6116 = vmatprep.subr.mxu0 %v2305_v61 }
 0x802   :  { %6117 = vmatpush3.msra.mxu0 %v2305_v61 }
 0x803   :  { %6118 = vmatprep.subr.mxu0 %v2300_v44 }
 0x804   :  { %6119 = vmatpush3.msra.mxu0 %v2300_v44 }
 0x805   :  { %6120 = vmatprep.subr.mxu0 %v2295_v36 }
 0x806   :  { %6121 = vmatpush3.msra.mxu0 %v2295_v36 }
 0x807   :  { %6122 = vmatprep.subr.mxu0 %v2290_v48 }
 0x808   :  { %6123 = vmatpush3.msra.mxu0 %v2290_v48 }
 0x809   :  { %6124 = vmatprep.subr.mxu0 %v2285_v19 }
 0x80a   :  { %6125 = vmatpush3.msra.mxu0 %v2285_v19  ;;  %v6621_v19 = vld [vmem:[%s7213_s29 + $0x58] sm:$0xff] }
 0x872   :  { %v6072_v34 = vpop.f32.mrf.mxu1 }
 0x873   :  { %v2605_v63 = vmul.f32 0.25, %v6072_v34 }
 0x874   :  { %v2525_v42 = vpop.f32.mrf.mxu1 }
 0x875   :  { %v2604_v22 = vmul.f32 0.25, %v2525_v42  ;;  %v7597_v16 = vadd.f32 %v6613_v47, %v2605_v63 }
 0x876   :  { %v6075_v60 = vpop.f32.mrf.mxu1 }
 0x877   :  { %v2607_v62 = vmul.f32 0.25, %v6075_v60  ;;  %2638 = vmax.xlane.f32.xlu1 %v7597_v16  ;;  %v7601_v25 = vadd.f32 %v6614_v57, %v2604_v22 }
 0x878   :  { %v2535_v50 = vpop.f32.mrf.mxu1 }
 0x879   :  { %v2606_v10 = vmul.f32 0.25, %v2535_v50  ;;  %2636 = vmax.xlane.f32.xlu0 %v7601_v25  ;;  %v7605_v24 = vadd.f32 %v6615_v29, %v2607_v62 }
 0x87a   :  { %v6078_v54 = vpop.f32.mrf.mxu1 }
 0x87b   :  { %v2609_v37 = vmul.f32 0.25, %v6078_v54  ;;  %2642 = vmax.xlane.f32.xlu1 %v7605_v24  ;;  %v7609_v5 = vadd.f32 %v6616_v39, %v2606_v10 }
 0x87c   :  { %v2545_v28 = vpop.f32.mrf.mxu1 }
 0x87d   :  { %v2608_v40 = vmul.f32 0.25, %v2545_v28  ;;  %2640 = vmax.xlane.f32.xlu0 %v7609_v5  ;;  %v7613_v53 = vadd.f32 %v6617_v35, %v2609_v37 }
 0x87e   :  { %v6081_v17 = vpop.f32.mrf.mxu1 }
 0x87f   :  { %v2611_v43 = vmul.f32 0.25, %v6081_v17  ;;  %2646 = vmax.xlane.f32.xlu1 %v7613_v53  ;;  %v7617_v3 = vadd.f32 %v6618_v12, %v2608_v40 }
 0x880   :  { %v2555_v49 = vpop.f32.mrf.mxu1 }
 0x881   :  { %v2610_v38 = vmul.f32 0.25, %v2555_v49  ;;  %2644 = vmax.xlane.f32.xlu0 %v7617_v3  ;;  %v7621_v31 = vadd.f32 %v6619_v45, %v2611_v43 }
 0x882   :  { %v6084_v30 = vpop.f32.mrf.mxu1 }
 0x883   :  { %v2613_v7 = vmul.f32 0.25, %v6084_v30  ;;  %2650 = vmax.xlane.f32.xlu1 %v7621_v31  ;;  %v7625_v6 = vadd.f32 %v6620_v56, %v2610_v38 }
 0x884   :  { %v2565_v18 = vpop.f32.mrf.mxu1 }
 0x885   :  { %v2612_v41 = vmul.f32 0.25, %v2565_v18  ;;  %2648 = vmax.xlane.f32.xlu0 %v7625_v6  ;;  %v7629_v46 = vadd.f32 %v2613_v7, %v7256_v55 }
 0x886   :  { %v6087_v4 = vpop.f32.mrf.mxu1 }
 0x887   :  { %v2615_v61 = vmul.f32 0.25, %v6087_v4  ;;  %2654 = vmax.xlane.f32.xlu1 %v7629_v46  ;;  %v7633_v44 = vadd.f32 %v2612_v41, %v7270_v13  ;;  %v6622_v13 = vld [vmem:[%s7213_s29 + $0x68] sm:$0xff] }
 0x888   :  { %v2575_v36 = vpop.f32.mrf.mxu1 }
 0x889   :  { %v2614_v48 = vmul.f32 0.25, %v2575_v36  ;;  %2652 = vmax.xlane.f32.xlu0 %v7633_v44  ;;  %v7637_v34 = vadd.f32 %v6621_v19, %v2615_v61 }
 0x88a   :  { %v6090_v63 = vpop.f32.mrf.mxu1 }
 0x88b   :  { %v2617_v42 = vmul.f32 0.25, %v6090_v63  ;;  %2658 = vmax.xlane.f32.xlu1 %v7637_v34  ;;  %v7641_v55 = vadd.f32 %v2614_v48, %v7281_v0  ;;  %v6623_v0 = vld [vmem:[%s7213_s29 + $0x78] sm:$0xff]  ;;  %s8742_s29 = sld [smem:[%s8776_s0 + %s6662_s26]]  }
 0x88c   :  { %v2585_v22 = vpop.f32.mrf.mxu1 }
 0x88d   :  { %v2616_v47 = vmul.f32 0.25, %v2585_v22  ;;  %2656 = vmax.xlane.f32.xlu0 %v7641_v55  ;;  %v7645_v60 = vadd.f32 %v6622_v13, %v2617_v42 }
 0x88e   :  { %v6093_v62 = vpop.f32.mrf.mxu1 }
 0x88f   :  { %v2619_v57 = vmul.f32 0.25, %v6093_v62  ;;  %2662 = vmax.xlane.f32.xlu1 %v7645_v60  ;;  %v7649_v50 = vadd.f32 %v2616_v47, %v7288_v23 }
 0x890   :  { %v2595_v10 = vpop.f32.mrf.mxu1 }
 0x891   :  { %v2618_v29 = vmul.f32 0.25, %v2595_v10  ;;  %2660 = vmax.xlane.f32.xlu0 %v7649_v50  ;;  %v7653_v54 = vadd.f32 %v6623_v0, %v2619_v57 }
 0x893   :  { %2666 = vmax.xlane.f32.xlu1 %v7653_v54  ;;  %v7657_v37 = vadd.f32 %v2618_v29, %v7295_v11 }
 0x895   :  { %2664 = vmax.xlane.f32.xlu0 %v7657_v37 }
 0x900   :  { %v2639_v39 = vpop.xlane.xlu1 %2638 }
 0x901   :  { %v2669_v28 = vsub.f32 %v7597_v16, %v2639_v39 }
 0x902   :  { %v2637_v40 = vpop.xlane.xlu0 %2636 }
 0x903   :  { %v2686_v23 = vmul.f32 1.442695, %v2669_v28  ;;  %v2668_v35 = vsub.f32 %v7601_v25, %v2637_v40 }
 0x904   :  { %v2643_v17 = vpop.xlane.xlu1 %2642 }
 0x905   :  { %6421 = vpow2.f32 %v2686_v23  ;;  %v2684_v43 = vmul.f32 1.442695, %v2668_v35  ;;  %v2671_v12 = vsub.f32 %v7605_v24, %v2643_v17 }
 0x906   :  { %v2641_v49 = vpop.xlane.xlu0 %2640 }
 0x907   :  { %6423 = vpow2.f32 %v2684_v43  ;;  %v2690_v38 = vmul.f32 1.442695, %v2671_v12  ;;  %v2670_v11 = vsub.f32 %v7609_v5, %v2641_v49 }
 0x908   :  { %v2647_v45 = vpop.xlane.xlu1 %2646 }
 0x909   :  { %6425 = vpow2.f32 %v2690_v38  ;;  %v2688_v30 = vmul.f32 1.442695, %v2670_v11  ;;  %v2673_v7 = vsub.f32 %v7613_v53, %v2647_v45 }
 0x90a   :  { %v2645_v16 = vpop.xlane.xlu0 %2644 }
 0x90b   :  { %6427 = vpow2.f32 %v2688_v30  ;;  %v2694_v56 = vmul.f32 1.442695, %v2673_v7  ;;  %v2672_v25 = vsub.f32 %v7617_v3, %v2645_v16 }
 0x90c   :  { %v2651_v18 = vpop.xlane.xlu1 %2650 }
 0x90d   :  { %6429 = vpow2.f32 %v2694_v56  ;;  %v2692_v41 = vmul.f32 1.442695, %v2672_v25  ;;  %v2675_v24 = vsub.f32 %v7621_v31, %v2651_v18  ;;  %v5186_v25 = vld [vmem:[%s7498_s3 + $0x18] sm:$0xff] }
 0x90e   :  { %v2649_v4 = vpop.xlane.xlu0 %2648  ;;  %6150 = vmatprep.subr.mxu0 %v5186_v25 }
 0x90f   :  { %6431 = vpow2.f32 %v2692_v41  ;;  %v2698_v61 = vmul.f32 1.442695, %v2675_v24  ;;  %v2674_v5 = vsub.f32 %v7625_v6, %v2649_v4 }
 0x910   :  { %v2655_v36 = vpop.xlane.xlu1 %2654 }
 0x911   :  { %6433 = vpow2.f32 %v2698_v61  ;;  %v2696_v48 = vmul.f32 1.442695, %v2674_v5  ;;  %v2677_v53 = vsub.f32 %v7629_v46, %v2655_v36 }
 0x912   :  { %v7669_v19 = vpop.eup %6421  ;;  %v2653_v63 = vpop.xlane.xlu0 %2652 }
 0x913   :  { %6435 = vpow2.f32 %v2696_v48  ;;  %v2702_v3 = vmul.f32 1.442695, %v2677_v53  ;;  %v2676_v42 = vsub.f32 %v7633_v44, %v2653_v63  ;;  %2718 = vadd.xlane.f32.xlu1 %v7669_v19 }
 0x914   :  { %v7673_v31 = vpop.eup %6423  ;;  %v2659_v22 = vpop.xlane.xlu1 %2658 }
 0x915   :  { %6437 = vpow2.f32 %v2702_v3  ;;  %v2700_v47 = vmul.f32 1.442695, %v2676_v42  ;;  %v2679_v6 = vsub.f32 %v7637_v34, %v2659_v22  ;;  %2716 = vadd.xlane.f32.xlu0 %v7673_v31 }
 0x916   :  { %v7677_v13 = vpop.eup %6425  ;;  %v2657_v46 = vpop.xlane.xlu0 %2656 }
 0x917   :  { %6439 = vpow2.f32 %v2700_v47  ;;  %v2706_v62 = vmul.f32 1.442695, %v2679_v6  ;;  %v2678_v57 = vsub.f32 %v7641_v55, %v2657_v46  ;;  %2722 = vadd.xlane.f32.xlu1 %v7677_v13  ;;  %v5185_v46 = vld [vmem:[%s7498_s3 + $0x10] sm:$0xff] }
 0x918   :  { %v7681_v44 = vpop.eup %6427  ;;  %v2663_v10 = vpop.xlane.xlu1 %2662 }
 0x919   :  { %6441 = vpow2.f32 %v2706_v62  ;;  %v2704_v29 = vmul.f32 1.442695, %v2678_v57  ;;  %v2681_v0 = vsub.f32 %v7645_v60, %v2663_v10  ;;  %2720 = vadd.xlane.f32.xlu0 %v7681_v44 }
 0x91a   :  { %v7685_v34 = vpop.eup %6429  ;;  %v2661_v39 = vpop.xlane.xlu0 %2660 }
 0x91b   :  { %6443 = vpow2.f32 %v2704_v29  ;;  %v2710_v28 = vmul.f32 1.442695, %v2681_v0  ;;  %v2680_v40 = vsub.f32 %v7649_v50, %v2661_v39  ;;  %2726 = vadd.xlane.f32.xlu1 %v7685_v34 }
 0x91c   :  { %v7689_v55 = vpop.eup %6431  ;;  %v2667_v23 = vpop.xlane.xlu1 %2666 }
 0x91d   :  { %6445 = vpow2.f32 %v2710_v28  ;;  %v2708_v35 = vmul.f32 1.442695, %v2680_v40  ;;  %v2683_v17 = vsub.f32 %v7653_v54, %v2667_v23  ;;  %2724 = vadd.xlane.f32.xlu0 %v7689_v55 }
 0x91e   :  { %v7693_v60 = vpop.eup %6433  ;;  %v2665_v43 = vpop.xlane.xlu0 %2664 }
 0x91f   :  { %6447 = vpow2.f32 %v2708_v35  ;;  %v2714_v12 = vmul.f32 1.442695, %v2683_v17  ;;  %v2682_v49 = vsub.f32 %v7657_v37, %v2665_v43  ;;  %2730 = vadd.xlane.f32.xlu1 %v7693_v60 }
 0x920   :  { %v7697_v50 = vpop.eup %6435 }
 0x921   :  { %6449 = vpow2.f32 %v2714_v12  ;;  %v2712_v38 = vmul.f32 1.442695, %v2682_v49  ;;  %2728 = vadd.xlane.f32.xlu0 %v7697_v50 }
 0x922   :  { %v7700_v11 = vpop.eup %6437 }
 0x923   :  { %6451 = vpow2.f32 %v2712_v38  ;;  %2734 = vadd.xlane.f32.xlu1 %v7700_v11 }
 0x924   :  { %v7703_v54 = vpop.eup %6439 }
 0x925   :  { %2732 = vadd.xlane.f32.xlu0 %v7703_v54 }
 0x926   :  { %v7706_v45 = vpop.eup %6441 }
 0x927   :  { %2738 = vadd.xlane.f32.xlu1 %v7706_v45 }
 0x928   :  { %v7709_v37 = vpop.eup %6443 }
 0x929   :  { %2736 = vadd.xlane.f32.xlu0 %v7709_v37 }
 0x92a   :  { %v7712_v30 = vpop.eup %6445 }
 0x92b   :  { %2742 = vadd.xlane.f32.xlu1 %v7712_v30 }
 0x92c   :  { %v7715_v7 = vpop.eup %6447 }
 0x92d   :  { %2740 = vadd.xlane.f32.xlu0 %v7715_v7 }
 0x92e   :  { %v7718_v16 = vpop.eup %6449 }
 0x92f   :  { %2746 = vadd.xlane.f32.xlu1 %v7718_v16 }
 0x930   :  { %v7721_v56 = vpop.eup %6451 }
 0x931   :  { %2744 = vadd.xlane.f32.xlu0 %v7721_v56 }
 0x99c   :  { %v2719_v18 = vpop.xlane.xlu1 %2718 }
 0x99d   :  { %6453 = vrcp.f32 %v2719_v18 }
 0x99e   :  { %v2717_v41 = vpop.xlane.xlu0 %2716 }
 0x99f   :  { %6455 = vrcp.f32 %v2717_v41 }
 0x9a0   :  { %v2723_v24 = vpop.xlane.xlu1 %2722 }
 0x9a1   :  { %6457 = vrcp.f32 %v2723_v24 }
 0x9a2   :  { %v2721_v4 = vpop.xlane.xlu0 %2720 }
 0x9a3   :  { %6459 = vrcp.f32 %v2721_v4 }
 0x9a4   :  { %v2727_v61 = vpop.xlane.xlu1 %2726 }
 0x9a5   :  { %6461 = vrcp.f32 %v2727_v61 }
 0x9a6   :  { %v2725_v5 = vpop.xlane.xlu0 %2724 }
 0x9a7   :  { %6463 = vrcp.f32 %v2725_v5 }
 0x9a8   :  { %v2731_v36 = vpop.xlane.xlu1 %2730 }
 0x9a9   :  { %6465 = vrcp.f32 %v2731_v36 }
 0x9aa   :  { %v2729_v48 = vpop.xlane.xlu0 %2728  ;;  %v6454_v53 = vpop.eup %6453 }
 0x9ab   :  { %6467 = vrcp.f32 %v2729_v48  ;;  %v2765_v47 = vmul.f32 %v6454_v53, %v7669_v19 }
 0x9ac   :  { %v6456_v63 = vpop.eup %6455  ;;  %v2735_v3 = vpop.xlane.xlu1 %2734 }
 0x9ad   :  { %v2764_v42 = vmul.f32 %v6456_v63, %v7673_v31  ;;  %6469 = vrcp.f32 %v2735_v3 }
 0x9ae   :  { %v2733_v22 = vpop.xlane.xlu0 %2732  ;;  %v6458_v6 = vpop.eup %6457 }
 0x9af   :  { %6471 = vrcp.f32 %v2733_v22  ;;  %6126 = vmatprep.mubr.f32.mxu0 %v2764_v42  ;;  %v2767_v0 = vmul.f32 %v6458_v6, %v7677_v13 }
 0x9b0   :  { %v6460_v62 = vpop.eup %6459  ;;  %v2739_v57 = vpop.xlane.xlu1 %2738  ;;  %6127 = vmatmul.mubr.f32.vlgmr.msra.gmra.mxu0 %v2765_v47 }
 0x9b1   :  { %v2766_v10 = vmul.f32 %v6460_v62, %v7681_v44  ;;  %6151 = vmatpush3.msra.mxu0 %v5186_v25  ;;  %6473 = vrcp.f32 %v2739_v57  ;;  %v6184_v57 = vpop.f32.mrf.mxu1 }
 0x9b2   :  { %v2737_v29 = vpop.xlane.xlu0 %2736  ;;  %6152 = vmatprep.subr.mxu0 %v5185_v46  ;;  %v6462_v31 = vpop.eup %6461 }
 0x9b3   :  { %6475 = vrcp.f32 %v2737_v29  ;;  %6129 = vmatprep.mubr.f32.mxu0 %v2766_v10  ;;  %6153 = vmatpush3.msra.mxu0 %v5185_v46  ;;  %v2769_v23 = vmul.f32 %v6462_v31, %v7685_v34  ;;  %v3235_v10 = vpop.f32.mrf.mxu1 }
 0x9b4   :  { %v6464_v19 = vpop.eup %6463  ;;  %v2743_v39 = vpop.xlane.xlu1 %2742  ;;  %6130 = vmatmul.mubr.f32.gmra.mxu0 %v2767_v0 }
 0x9b5   :  { %v2768_v28 = vmul.f32 %v6464_v19, %v7689_v55  ;;  %6477 = vrcp.f32 %v2743_v39  ;;  %v6187_v29 = vpop.f32.mrf.mxu1 }
 0x9b6   :  { %v2741_v40 = vpop.xlane.xlu0 %2740  ;;  %v6466_v44 = vpop.eup %6465 }
 0x9b7   :  { %6479 = vrcp.f32 %v2741_v40  ;;  %6132 = vmatprep.mubr.f32.mxu0 %v2768_v28  ;;  %v2771_v12 = vmul.f32 %v6466_v44, %v7693_v60  ;;  %v3245_v0 = vpop.f32.mrf.mxu1 }
 0x9b8   :  { %v6468_v35 = vpop.eup %6467  ;;  %v2747_v17 = vpop.xlane.xlu1 %2746  ;;  %6133 = vmatmul.mubr.f32.gmra.mxu0 %v2769_v23  ;;  %v7761_v23 = vld [vmem:[%s4950_s7] ss:$0 sm:$0xff] }
 0x9b9   :  { %v2770_v13 = vmul.f32 %v6468_v35, %v7697_v50  ;;  %6481 = vrcp.f32 %v2747_v17  ;;  %v6190_v31 = vpop.f32.mrf.mxu1 }
 0x9ba   :  { %v2745_v43 = vpop.xlane.xlu0 %2744  ;;  %v6470_v49 = vpop.eup %6469 }
 0x9bb   :  { %6483 = vrcp.f32 %v2745_v43  ;;  %6135 = vmatprep.mubr.f32.mxu0 %v2770_v13  ;;  %v2773_v34 = vmul.f32 %v6470_v49, %v7700_v11  ;;  %v3255_v19 = vpop.f32.mrf.mxu1 }
 0x9bc   :  { %v6472_v55 = vpop.eup %6471  ;;  %6136 = vmatmul.mubr.f32.gmra.mxu0 %v2771_v12 }
 0x9bd   :  { %v2772_v38 = vmul.f32 %v6472_v55, %v7703_v54  ;;  %v6193_v39 = vpop.f32.mrf.mxu1 }
 0x9be   :  { %v6474_v25 = vpop.eup %6473 }
 0x9bf   :  { %6138 = vmatprep.mubr.f32.mxu0 %v2772_v38  ;;  %v2775_v50 = vmul.f32 %v6474_v25, %v7706_v45  ;;  %v3265_v28 = vpop.f32.mrf.mxu1 }
 0x9c0   :  { %v6476_v18 = vpop.eup %6475  ;;  %6139 = vmatmul.mubr.f32.gmra.mxu0 %v2773_v34 }
 0x9c1   :  { %v2774_v41 = vmul.f32 %v6476_v18, %v7709_v37  ;;  %v6196_v35 = vpop.f32.mrf.mxu1 }
 0x9c2   :  { %v6478_v24 = vpop.eup %6477 }
 0x9c3   :  { %6141 = vmatprep.mubr.f32.mxu0 %v2774_v41  ;;  %v2777_v61 = vmul.f32 %v6478_v24, %v7712_v30  ;;  %v3275_v34 = vpop.f32.mrf.mxu1 }
 0x9c4   :  { %v6480_v60 = vpop.eup %6479  ;;  %6142 = vmatmul.mubr.f32.gmra.mxu0 %v2775_v50 }
 0x9c5   :  { %v2776_v4 = vmul.f32 %v6480_v60, %v7715_v7 }
 0x9c6   :  { %v6482_v5 = vpop.eup %6481 }
 0x9c7   :  { %6144 = vmatprep.mubr.f32.mxu0 %v2776_v4  ;;  %v2779_v36 = vmul.f32 %v6482_v5, %v7718_v16 }
 0x9c8   :  { %v6484_v54 = vpop.eup %6483  ;;  %6145 = vmatmul.mubr.f32.gmra.mxu0 %v2777_v61 }
 0x9c9   :  { %v2778_v11 = vmul.f32 %v6484_v54, %v7721_v56  ;;  %v6199_v54 = vpop.f32.mrf.mxu1 }
 0x9cb   :  { %6147 = vmatprep.mubr.f32.mxu0 %v2778_v11 }
 0x9cc   :  { %6148 = vmatmul.mubr.f32.gmra.mxu0 %v2779_v36 }
 0xa70   :  { %v6128_v37 = vpop.f32.mrf.mxu0 }
 0xa72   :  { %v2846_v45 = vpop.f32.mrf.mxu0 }
 0xa73   :  { %6154 = vmatprep.mubr.msk.f32.mxu0 %vm142_vm0, %v2846_v45 }
 0xa74   :  { %v6131_v48 = vpop.f32.mrf.mxu0  ;;  %6155 = vmatmul.mubr.msk.f32.vlgmr.msra.gmra.mxu0 %vm142_vm0, %v6128_v37 }
 0xa76   :  { %v2856_v7 = vpop.f32.mrf.mxu0 }
 0xa77   :  { %6157 = vmatprep.mubr.msk.f32.mxu0 %vm142_vm0, %v2856_v7 }
 0xa78   :  { %v6134_v30 = vpop.f32.mrf.mxu0  ;;  %6158 = vmatmul.mubr.msk.f32.gmra.mxu0 %vm142_vm0, %v6131_v48 }
 0xa7a   :  { %v2866_v53 = vpop.f32.mrf.mxu0 }
 0xa7b   :  { %6160 = vmatprep.mubr.msk.f32.mxu0 %vm142_vm0, %v2866_v53 }
 0xa7c   :  { %v6137_v56 = vpop.f32.mrf.mxu0  ;;  %6161 = vmatmul.mubr.msk.f32.gmra.mxu0 %vm142_vm0, %v6134_v30 }
 0xa7e   :  { %v2876_v16 = vpop.f32.mrf.mxu0 }
 0xa7f   :  { %6163 = vmatprep.mubr.msk.f32.mxu0 %vm142_vm0, %v2876_v16 }
 0xa80   :  { %v6140_v63 = vpop.f32.mrf.mxu0  ;;  %6164 = vmatmul.mubr.msk.f32.gmra.mxu0 %vm142_vm0, %v6137_v56  ;;  %v3285_v56 = vpop.f32.mrf.mxu1 }
 0xa82   :  { %v2886_v3 = vpop.f32.mrf.mxu0 }
 0xa83   :  { %6166 = vmatprep.mubr.msk.f32.mxu0 %vm142_vm0, %v2886_v3 }
 0xa84   :  { %v6143_v42 = vpop.f32.mrf.mxu0  ;;  %6167 = vmatmul.mubr.msk.f32.gmra.mxu0 %vm142_vm0, %v6140_v63 }
 0xa86   :  { %v2896_v22 = vpop.f32.mrf.mxu0 }
 0xa87   :  { %6169 = vmatprep.mubr.msk.f32.mxu0 %vm142_vm0, %v2896_v22 }
 0xa88   :  { %v6146_v47 = vpop.f32.mrf.mxu0  ;;  %6170 = vmatmul.mubr.msk.f32.gmra.mxu0 %vm142_vm0, %v6143_v42 }
 0xa8a   :  { %v2906_v6 = vpop.f32.mrf.mxu0 }
 0xa8b   :  { %6172 = vmatprep.mubr.msk.f32.mxu0 %vm142_vm0, %v2906_v6 }
 0xa8c   :  { %v6149_v46 = vpop.f32.mrf.mxu0  ;;  %6173 = vmatmul.mubr.msk.f32.gmra.mxu0 %vm142_vm0, %v6146_v47 }
 0xa8e   :  { %v2916_v62 = vpop.f32.mrf.mxu0 }
 0xa8f   :  { %6175 = vmatprep.mubr.msk.f32.mxu0 %vm142_vm0, %v2916_v62  ;;  %v6202_v62 = vpop.f32.mrf.mxu1 }
 0xa90   :  { %6176 = vmatmul.mubr.msk.f32.gmra.mxu0 %vm142_vm0, %v6149_v46 }
 0xb34   :  { %v6156_v40 = vpop.f32.mrf.mxu0 }
 0xb35   :  { %v3241_v44 = vadd.f32 %v6184_v57, %v6156_v40  ;;  %v3295_v40 = vpop.f32.mrf.mxu1 }
 0xb36   :  { %v3042_v17 = vpop.f32.mrf.mxu0 }
 0xb37   :  { %v3322_v13 = vadd.f32 %v7761_v23, %v3241_v44  ;;  %v3236_v43 = vadd.f32 %v3235_v10, %v3042_v17 }
 0xb38   :  { %v6159_v12 = vpop.f32.mrf.mxu0 }
 0xb39   :  { %v3321_v49 = vadd.f32 %v7761_v23, %v3236_v43  ;;  %v3251_v55 = vadd.f32 %v6187_v29, %v6159_v12  ;;  %v7766_v38 = vadd.f32 %v3322_v13, %v6824_v52 }
 0xb3a   :  { %v3052_v25 = vpop.f32.mrf.mxu0 }
 0xb3b   :  { %v3324_v18 = vadd.f32 %v7761_v23, %v3251_v55  ;;  %v3246_v41 = vadd.f32 %v3245_v0, %v3052_v25  ;;  %v3358_v50 = vsel %vm338_vm6, %v7766_v38, 0.0  ;;  %v7772_v24 = vadd.f32 %v3321_v49, %v6822_v51 }
 0xb3c   :  { %3359 = vadd.xlane.f32.xlu1 %v3358_v50  ;;  %v6162_v60 = vpop.f32.mrf.mxu0 }
 0xb3d   :  { %v3323_v4 = vadd.f32 %v7761_v23, %v3246_v41  ;;  %v3261_v61 = vadd.f32 %v6190_v31, %v6162_v60  ;;  %v3355_v52 = vsel %vm338_vm6, %v7772_v24, 0.0  ;;  %v7778_v5 = vadd.f32 %v3324_v18, %v6839_v59 }
 0xb3e   :  { %3356 = vadd.xlane.f32.xlu0 %v3355_v52  ;;  %v3062_v11 = vpop.f32.mrf.mxu0 }
 0xb3f   :  { %v3326_v36 = vadd.f32 %v7761_v23, %v3261_v61  ;;  %v3256_v37 = vadd.f32 %v3255_v19, %v3062_v11  ;;  %v3364_v51 = vsel %vm338_vm6, %v7778_v5, 0.0  ;;  %v7784_v45 = vadd.f32 %v3323_v4, %v6837_v58 }
 0xb40   :  { %3365 = vadd.xlane.f32.xlu1 %v3364_v51  ;;  %v6165_v48 = vpop.f32.mrf.mxu0 }
 0xb41   :  { %v3325_v7 = vadd.f32 %v7761_v23, %v3256_v37  ;;  %v3271_v30 = vadd.f32 %v6193_v39, %v6165_v48  ;;  %v3361_v59 = vsel %vm338_vm6, %v7784_v45, 0.0  ;;  %v7790_v53 = vadd.f32 %v3326_v36, %v6854_v2 }
 0xb42   :  { %3362 = vadd.xlane.f32.xlu0 %v3361_v59  ;;  %v3072_v16 = vpop.f32.mrf.mxu0 }
 0xb43   :  { %v3328_v63 = vadd.f32 %v7761_v23, %v3271_v30  ;;  %v3266_v3 = vadd.f32 %v3265_v28, %v3072_v16  ;;  %v3370_v58 = vsel %vm338_vm6, %v7790_v53, 0.0  ;;  %v7796_v42 = vadd.f32 %v3325_v7, %v6852_v1 }
 0xb44   :  { %3371 = vadd.xlane.f32.xlu1 %v3370_v58  ;;  %v6168_v22 = vpop.f32.mrf.mxu0 }
 0xb45   :  { %v3327_v47 = vadd.f32 %v7761_v23, %v3266_v3  ;;  %v3281_v6 = vadd.f32 %v6196_v35, %v6168_v22  ;;  %v3367_v2 = vsel %vm338_vm6, %v7796_v42, 0.0  ;;  %v7802_v46 = vadd.f32 %v3328_v63, %v6869_v9 }
 0xb46   :  { %3368 = vadd.xlane.f32.xlu0 %v3367_v2  ;;  %v3082_v57 = vpop.f32.mrf.mxu0 }
 0xb47   :  { %v3330_v10 = vadd.f32 %v7761_v23, %v3281_v6  ;;  %v3276_v29 = vadd.f32 %v3275_v34, %v3082_v57  ;;  %v3376_v1 = vsel %vm338_vm6, %v7802_v46, 0.0  ;;  %v7808_v0 = vadd.f32 %v3327_v47, %v6867_v8  ;;  %v6205_v34 = vpop.f32.mrf.mxu1 }
 0xb48   :  { %3377 = vadd.xlane.f32.xlu1 %v3376_v1  ;;  %v6171_v31 = vpop.f32.mrf.mxu0 }
 0xb49   :  { %v3329_v19 = vadd.f32 %v7761_v23, %v3276_v29  ;;  %v3291_v39 = vadd.f32 %v6199_v54, %v6171_v31  ;;  %v3373_v9 = vsel %vm338_vm6, %v7808_v0, 0.0  ;;  %v7814_v28 = vadd.f32 %v3330_v10, %v6883_v15  ;;  %v3305_v54 = vpop.f32.mrf.mxu1 }
 0xb4a   :  { %3374 = vadd.xlane.f32.xlu0 %v3373_v9  ;;  %v3092_v44 = vpop.f32.mrf.mxu0 }
 0xb4b   :  { %v3332_v35 = vadd.f32 %v7761_v23, %v3291_v39  ;;  %v3286_v17 = vadd.f32 %v3285_v56, %v3092_v44  ;;  %v3382_v8 = vsel %vm338_vm6, %v7814_v28, 0.0  ;;  %v7820_v13 = vadd.f32 %v3329_v19, %v6881_v14 }
 0xb4c   :  { %3383 = vadd.xlane.f32.xlu1 %v3382_v8  ;;  %v6174_v43 = vpop.f32.mrf.mxu0 }
 0xb4d   :  { %v3331_v12 = vadd.f32 %v7761_v23, %v3286_v17  ;;  %v3301_v49 = vadd.f32 %v6202_v62, %v6174_v43  ;;  %v3379_v15 = vsel %vm338_vm6, %v7820_v13, 0.0  ;;  %v7826_v55 = vadd.f32 %v3332_v35, %v6897_v21 }
 0xb4e   :  { %3380 = vadd.xlane.f32.xlu0 %v3379_v15  ;;  %v3102_v25 = vpop.f32.mrf.mxu0 }
 0xb4f   :  { %v3334_v18 = vadd.f32 %v7761_v23, %v3301_v49  ;;  %v3296_v41 = vadd.f32 %v3295_v40, %v3102_v25  ;;  %v3388_v14 = vsel %vm338_vm6, %v7826_v55, 0.0  ;;  %v7832_v50 = vadd.f32 %v3331_v12, %v6895_v20 }
 0xb50   :  { %3389 = vadd.xlane.f32.xlu1 %v3388_v14  ;;  %v6177_v60 = vpop.f32.mrf.mxu0 }
 0xb51   :  { %v3333_v4 = vadd.f32 %v7761_v23, %v3296_v41  ;;  %v3311_v61 = vadd.f32 %v6205_v34, %v6177_v60  ;;  %v3385_v21 = vsel %vm338_vm6, %v7832_v50, 0.0  ;;  %v7838_v52 = vadd.f32 %v3334_v18, %v6911_v27 }
 0xb52   :  { %3386 = vadd.xlane.f32.xlu0 %v3385_v21  ;;  %v3112_v11 = vpop.f32.mrf.mxu0 }
 0xb53   :  { %v3336_v36 = vadd.f32 %v7761_v23, %v3311_v61  ;;  %v3306_v37 = vadd.f32 %v3305_v54, %v3112_v11  ;;  %v3394_v20 = vsel %vm338_vm6, %v7838_v52, 0.0  ;;  %v7844_v51 = vadd.f32 %v3333_v4, %v6909_v26 }
 0xb54   :  { %3395 = vadd.xlane.f32.xlu1 %v3394_v20 }
 0xb55   :  { %v3335_v48 = vadd.f32 %v7761_v23, %v3306_v37  ;;  %v3391_v7 = vsel %vm338_vm6, %v7844_v51, 0.0  ;;  %v7850_v27 = vadd.f32 %v3336_v36, %v6925_v33  ;;  %v3611_v33 = vld [vmem:[%s7862_s11 + $0x18] sm:$0xff] }
 0xb56   :  { %3392 = vadd.xlane.f32.xlu0 %v3391_v7  ;;  %6206 = vmatprep.subr.mxu0 %v3611_v33 }
 0xb57   :  { %v3400_v30 = vsel %vm338_vm6, %v7850_v27, 0.0  ;;  %v7855_v59 = vadd.f32 %v3335_v48, %v6923_v32  ;;  %6207 = vmatpush3.msra.mxu0 %v3611_v33 }
 0xb58   :  { %3401 = vadd.xlane.f32.xlu1 %v3400_v30 }
 0xb59   :  { %v3397_v26 = vsel %vm338_vm6, %v7855_v59, 0.0 }
 0xb5a   :  { %3398 = vadd.xlane.f32.xlu0 %v3397_v26 }
 0xbc5   :  { %v3360_v23 = vpop.xlane.xlu1 %3359 }
 0xbc6   :  { %v3405_v56 = vmul.f32 0.03125, %v3360_v23 }
 0xbc7   :  { %v3357_v16 = vpop.xlane.xlu0 %3356 }
 0xbc8   :  { %v7866_v32 = vsub.f32 %v7766_v38, %v3405_v56  ;;  %v3404_v63 = vmul.f32 0.03125, %v3357_v16 }
 0xbc9   :  { %v3366_v3 = vpop.xlane.xlu1 %3365 }
 0xbca   :  { %v7869_v58 = vsub.f32 %v7772_v24, %v3404_v63  ;;  %v3407_v22 = vmul.f32 0.03125, %v3366_v3  ;;  %v3437_v47 = vmul.f32 %v7866_v32, %v7866_v32 }
 0xbcb   :  { %v3363_v6 = vpop.xlane.xlu0 %3362 }
 0xbcc   :  { %v7874_v2 = vsub.f32 %v7778_v5, %v3407_v22  ;;  %v3406_v62 = vmul.f32 0.03125, %v3363_v6  ;;  %v3455_v57 = vsel %vm338_vm6, %v3437_v47, 0.0  ;;  %v3436_v38 = vmul.f32 %v7869_v58, %v7869_v58 }
 0xbcd   :  { %v3372_v10 = vpop.xlane.xlu1 %3371  ;;  %3456 = vadd.xlane.f32.xlu1 %v3455_v57 }
 0xbce   :  { %v7880_v29 = vsub.f32 %v7784_v45, %v3406_v62  ;;  %v3409_v24 = vmul.f32 0.03125, %v3372_v10  ;;  %v3452_v1 = vsel %vm338_vm6, %v3436_v38, 0.0  ;;  %v3439_v31 = vmul.f32 %v7874_v2, %v7874_v2 }
 0xbcf   :  { %v3369_v19 = vpop.xlane.xlu0 %3368  ;;  %3453 = vadd.xlane.f32.xlu0 %v3452_v1 }
 0xbd0   :  { %v7886_v5 = vsub.f32 %v7790_v53, %v3409_v24  ;;  %v3408_v39 = vmul.f32 0.03125, %v3369_v19  ;;  %v3461_v9 = vsel %vm338_vm6, %v3439_v31, 0.0  ;;  %v3438_v40 = vmul.f32 %v7880_v29, %v7880_v29 }
 0xbd1   :  { %v3378_v44 = vpop.xlane.xlu1 %3377  ;;  %3462 = vadd.xlane.f32.xlu1 %v3461_v9  ;;  %v3610_v9 = vld [vmem:[%s7862_s11 + $0x10] sm:$0xff] }
 0xbd2   :  { %v7892_v45 = vsub.f32 %v7796_v42, %v3408_v39  ;;  %v3411_v35 = vmul.f32 0.03125, %v3378_v44  ;;  %v3458_v17 = vsel %vm338_vm6, %v3438_v40, 0.0  ;;  %v3441_v8 = vmul.f32 %v7886_v5, %v7886_v5  ;;  %6208 = vmatprep.subr.mxu0 %v3610_v9  ;;  %v3608_v40 = vld [vmem:[%s7862_s11] sm:$0xff] }
 0xbd3   :  { %v3375_v43 = vpop.xlane.xlu0 %3374  ;;  %3459 = vadd.xlane.f32.xlu0 %v3458_v17  ;;  %6209 = vmatpush3.msra.mxu0 %v3610_v9 }
 0xbd4   :  { %v7898_v53 = vsub.f32 %v7802_v46, %v3411_v35  ;;  %v3410_v12 = vmul.f32 0.03125, %v3375_v43  ;;  %v3467_v49 = vsel %vm338_vm6, %v3441_v8, 0.0  ;;  %v3440_v15 = vmul.f32 %v7892_v45, %v7892_v45 }
 0xbd5   :  { %v3384_v34 = vpop.xlane.xlu1 %3383  ;;  %3468 = vadd.xlane.f32.xlu1 %v3467_v49 }
 0xbd6   :  { %v7904_v42 = vsub.f32 %v7808_v0, %v3410_v12  ;;  %v3413_v25 = vmul.f32 0.03125, %v3384_v34  ;;  %v3464_v18 = vsel %vm338_vm6, %v3440_v15, 0.0  ;;  %v3443_v41 = vmul.f32 %v7898_v53, %v7898_v53 }
 0xbd7   :  { %v3381_v14 = vpop.xlane.xlu0 %3380  ;;  %3465 = vadd.xlane.f32.xlu0 %v3464_v18 }
 0xbd8   :  { %v7910_v46 = vsub.f32 %v7814_v28, %v3413_v25  ;;  %v3412_v60 = vmul.f32 0.03125, %v3381_v14  ;;  %v3473_v4 = vsel %vm338_vm6, %v3443_v41, 0.0  ;;  %v3442_v61 = vmul.f32 %v7904_v42, %v7904_v42 }
 0xbd9   :  { %v3390_v21 = vpop.xlane.xlu1 %3389  ;;  %3474 = vadd.xlane.f32.xlu1 %v3473_v4 }
 0xbda   :  { %v7916_v0 = vsub.f32 %v7820_v13, %v3412_v60  ;;  %v3415_v54 = vmul.f32 0.03125, %v3390_v21  ;;  %v3470_v11 = vsel %vm338_vm6, %v3442_v61, 0.0  ;;  %v3445_v36 = vmul.f32 %v7910_v46, %v7910_v46 }
 0xbdb   :  { %v3387_v37 = vpop.xlane.xlu0 %3386  ;;  %3471 = vadd.xlane.f32.xlu0 %v3470_v11 }
 0xbdc   :  { %v7922_v28 = vsub.f32 %v7826_v55, %v3415_v54  ;;  %v3414_v20 = vmul.f32 0.03125, %v3387_v37  ;;  %v3479_v48 = vsel %vm338_vm6, %v3445_v36, 0.0  ;;  %v3444_v7 = vmul.f32 %v7916_v0, %v7916_v0 }
 0xbdd   :  { %v3396_v30 = vpop.xlane.xlu1 %3395  ;;  %3480 = vadd.xlane.f32.xlu1 %v3479_v48 }
 0xbde   :  { %v7928_v13 = vsub.f32 %v7832_v50, %v3414_v20  ;;  %v3417_v26 = vmul.f32 0.03125, %v3396_v30  ;;  %v3476_v33 = vsel %vm338_vm6, %v3444_v7, 0.0  ;;  %v3447_v23 = vmul.f32 %v7922_v28, %v7922_v28 }
 0xbdf   :  { %v3393_v56 = vpop.xlane.xlu0 %3392  ;;  %3477 = vadd.xlane.f32.xlu0 %v3476_v33 }
 0xbe0   :  { %v7934_v55 = vsub.f32 %v7838_v52, %v3417_v26  ;;  %v3416_v16 = vmul.f32 0.03125, %v3393_v56  ;;  %v3485_v63 = vsel %vm338_vm6, %v3447_v23, 0.0  ;;  %v3446_v3 = vmul.f32 %v7928_v13, %v7928_v13  ;;  %v7970_v56 = vld [vmem:[%s4951_s15] ss:$0 sm:$0xff] }
 0xbe1   :  { %3486 = vadd.xlane.f32.xlu1 %v3485_v63  ;;  %v3402_v50 = vpop.xlane.xlu1 %3401 }
 0xbe2   :  { %v7940_v22 = vsub.f32 %v7844_v51, %v3416_v16  ;;  %v3419_v47 = vmul.f32 0.03125, %v3402_v50  ;;  %v3482_v6 = vsel %vm338_vm6, %v3446_v3, 0.0  ;;  %v3449_v62 = vmul.f32 %v7934_v55, %v7934_v55 }
 0xbe3   :  { %3483 = vadd.xlane.f32.xlu0 %v3482_v6  ;;  %v3399_v52 = vpop.xlane.xlu0 %3398 }
 0xbe4   :  { %v7946_v57 = vsub.f32 %v7850_v27, %v3419_v47  ;;  %v3418_v38 = vmul.f32 0.03125, %v3399_v52  ;;  %v3491_v10 = vsel %vm338_vm6, %v3449_v62, 0.0  ;;  %v3448_v51 = vmul.f32 %v7940_v22, %v7940_v22 }
 0xbe5   :  { %3492 = vadd.xlane.f32.xlu1 %v3491_v10 }
 0xbe6   :  { %v7952_v24 = vsub.f32 %v7855_v59, %v3418_v38  ;;  %v3488_v1 = vsel %vm338_vm6, %v3448_v51, 0.0  ;;  %v3451_v31 = vmul.f32 %v7946_v57, %v7946_v57  ;;  %v3609_v59 = vld [vmem:[%s7862_s11 + $0x8] sm:$0xff] }
 0xbe7   :  { %3489 = vadd.xlane.f32.xlu0 %v3488_v1  ;;  %6210 = vmatprep.subr.mxu0 %v3609_v59  ;;  %v7975_v1 = vld [vmem:[%s4952_s19] ss:$0 sm:$0xff] }
 0xbe8   :  { %v3497_v27 = vsel %vm338_vm6, %v3451_v31, 0.0  ;;  %v3450_v19 = vmul.f32 %v7952_v24, %v7952_v24  ;;  %6211 = vmatpush3.msra.mxu0 %v3609_v59 }
 0xbe9   :  { %3498 = vadd.xlane.f32.xlu1 %v3497_v27  ;;  %6212 = vmatprep.subr.mxu0 %v3608_v40 }
 0xbea   :  { %v3494_v39 = vsel %vm338_vm6, %v3450_v19, 0.0  ;;  %6213 = vmatpush3.msra.mxu0 %v3608_v40 }
 0xbeb   :  { %3495 = vadd.xlane.f32.xlu0 %v3494_v39 }
 0xc56   :  { %v3457_v44 = vpop.xlane.xlu1 %3456 }
 0xc57   :  { %v3501_v35 = vmul.f32 0.03125, %v3457_v44 }
 0xc58   :  { %v3454_v17 = vpop.xlane.xlu0 %3453 }
 0xc59   :  { %v3517_v8 = vadd.f32 1e-05, %v3501_v35  ;;  %v3500_v43 = vmul.f32 0.03125, %v3454_v17 }
 0xc5a   :  { %v3463_v12 = vpop.xlane.xlu1 %3462 }
 0xc5b   :  { %6485 = vrsqrt.f32 %v3517_v8  ;;  %v3516_v49 = vadd.f32 1e-05, %v3500_v43  ;;  %v3503_v15 = vmul.f32 0.03125, %v3463_v12 }
 0xc5c   :  { %v3460_v34 = vpop.xlane.xlu0 %3459 }
 0xc5d   :  { %6487 = vrsqrt.f32 %v3516_v49  ;;  %v3519_v25 = vadd.f32 1e-05, %v3503_v15  ;;  %v3502_v18 = vmul.f32 0.03125, %v3460_v34 }
 0xc5e   :  { %v3469_v41 = vpop.xlane.xlu1 %3468 }
 0xc5f   :  { %6489 = vrsqrt.f32 %v3519_v25  ;;  %v3518_v14 = vadd.f32 1e-05, %v3502_v18  ;;  %v3505_v60 = vmul.f32 0.03125, %v3469_v41 }
 0xc60   :  { %v3466_v4 = vpop.xlane.xlu0 %3465 }
 0xc61   :  { %6491 = vrsqrt.f32 %v3518_v14  ;;  %v3521_v61 = vadd.f32 1e-05, %v3505_v60  ;;  %v3504_v21 = vmul.f32 0.03125, %v3466_v4 }
 0xc62   :  { %v3475_v54 = vpop.xlane.xlu1 %3474 }
 0xc63   :  { %6493 = vrsqrt.f32 %v3521_v61  ;;  %v3520_v11 = vadd.f32 1e-05, %v3504_v21  ;;  %v3507_v36 = vmul.f32 0.03125, %v3475_v54 }
 0xc64   :  { %v3472_v37 = vpop.xlane.xlu0 %3471 }
 0xc65   :  { %6495 = vrsqrt.f32 %v3520_v11  ;;  %v3523_v20 = vadd.f32 1e-05, %v3507_v36  ;;  %v3506_v48 = vmul.f32 0.03125, %v3472_v37 }
 0xc66   :  { %v3481_v7 = vpop.xlane.xlu1 %3480 }
 0xc67   :  { %6497 = vrsqrt.f32 %v3523_v20  ;;  %v3522_v30 = vadd.f32 1e-05, %v3506_v48  ;;  %v3509_v26 = vmul.f32 0.03125, %v3481_v7 }
 0xc68   :  { %v6486_v33 = vpop.eup %6485  ;;  %v3478_v23 = vpop.xlane.xlu0 %3477 }
 0xc69   :  { %v3549_v16 = vmul.f32 %v6486_v33, %v7866_v32  ;;  %6499 = vrsqrt.f32 %v3522_v30  ;;  %v3525_v63 = vadd.f32 1e-05, %v3509_v26  ;;  %v3508_v3 = vmul.f32 0.03125, %v3478_v23 }
 0xc6a   :  { %v6488_v50 = vpop.eup %6487  ;;  %v3487_v47 = vpop.xlane.xlu1 %3486 }
 0xc6b   :  { %6501 = vrsqrt.f32 %v3525_v63  ;;  %v3524_v6 = vadd.f32 1e-05, %v3508_v3  ;;  %v3511_v62 = vmul.f32 0.03125, %v3487_v47  ;;  %v3571_v38 = vmul.f32 %v7970_v56, %v3549_v16 }
 0xc6c   :  { %v6490_v52 = vpop.eup %6489  ;;  %v3484_v10 = vpop.xlane.xlu0 %3483  ;;  %v3548_v51 = vmul.f32 %v6488_v50, %v7869_v58 }
 0xc6d   :  { %v3551_v31 = vmul.f32 %v6490_v52, %v7874_v2  ;;  %6503 = vrsqrt.f32 %v3524_v6  ;;  %v3527_v32 = vadd.f32 1e-05, %v3511_v62  ;;  %v3510_v19 = vmul.f32 0.03125, %v3484_v10 }
 0xc6e   :  { %v6492_v27 = vpop.eup %6491  ;;  %v3493_v39 = vpop.xlane.xlu1 %3492  ;;  %v3570_v9 = vmul.f32 %v7970_v56, %v3548_v51  ;;  %v7981_v35 = vadd.f32 %v7975_v1, %v3571_v38 }
 0xc6f   :  { %6505 = vrsqrt.f32 %v3527_v32  ;;  %v3513_v59 = vmul.f32 0.03125, %v3493_v39  ;;  %v3550_v40 = vmul.f32 %v6492_v27, %v7880_v29  ;;  %v3526_v58 = vadd.f32 1e-05, %v3510_v19 }
 0xc70   :  { %v6494_v44 = vpop.eup %6493  ;;  %v3490_v17 = vpop.xlane.xlu0 %3489  ;;  %v7984_v8 = vadd.f32 %v7975_v1, %v3570_v9  ;;  %v3573_v2 = vmul.f32 %v7970_v56, %v3551_v31 }
 0xc71   :  { %v3553_v43 = vmul.f32 %v6494_v44, %v7886_v5  ;;  %v3529_v12 = vadd.f32 1e-05, %v3513_v59  ;;  %v3512_v49 = vmul.f32 0.03125, %v3490_v17  ;;  %v3572_v15 = vmul.f32 %v7970_v56, %v3550_v40 }
 0xc72   :  { %v6496_v34 = vpop.eup %6495  ;;  %6507 = vrsqrt.f32 %v3526_v58  ;;  %6214 = vmatprep.mubr.msk.f32.mxu0 %vm338_vm6, %v7984_v8  ;;  %v3499_v29 = vpop.xlane.xlu1 %3498  ;;  %v7997_v60 = vadd.f32 %v7975_v1, %v3573_v2  ;;  %v3962_v2 = vld [vmem:[%s4955_s23 + $0x30] sm:$0xff] }
 0xc73   :  { %6509 = vrsqrt.f32 %v3529_v12  ;;  %v3528_v25 = vadd.f32 1e-05, %v3512_v49  ;;  %v3515_v18 = vmul.f32 0.03125, %v3499_v29  ;;  %6215 = vmatmul.mubr.msk.f32.vlgmr.msra.gmra.mxu0 %vm338_vm6, %v7981_v35  ;;  %v7994_v41 = vadd.f32 %v7975_v1, %v3572_v15  ;;  %v3960_v12 = vld [vmem:[%s4955_s23 + $0x20] sm:$0xff]  ;;  %v3958_v49 = vld [vmem:[%s4955_s23 + $0x10] sm:$0xff]  ;;  %v3957_v15 = vld [vmem:[%s4955_s23 + $0x8] sm:$0xff] }
 0xc74   :  { %v6498_v5 = vpop.eup %6497  ;;  %v3496_v14 = vpop.xlane.xlu0 %3495  ;;  %v3552_v4 = vmul.f32 %v6496_v34, %v7892_v45  ;;  %v3575_v61 = vmul.f32 %v7970_v56, %v3553_v43  ;;  %v3961_v43 = vld [vmem:[%s4955_s23 + $0x28] sm:$0xff]  ;;  %v3956_v34 = vld [vmem:[%s4955_s23] sm:$0xff] }
 0xc75   :  { %v3555_v21 = vmul.f32 %v6498_v5, %v7898_v53  ;;  %6511 = vrsqrt.f32 %v3528_v25  ;;  %v3531_v54 = vadd.f32 1e-05, %v3515_v18  ;;  %v3514_v11 = vmul.f32 0.03125, %v3496_v14  ;;  %6217 = vmatprep.mubr.msk.f32.mxu0 %vm338_vm6, %v7994_v41  ;;  %v8092_v29 = vld [vmem:[%s4954_s27] ss:$0 sm:$0xff] }
 0xc76   :  { %v6500_v36 = vpop.eup %6499  ;;  %v3574_v37 = vmul.f32 %v7970_v56, %v3552_v4  ;;  %v8012_v53 = vadd.f32 %v7975_v1, %v3575_v61 }
 0xc77   :  { %6513 = vrsqrt.f32 %v3531_v54  ;;  %v3530_v20 = vadd.f32 1e-05, %v3514_v11  ;;  %6218 = vmatmul.mubr.msk.f32.gmra.mxu0 %vm338_vm6, %v7997_v60  ;;  %v3554_v45 = vmul.f32 %v6500_v36, %v7904_v42  ;;  %v3577_v33 = vmul.f32 %v7970_v56, %v3555_v21 }
 0xc78   :  { %v6502_v48 = vpop.eup %6501  ;;  %v8009_v7 = vadd.f32 %v7975_v1, %v3574_v37 }
 0xc79   :  { %v3557_v30 = vmul.f32 %v6502_v48, %v7910_v46  ;;  %6515 = vrsqrt.f32 %v3530_v20  ;;  %v3576_v26 = vmul.f32 %v7970_v56, %v3554_v45  ;;  %v8029_v3 = vadd.f32 %v7975_v1, %v3577_v33 }
 0xc7a   :  { %v6504_v23 = vpop.eup %6503  ;;  %6220 = vmatprep.mubr.msk.f32.mxu0 %vm338_vm6, %v8009_v7 }
 0xc7b   :  { %6221 = vmatmul.mubr.msk.f32.gmra.mxu0 %vm338_vm6, %v8012_v53  ;;  %v8022_v42 = vadd.f32 %v7975_v1, %v3576_v26  ;;  %v3556_v16 = vmul.f32 %v6504_v23, %v7916_v0  ;;  %v3579_v47 = vmul.f32 %v7970_v56, %v3557_v30 }
 0xc7c   :  { %v6506_v63 = vpop.eup %6505 }
 0xc7d   :  { %v3559_v46 = vmul.f32 %v6506_v63, %v7922_v28  ;;  %6223 = vmatprep.mubr.msk.f32.mxu0 %vm338_vm6, %v8022_v42  ;;  %v3578_v50 = vmul.f32 %v7970_v56, %v3556_v16  ;;  %v8043_v38 = vadd.f32 %v7975_v1, %v3579_v47 }
 0xc7f   :  { %v6508_v6 = vpop.eup %6507  ;;  %6224 = vmatmul.mubr.msk.f32.gmra.mxu0 %vm338_vm6, %v8029_v3  ;;  %v8036_v62 = vadd.f32 %v7975_v1, %v3578_v50  ;;  %v3581_v10 = vmul.f32 %v7970_v56, %v3559_v46 }
 0xc80   :  { %v6510_v0 = vpop.eup %6509  ;;  %v3558_v28 = vmul.f32 %v6508_v6, %v7928_v13 }
 0xc81   :  { %v3561_v52 = vmul.f32 %v6510_v0, %v7934_v55  ;;  %6226 = vmatprep.mubr.msk.f32.mxu0 %vm338_vm6, %v8036_v62  ;;  %v8055_v19 = vadd.f32 %v7975_v1, %v3581_v10 }
 0xc82   :  { %v6512_v51 = vpop.eup %6511  ;;  %v3580_v31 = vmul.f32 %v7970_v56, %v3558_v28 }
 0xc83   :  { %6227 = vmatmul.mubr.msk.f32.gmra.mxu0 %vm338_vm6, %v8043_v38  ;;  %v3560_v32 = vmul.f32 %v6512_v51, %v7940_v22  ;;  %v3583_v9 = vmul.f32 %v7970_v56, %v3561_v52 }
 0xc84   :  { %v6514_v27 = vpop.eup %6513  ;;  %v8051_v13 = vadd.f32 %v7975_v1, %v3580_v31 }
 0xc85   :  { %v3563_v55 = vmul.f32 %v6514_v27, %v7946_v57  ;;  %v3582_v39 = vmul.f32 %v7970_v56, %v3560_v32  ;;  %v8070_v57 = vadd.f32 %v7975_v1, %v3583_v9 }
 0xc86   :  { %v6516_v59 = vpop.eup %6515  ;;  %6229 = vmatprep.mubr.msk.f32.mxu0 %vm338_vm6, %v8051_v13 }
 0xc87   :  { %6230 = vmatmul.mubr.msk.f32.gmra.mxu0 %vm338_vm6, %v8055_v19  ;;  %v8064_v22 = vadd.f32 %v7975_v1, %v3582_v39  ;;  %v3562_v40 = vmul.f32 %v6516_v59, %v7952_v24  ;;  %v3585_v58 = vmul.f32 %v7970_v56, %v3563_v55 }
 0xc89   :  { %6232 = vmatprep.mubr.msk.f32.mxu0 %vm338_vm6, %v8064_v22  ;;  %v3584_v44 = vmul.f32 %v7970_v56, %v3562_v40  ;;  %v8082_v24 = vadd.f32 %v7975_v1, %v3585_v58  ;;  %v3963_v56 = vld [vmem:[%s4955_s23 + $0x38] sm:$0xff] }
 0xc8a   :  { %6238 = vmatprep.subr.mxu1 %v3963_v56 }
 0xc8b   :  { %6233 = vmatmul.mubr.msk.f32.gmra.mxu0 %vm338_vm6, %v8070_v57  ;;  %v8077_v17 = vadd.f32 %v7975_v1, %v3584_v44  ;;  %6239 = vmatpush3.msra.mxu1 %v3963_v56  ;;  %v3959_v1 = vld [vmem:[%s4955_s23 + $0x18] sm:$0xff] }
 0xc8c   :  { %6240 = vmatprep.subr.mxu1 %v3962_v2 }
 0xc8d   :  { %6235 = vmatprep.mubr.msk.f32.mxu0 %vm338_vm6, %v8077_v17  ;;  %6241 = vmatpush3.msra.mxu1 %v3962_v2 }
 0xc8e   :  { %6242 = vmatprep.subr.mxu1 %v3961_v43 }
 0xc8f   :  { %6236 = vmatmul.mubr.msk.f32.gmra.mxu0 %vm338_vm6, %v8082_v24  ;;  %6243 = vmatpush3.msra.mxu1 %v3961_v43 }
 0xc90   :  { %6244 = vmatprep.subr.mxu1 %v3960_v12 }
 0xc91   :  { %6245 = vmatpush3.msra.mxu1 %v3960_v12 }
 0xc92   :  { %6246 = vmatprep.subr.mxu1 %v3959_v1 }
 0xc93   :  { %6247 = vmatpush3.msra.mxu1 %v3959_v1 }
 0xc94   :  { %6248 = vmatprep.subr.mxu1 %v3958_v49 }
 0xc95   :  { %6249 = vmatpush3.msra.mxu1 %v3958_v49 }
 0xc96   :  { %6250 = vmatprep.subr.mxu1 %v3957_v15 }
 0xc97   :  { %6251 = vmatpush3.msra.mxu1 %v3957_v15 }
 0xc98   :  { %6252 = vmatprep.subr.mxu1 %v3956_v34 }
 0xc99   :  { %6253 = vmatpush3.msra.mxu1 %v3956_v34 }
 0xd33   :  { %v6216_v25 = vpop.f32.mrf.mxu0 }
 0xd34   :  { %v8095_v18 = vadd.f32 %v6216_v25, %v8092_v29 }
 0xd35   :  { %v3733_v5 = vpop.f32.mrf.mxu0 }
 0xd36   :  { %v3813_v14 = vmul.f32 %v8095_v18, %v8095_v18  ;;  %v8100_v4 = vadd.f32 %v8092_v29, %v3733_v5 }
 0xd37   :  { %v6219_v61 = vpop.f32.mrf.mxu0 }
 0xd38   :  { %v3829_v21 = vmul.f32 %v3813_v14, %v8095_v18  ;;  %v3812_v54 = vmul.f32 %v8100_v4, %v8100_v4  ;;  %v8106_v11 = vadd.f32 %v6219_v61, %v8092_v29 }
 0xd39   :  { %v3743_v36 = vpop.f32.mrf.mxu0 }
 0xd3a   :  { %v3845_v37 = vmul.f32 0.044715, %v3829_v21  ;;  %v3828_v20 = vmul.f32 %v3812_v54, %v8100_v4  ;;  %v3815_v45 = vmul.f32 %v8106_v11, %v8106_v11  ;;  %v8112_v48 = vadd.f32 %v8092_v29, %v3743_v36 }
 0xd3b   :  { %v6222_v30 = vpop.f32.mrf.mxu0 }
 0xd3c   :  { %v3861_v26 = vadd.f32 %v3845_v37, %v8095_v18  ;;  %v3844_v33 = vmul.f32 0.044715, %v3828_v20  ;;  %v3831_v23 = vmul.f32 %v3815_v45, %v8106_v11  ;;  %v3814_v16 = vmul.f32 %v8112_v48, %v8112_v48 }
 0xd3d   :  { %v8119_v63 = vadd.f32 %v6222_v30, %v8092_v29  ;;  %v3753_v46 = vpop.f32.mrf.mxu0 }
 0xd3e   :  { %v3877_v50 = vmul.f32 0.7978846, %v3861_v26  ;;  %v3860_v47 = vadd.f32 %v3844_v33, %v8100_v4  ;;  %v3847_v6 = vmul.f32 0.044715, %v3831_v23  ;;  %v3830_v0 = vmul.f32 %v3814_v16, %v8112_v48 }
 0xd3f   :  { %v3817_v28 = vmul.f32 %v8119_v63, %v8119_v63  ;;  %v8126_v52 = vadd.f32 %v8092_v29, %v3753_v46  ;;  %v6225_v10 = vpop.f32.mrf.mxu0 }
 0xd40   :  { %6517 = vtanh.f32 %v3877_v50  ;;  %v3876_v51 = vmul.f32 0.7978846, %v3860_v47  ;;  %v3863_v31 = vadd.f32 %v3847_v6, %v8106_v11  ;;  %v3846_v32 = vmul.f32 0.044715, %v3830_v0 }
 0xd41   :  { %v3833_v27 = vmul.f32 %v3817_v28, %v8119_v63  ;;  %v3816_v55 = vmul.f32 %v8126_v52, %v8126_v52  ;;  %v8133_v39 = vadd.f32 %v6225_v10, %v8092_v29  ;;  %v3763_v9 = vpop.f32.mrf.mxu0 }
 0xd42   :  { %v3862_v59 = vadd.f32 %v3846_v32, %v8112_v48  ;;  %v8137_v40 = vadd.f32 %v8092_v29, %v3763_v9  ;;  %v3879_v44 = vmul.f32 0.7978846, %v3863_v31  ;;  %6519 = vtanh.f32 %v3876_v51 }
 0xd43   :  { %v3849_v58 = vmul.f32 0.044715, %v3833_v27  ;;  %v3832_v56 = vmul.f32 %v3816_v55, %v8126_v52  ;;  %v3819_v2 = vmul.f32 %v8133_v39, %v8133_v39  ;;  %v6228_v43 = vpop.f32.mrf.mxu0 }
 0xd44   :  { %v3878_v12 = vmul.f32 0.7978846, %v3862_v59  ;;  %v3818_v1 = vmul.f32 %v8137_v40, %v8137_v40  ;;  %v8145_v49 = vadd.f32 %v6228_v43, %v8092_v29 }
 0xd45   :  { %v3865_v15 = vadd.f32 %v3849_v58, %v8119_v63  ;;  %v3848_v34 = vmul.f32 0.044715, %v3832_v56  ;;  %v3835_v25 = vmul.f32 %v3819_v2, %v8133_v39  ;;  %v3773_v5 = vpop.f32.mrf.mxu0 }
 0xd46   :  { %6521 = vtanh.f32 %v3878_v12  ;;  %v3834_v14 = vmul.f32 %v3818_v1, %v8137_v40  ;;  %v3821_v61 = vmul.f32 %v8145_v49, %v8145_v49  ;;  %v8153_v21 = vadd.f32 %v8092_v29, %v3773_v5 }
 0xd47   :  { %6523 = vtanh.f32 %v3879_v44  ;;  %v3881_v54 = vmul.f32 0.7978846, %v3865_v15  ;;  %v3864_v36 = vadd.f32 %v3848_v34, %v8126_v52  ;;  %v3851_v37 = vmul.f32 0.044715, %v3835_v25  ;;  %v6231_v20 = vpop.f32.mrf.mxu0 }
 0xd48   :  { %v3850_v45 = vmul.f32 0.044715, %v3834_v14  ;;  %v3837_v30 = vmul.f32 %v3821_v61, %v8145_v49  ;;  %v3820_v26 = vmul.f32 %v8153_v21, %v8153_v21  ;;  %v8160_v33 = vadd.f32 %v6231_v20, %v8092_v29 }
 0xd49   :  { %6525 = vtanh.f32 %v3881_v54  ;;  %v3880_v23 = vmul.f32 0.7978846, %v3864_v36  ;;  %v3867_v16 = vadd.f32 %v3851_v37, %v8133_v39  ;;  %v3783_v46 = vpop.f32.mrf.mxu0 }
 0xd4a   :  { %v3866_v50 = vadd.f32 %v3850_v45, %v8137_v40  ;;  %v3853_v47 = vmul.f32 0.044715, %v3837_v30  ;;  %v3836_v6 = vmul.f32 %v3820_v26, %v8153_v21  ;;  %v3823_v0 = vmul.f32 %v8160_v33, %v8160_v33 }
 0xd4b   :  { %6527 = vtanh.f32 %v3880_v23  ;;  %v3883_v28 = vmul.f32 0.7978846, %v3867_v16  ;;  %v8168_v10 = vadd.f32 %v8092_v29, %v3783_v46  ;;  %v6234_v51 = vpop.f32.mrf.mxu0 }
 0xd4c   :  { %v3882_v31 = vmul.f32 0.7978846, %v3866_v50  ;;  %v3869_v32 = vadd.f32 %v3853_v47, %v8145_v49  ;;  %v3852_v27 = vmul.f32 0.044715, %v3836_v6  ;;  %v3839_v55 = vmul.f32 %v3823_v0, %v8160_v33 }
 0xd4d   :  { %v6518_v9 = vpop.eup %6517  ;;  %6529 = vtanh.f32 %v3883_v28  ;;  %v3822_v59 = vmul.f32 %v8168_v10, %v8168_v10  ;;  %v8175_v44 = vadd.f32 %v6234_v51, %v8092_v29  ;;  %v3793_v58 = vpop.f32.mrf.mxu0 }
 0xd4e   :  { %v3909_v56 = vadd.f32 1.0, %v6518_v9  ;;  %6531 = vtanh.f32 %v3882_v31  ;;  %v3885_v2 = vmul.f32 0.7978846, %v3869_v32  ;;  %v3868_v43 = vadd.f32 %v3852_v27, %v8153_v21 }
 0xd4f   :  { %v3855_v12 = vmul.f32 0.044715, %v3839_v55  ;;  %v3838_v1 = vmul.f32 %v3822_v59, %v8168_v10  ;;  %v3825_v15 = vmul.f32 %v8175_v44, %v8175_v44  ;;  %v8182_v34 = vadd.f32 %v8092_v29, %v3793_v58  ;;  %v6237_v25 = vpop.f32.mrf.mxu0  ;;  %v6520_v54 = vpop.eup %6519 }
 0xd50   :  { %v3925_v5 = vmul.f32 0.5, %v3909_v56  ;;  %6533 = vtanh.f32 %v3885_v2  ;;  %v3884_v14 = vmul.f32 0.7978846, %v3868_v43  ;;  %v8185_v61 = vadd.f32 %v6237_v25, %v8092_v29 }
 0xd51   :  { %v3871_v36 = vadd.f32 %v3855_v12, %v8160_v33  ;;  %v3854_v37 = vmul.f32 0.044715, %v3838_v1  ;;  %v3841_v20 = vmul.f32 %v3825_v15, %v8175_v44  ;;  %v3824_v45 = vmul.f32 %v8182_v34, %v8182_v34  ;;  %v3803_v30 = vpop.f32.mrf.mxu0 }
 0xd52   :  { %v3941_v26 = vmul.f32 %v3925_v5, %v8095_v18  ;;  %6535 = vtanh.f32 %v3884_v14  ;;  %v3827_v23 = vmul.f32 %v8185_v61, %v8185_v61  ;;  %v8195_v16 = vadd.f32 %v8092_v29, %v3803_v30 }
 0xd53   :  { %v6522_v46 = vpop.eup %6521  ;;  %v3887_v50 = vmul.f32 0.7978846, %v3871_v36  ;;  %v3870_v47 = vadd.f32 %v3854_v37, %v8168_v10  ;;  %v3857_v6 = vmul.f32 0.044715, %v3841_v20  ;;  %v3840_v0 = vmul.f32 %v3824_v45, %v8182_v34 }
 0xd54   :  { %v6524_v28 = vpop.eup %6523  ;;  %v3843_v51 = vmul.f32 %v3827_v23, %v8185_v61  ;;  %v3826_v18 = vmul.f32 %v8195_v16, %v8195_v16  ;;  %v3908_v31 = vadd.f32 1.0, %v6520_v54  ;;  %v3910_v32 = vadd.f32 1.0, %v6522_v46 }
 0xd55   :  { %6537 = vtanh.f32 %v3887_v50  ;;  %v3886_v27 = vmul.f32 0.7978846, %v3870_v47  ;;  %v3873_v29 = vadd.f32 %v3857_v6, %v8175_v44  ;;  %v3856_v55 = vmul.f32 0.044715, %v3840_v0 }
 0xd56   :  { %v6526_v9 = vpop.eup %6525  ;;  %v3859_v59 = vmul.f32 0.044715, %v3843_v51  ;;  %v3842_v58 = vmul.f32 %v3826_v18, %v8195_v16  ;;  %v3924_v56 = vmul.f32 0.5, %v3908_v31  ;;  %v3926_v2 = vmul.f32 0.5, %v3910_v32 }
 0xd57   :  { %6539 = vtanh.f32 %v3886_v27  ;;  %v3889_v43 = vmul.f32 0.7978846, %v3873_v29  ;;  %v3872_v12 = vadd.f32 %v3856_v55, %v8182_v34  ;;  %v3911_v1 = vadd.f32 1.0, %v6524_v28 }
 0xd58   :  { %v6528_v15 = vpop.eup %6527  ;;  %v3875_v25 = vadd.f32 %v3859_v59, %v8185_v61  ;;  %v3858_v5 = vmul.f32 0.044715, %v3842_v58  ;;  %v3940_v14 = vmul.f32 %v3924_v56, %v8100_v4  ;;  %v3942_v54 = vmul.f32 %v3926_v2, %v8112_v48 }
 0xd59   :  { %6541 = vtanh.f32 %v3889_v43  ;;  %v3888_v36 = vmul.f32 0.7978846, %v3872_v12  ;;  %v3927_v37 = vmul.f32 0.5, %v3911_v1  ;;  %v3912_v20 = vadd.f32 1.0, %v6528_v15 }
 0xd5a   :  { %v6530_v45 = vpop.eup %6529  ;;  %v3891_v30 = vmul.f32 0.7978846, %v3875_v25  ;;  %v3874_v23 = vadd.f32 %v3858_v5, %v8195_v16  ;;  %6254 = vmatprep.mubr.msk.f32.mxu1 %vm3971_vm7, %v3940_v14  ;;  %v3913_v46 = vadd.f32 1.0, %v6526_v9 }
 0xd5b   :  { %v6532_v50 = vpop.eup %6531  ;;  %6543 = vtanh.f32 %v3888_v36  ;;  %6255 = vmatmul.mubr.msk.f32.vlgmr.msra.gmra.mxu1 %vm3971_vm7, %v3941_v26  ;;  %v3928_v47 = vmul.f32 0.5, %v3912_v20  ;;  %v3915_v6 = vadd.f32 1.0, %v6530_v45  ;;  %v3943_v28 = vmul.f32 %v3927_v37, %v8106_v11 }
 0xd5c   :  { %v3890_v4 = vmul.f32 0.7978846, %v3874_v23  ;;  %6257 = vmatprep.mubr.msk.f32.mxu1 %vm3971_vm7, %v3942_v54  ;;  %v3914_v48 = vadd.f32 1.0, %v6532_v50  ;;  %6545 = vtanh.f32 %v3891_v30  ;;  %v3929_v18 = vmul.f32 0.5, %v3913_v46 }
 0xd5d   :  { %v6534_v0 = vpop.eup %6533  ;;  %v3944_v51 = vmul.f32 %v3928_v47, %v8126_v52  ;;  %v3931_v55 = vmul.f32 0.5, %v3915_v6 }
 0xd5e   :  { %6547 = vtanh.f32 %v3890_v4  ;;  %v3930_v31 = vmul.f32 0.5, %v3914_v48  ;;  %v3917_v27 = vadd.f32 1.0, %v6534_v0  ;;  %v3945_v9 = vmul.f32 %v3929_v18, %v8119_v63 }
 0xd5f   :  { %v6536_v32 = vpop.eup %6535  ;;  %6258 = vmatmul.mubr.msk.f32.gmra.mxu1 %vm3971_vm7, %v3943_v28  ;;  %v3947_v2 = vmul.f32 %v3931_v55, %v8133_v39 }
 0xd60   :  { %6260 = vmatprep.mubr.msk.f32.mxu1 %vm3971_vm7, %v3944_v51  ;;  %v3946_v26 = vmul.f32 %v3930_v31, %v8137_v40  ;;  %v3916_v29 = vadd.f32 1.0, %v6536_v32  ;;  %v3933_v52 = vmul.f32 0.5, %v3917_v27 }
 0xd62   :  { %v6538_v59 = vpop.eup %6537  ;;  %v3932_v58 = vmul.f32 0.5, %v3916_v29  ;;  %v3949_v63 = vmul.f32 %v3933_v52, %v8145_v49 }
 0xd63   :  { %6261 = vmatmul.mubr.msk.f32.gmra.mxu1 %vm3971_vm7, %v3945_v9  ;;  %v3919_v43 = vadd.f32 1.0, %v6538_v59 }
 0xd64   :  { %v6540_v11 = vpop.eup %6539  ;;  %6263 = vmatprep.mubr.msk.f32.mxu1 %vm3971_vm7, %v3946_v26  ;;  %v3948_v56 = vmul.f32 %v3932_v58, %v8153_v21 }
 0xd65   :  { %v3918_v12 = vadd.f32 1.0, %v6540_v11  ;;  %v3935_v25 = vmul.f32 0.5, %v3919_v43 }
 0xd66   :  { %v6542_v1 = vpop.eup %6541 }
 0xd67   :  { %6264 = vmatmul.mubr.msk.f32.gmra.mxu1 %vm3971_vm7, %v3947_v2  ;;  %v3934_v40 = vmul.f32 0.5, %v3918_v12  ;;  %v3921_v5 = vadd.f32 1.0, %v6542_v1  ;;  %v3951_v20 = vmul.f32 %v3935_v25, %v8160_v33 }
 0xd68   :  { %v6544_v15 = vpop.eup %6543  ;;  %6266 = vmatprep.mubr.msk.f32.mxu1 %vm3971_vm7, %v3948_v56 }
 0xd69   :  { %v3950_v14 = vmul.f32 %v3934_v40, %v8168_v10  ;;  %v3920_v54 = vadd.f32 1.0, %v6544_v15  ;;  %v6546_v36 = vpop.eup %6545  ;;  %v3937_v45 = vmul.f32 0.5, %v3921_v5 }
 0xd6a   :  { %v3923_v30 = vadd.f32 1.0, %v6546_v36 }
 0xd6b   :  { %v6548_v21 = vpop.eup %6547  ;;  %6267 = vmatmul.mubr.msk.f32.gmra.mxu1 %vm3971_vm7, %v3949_v63  ;;  %v3936_v39 = vmul.f32 0.5, %v3920_v54  ;;  %v3953_v46 = vmul.f32 %v3937_v45, %v8175_v44 }
 0xd6c   :  { %6269 = vmatprep.mubr.msk.f32.mxu1 %vm3971_vm7, %v3950_v14  ;;  %v3922_v37 = vadd.f32 1.0, %v6548_v21  ;;  %v3939_v50 = vmul.f32 0.5, %v3923_v30 }
 0xd6d   :  { %v3952_v49 = vmul.f32 %v3936_v39, %v8182_v34  ;;  %v8241_v34 = vld [vmem:[%s4956_s1] ss:$0 sm:$0xff] }
 0xd6e   :  { %v3938_v23 = vmul.f32 0.5, %v3922_v37  ;;  %v3955_v33 = vmul.f32 %v3939_v50, %v8185_v61 }
 0xd6f   :  { %6270 = vmatmul.mubr.msk.f32.gmra.mxu1 %vm3971_vm7, %v3951_v20 }
 0xd70   :  { %6272 = vmatprep.mubr.msk.f32.mxu1 %vm3971_vm7, %v3952_v49  ;;  %v3954_v10 = vmul.f32 %v3938_v23, %v8195_v16 }
 0xd73   :  { %6273 = vmatmul.mubr.msk.f32.gmra.mxu1 %vm3971_vm7, %v3953_v46 }
 0xd74   :  { %6275 = vmatprep.mubr.msk.f32.mxu1 %vm3971_vm7, %v3954_v10 }
 0xd77   :  { %6276 = vmatmul.mubr.msk.f32.gmra.mxu1 %vm3971_vm7, %v3955_v33 }
 0xe1b   :  { %v6256_v47 = vpop.f32.mrf.mxu1 }
 0xe1c   :  { %v4092_v16 = vadd.f32 %v6256_v47, %v8241_v34 }
 0xe1d   :  { %v4086_v44 = vpop.f32.mrf.mxu1 }
 0xe1e   :  { %v4087_v6 = vadd.f32 %v8241_v34, %v4086_v44  ;;  %v8246_v4 = vadd.f32 %v4092_v16, %v7981_v35 }
 0xe1f   :  { %v6259_v48 = vpop.f32.mrf.mxu1 }
 0xe20   :  { %v8249_v61 = vadd.f32 %v4087_v6, %v7984_v8  ;;  %v4102_v0 = vadd.f32 %v6259_v48, %v8241_v34  ;;  %v4186_v28 = vsel %vm338_vm6, %v8246_v4, 0.0 }
 0xe21   :  { %4187 = vadd.xlane.f32.xlu1 %v4186_v28  ;;  %v4096_v51 = vpop.f32.mrf.mxu1 }
 0xe22   :  { %v4097_v18 = vadd.f32 %v8241_v34, %v4096_v51  ;;  %v4183_v31 = vsel %vm338_vm6, %v8249_v61, 0.0  ;;  %v8258_v32 = vadd.f32 %v4102_v0, %v7997_v60 }
 0xe23   :  { %4184 = vadd.xlane.f32.xlu0 %v4183_v31  ;;  %v6262_v35 = vpop.f32.mrf.mxu1 }
 0xe24   :  { %v8261_v8 = vadd.f32 %v4097_v18, %v7994_v41  ;;  %v4112_v27 = vadd.f32 %v6262_v35, %v8241_v34  ;;  %v4192_v26 = vsel %vm338_vm6, %v8258_v32, 0.0 }
 0xe25   :  { %4193 = vadd.xlane.f32.xlu1 %v4192_v26  ;;  %v4106_v29 = vpop.f32.mrf.mxu1 }
 0xe26   :  { %v4107_v55 = vadd.f32 %v8241_v34, %v4106_v29  ;;  %v4189_v9 = vsel %vm338_vm6, %v8261_v8, 0.0  ;;  %v8270_v60 = vadd.f32 %v4112_v27, %v8012_v53 }
 0xe27   :  { %4190 = vadd.xlane.f32.xlu0 %v4189_v9  ;;  %v6265_v59 = vpop.f32.mrf.mxu1 }
 0xe28   :  { %v8273_v41 = vadd.f32 %v4107_v55, %v8009_v7  ;;  %v4122_v58 = vadd.f32 %v6265_v59, %v8241_v34  ;;  %v4198_v11 = vsel %vm338_vm6, %v8270_v60, 0.0 }
 0xe29   :  { %4199 = vadd.xlane.f32.xlu1 %v4198_v11  ;;  %v4116_v52 = vpop.f32.mrf.mxu1 }
 0xe2a   :  { %v8279_v56 = vadd.f32 %v4122_v58, %v8029_v3  ;;  %v4117_v2 = vadd.f32 %v8241_v34, %v4116_v52  ;;  %v4195_v53 = vsel %vm338_vm6, %v8273_v41, 0.0 }
 0xe2b   :  { %4196 = vadd.xlane.f32.xlu0 %v4195_v53  ;;  %v6268_v43 = vpop.f32.mrf.mxu1 }
 0xe2c   :  { %v8285_v7 = vadd.f32 %v4117_v2, %v8022_v42  ;;  %v4132_v12 = vadd.f32 %v6268_v43, %v8241_v34  ;;  %v4204_v1 = vsel %vm338_vm6, %v8279_v56, 0.0 }
 0xe2d   :  { %4205 = vadd.xlane.f32.xlu1 %v4204_v1  ;;  %v4126_v40 = vpop.f32.mrf.mxu1 }
 0xe2e   :  { %v8291_v3 = vadd.f32 %v4132_v12, %v8043_v38  ;;  %v4127_v15 = vadd.f32 %v8241_v34, %v4126_v40  ;;  %v4201_v63 = vsel %vm338_vm6, %v8285_v7, 0.0 }
 0xe2f   :  { %4202 = vadd.xlane.f32.xlu0 %v4201_v63  ;;  %v6271_v25 = vpop.f32.mrf.mxu1 }
 0xe30   :  { %v8297_v42 = vadd.f32 %v4127_v15, %v8036_v62  ;;  %v4142_v5 = vadd.f32 %v6271_v25, %v8241_v34  ;;  %v4210_v14 = vsel %vm338_vm6, %v8291_v3, 0.0 }
 0xe31   :  { %4211 = vadd.xlane.f32.xlu1 %v4210_v14  ;;  %v4136_v54 = vpop.f32.mrf.mxu1 }
 0xe32   :  { %v8303_v38 = vadd.f32 %v4142_v5, %v8055_v19  ;;  %v4137_v36 = vadd.f32 %v8241_v34, %v4136_v54  ;;  %v4207_v21 = vsel %vm338_vm6, %v8297_v42, 0.0 }
 0xe33   :  { %4208 = vadd.xlane.f32.xlu0 %v4207_v21  ;;  %v6274_v39 = vpop.f32.mrf.mxu1 }
 0xe34   :  { %v8309_v62 = vadd.f32 %v4137_v36, %v8051_v13  ;;  %v4152_v37 = vadd.f32 %v6274_v39, %v8241_v34  ;;  %v4216_v20 = vsel %vm338_vm6, %v8303_v38, 0.0 }
 0xe35   :  { %4217 = vadd.xlane.f32.xlu1 %v4216_v20  ;;  %v4146_v45 = vpop.f32.mrf.mxu1 }
 0xe36   :  { %v8315_v19 = vadd.f32 %v4152_v37, %v8070_v57  ;;  %v4147_v30 = vadd.f32 %v8241_v34, %v4146_v45  ;;  %v4213_v49 = vsel %vm338_vm6, %v8309_v62, 0.0 }
 0xe37   :  { %4214 = vadd.xlane.f32.xlu0 %v4213_v49  ;;  %v6277_v23 = vpop.f32.mrf.mxu1 }
 0xe38   :  { %v8321_v13 = vadd.f32 %v4147_v30, %v8064_v22  ;;  %v4162_v10 = vadd.f32 %v6277_v23, %v8241_v34  ;;  %v4222_v46 = vsel %vm338_vm6, %v8315_v19, 0.0 }
 0xe39   :  { %4223 = vadd.xlane.f32.xlu1 %v4222_v46  ;;  %v4156_v50 = vpop.f32.mrf.mxu1 }
 0xe3a   :  { %v8327_v57 = vadd.f32 %v4162_v10, %v8082_v24  ;;  %v4157_v33 = vadd.f32 %v8241_v34, %v4156_v50  ;;  %v4219_v47 = vsel %vm338_vm6, %v8321_v13, 0.0 }
 0xe3b   :  { %4220 = vadd.xlane.f32.xlu0 %v4219_v47 }
 0xe3c   :  { %v8333_v16 = vadd.f32 %v4157_v33, %v8077_v17  ;;  %v4228_v22 = vsel %vm338_vm6, %v8327_v57, 0.0 }
 0xe3d   :  { %4229 = vadd.xlane.f32.xlu1 %v4228_v22 }
 0xe3e   :  { %v4225_v44 = vsel %vm338_vm6, %v8333_v16, 0.0 }
 0xe3f   :  { %4226 = vadd.xlane.f32.xlu0 %v4225_v44 }
 0xeaa   :  { %v4188_v6 = vpop.xlane.xlu1 %4187 }
 0xeab   :  { %v4232_v24 = vmul.f32 0.03125, %v4188_v6 }
 0xeac   :  { %v4185_v48 = vpop.xlane.xlu0 %4184 }
 0xead   :  { %v8340_v34 = vsub.f32 %v8246_v4, %v4232_v24  ;;  %v4231_v0 = vmul.f32 0.03125, %v4185_v48 }
 0xeae   :  { %v4194_v28 = vpop.xlane.xlu1 %4193 }
 0xeaf   :  { %v8343_v51 = vsub.f32 %v8249_v61, %v4231_v0  ;;  %v4234_v17 = vmul.f32 0.03125, %v4194_v28  ;;  %v4264_v18 = vmul.f32 %v8340_v34, %v8340_v34 }
 0xeb0   :  { %v4191_v31 = vpop.xlane.xlu0 %4190 }
 0xeb1   :  { %v8348_v35 = vsub.f32 %v8258_v32, %v4234_v17  ;;  %v4233_v27 = vmul.f32 0.03125, %v4191_v31  ;;  %v4282_v26 = vsel %vm338_vm6, %v4264_v18, 0.0  ;;  %v4263_v4 = vmul.f32 %v8343_v51, %v8343_v51 }
 0xeb2   :  { %v4200_v29 = vpop.xlane.xlu1 %4199  ;;  %4283 = vadd.xlane.f32.xlu1 %v4282_v26 }
 0xeb3   :  { %v8354_v55 = vsub.f32 %v8261_v8, %v4233_v27  ;;  %v4236_v61 = vmul.f32 0.03125, %v4200_v29  ;;  %v4279_v9 = vsel %vm338_vm6, %v4263_v4, 0.0  ;;  %v4266_v59 = vmul.f32 %v8348_v35, %v8348_v35 }
 0xeb4   :  { %4280 = vadd.xlane.f32.xlu0 %v4279_v9  ;;  %v4197_v32 = vpop.xlane.xlu0 %4196 }
 0xeb5   :  { %v8360_v58 = vsub.f32 %v8270_v60, %v4236_v61  ;;  %v4235_v11 = vmul.f32 0.03125, %v4197_v32  ;;  %v4288_v52 = vsel %vm338_vm6, %v4266_v59, 0.0  ;;  %v4265_v2 = vmul.f32 %v8354_v55, %v8354_v55 }
 0xeb6   :  { %v4206_v53 = vpop.xlane.xlu1 %4205  ;;  %4289 = vadd.xlane.f32.xlu1 %v4288_v52 }
 0xeb7   :  { %v8366_v8 = vsub.f32 %v8273_v41, %v4235_v11  ;;  %v4238_v43 = vmul.f32 0.03125, %v4206_v53  ;;  %v4285_v12 = vsel %vm338_vm6, %v4265_v2, 0.0  ;;  %v4268_v1 = vmul.f32 %v8360_v58, %v8360_v58 }
 0xeb8   :  { %4286 = vadd.xlane.f32.xlu0 %v4285_v12  ;;  %v4203_v60 = vpop.xlane.xlu0 %4202 }
 0xeb9   :  { %v8372_v40 = vsub.f32 %v8279_v56, %v4238_v43  ;;  %v4237_v15 = vmul.f32 0.03125, %v4203_v60  ;;  %v4294_v63 = vsel %vm338_vm6, %v4268_v1, 0.0  ;;  %v4267_v25 = vmul.f32 %v8366_v8, %v8366_v8 }
 0xeba   :  { %v4212_v5 = vpop.xlane.xlu1 %4211  ;;  %4295 = vadd.xlane.f32.xlu1 %v4294_v63 }
 0xebb   :  { %v8378_v41 = vsub.f32 %v8285_v7, %v4237_v15  ;;  %v4240_v14 = vmul.f32 0.03125, %v4212_v5  ;;  %v4291_v54 = vsel %vm338_vm6, %v4267_v25, 0.0  ;;  %v4270_v36 = vmul.f32 %v8372_v40, %v8372_v40 }
 0xebc   :  { %4292 = vadd.xlane.f32.xlu0 %v4291_v54  ;;  %v4209_v56 = vpop.xlane.xlu0 %4208 }
 0xebd   :  { %v8384_v21 = vsub.f32 %v8291_v3, %v4240_v14  ;;  %v4239_v39 = vmul.f32 0.03125, %v4209_v56  ;;  %v4300_v37 = vsel %vm338_vm6, %v4270_v36, 0.0  ;;  %v4269_v20 = vmul.f32 %v8378_v41, %v8378_v41 }
 0xebe   :  { %v4218_v45 = vpop.xlane.xlu1 %4217  ;;  %4301 = vadd.xlane.f32.xlu1 %v4300_v37 }
 0xebf   :  { %v8390_v7 = vsub.f32 %v8297_v42, %v4239_v39  ;;  %v4242_v30 = vmul.f32 0.03125, %v4218_v45  ;;  %v4297_v49 = vsel %vm338_vm6, %v4269_v20, 0.0  ;;  %v4272_v23 = vmul.f32 %v8384_v21, %v8384_v21 }
 0xec0   :  { %4298 = vadd.xlane.f32.xlu0 %v4297_v49  ;;  %v4215_v3 = vpop.xlane.xlu0 %4214 }
 0xec1   :  { %v8396_v10 = vsub.f32 %v8303_v38, %v4242_v30  ;;  %v4241_v46 = vmul.f32 0.03125, %v4215_v3  ;;  %v4306_v50 = vsel %vm338_vm6, %v4272_v23, 0.0  ;;  %v4271_v33 = vmul.f32 %v8390_v7, %v8390_v7 }
 0xec2   :  { %v4224_v47 = vpop.xlane.xlu1 %4223  ;;  %4307 = vadd.xlane.f32.xlu1 %v4306_v50 }
 0xec3   :  { %v8402_v42 = vsub.f32 %v8309_v62, %v4241_v46  ;;  %v4244_v22 = vmul.f32 0.03125, %v4224_v47  ;;  %v4303_v44 = vsel %vm338_vm6, %v4271_v33, 0.0  ;;  %v4274_v6 = vmul.f32 %v8396_v10, %v8396_v10 }
 0xec4   :  { %4304 = vadd.xlane.f32.xlu0 %v4303_v44  ;;  %v4221_v38 = vpop.xlane.xlu0 %4220 }
 0xec5   :  { %v8408_v24 = vsub.f32 %v8315_v19, %v4244_v22  ;;  %v4243_v48 = vmul.f32 0.03125, %v4221_v38  ;;  %v4312_v0 = vsel %vm338_vm6, %v4274_v6, 0.0  ;;  %v4273_v28 = vmul.f32 %v8402_v42, %v8402_v42  ;;  %v8441_v22 = vld [vmem:[%s4957_s5] ss:$0 sm:$0xff] }
 0xec6   :  { %4313 = vadd.xlane.f32.xlu1 %v4312_v0  ;;  %v4230_v62 = vpop.xlane.xlu1 %4229 }
 0xec7   :  { %v8414_v17 = vsub.f32 %v8321_v13, %v4243_v48  ;;  %v4246_v18 = vmul.f32 0.03125, %v4230_v62  ;;  %v4309_v31 = vsel %vm338_vm6, %v4273_v28, 0.0  ;;  %v4276_v27 = vmul.f32 %v8408_v24, %v8408_v24  ;;  %v8444_v28 = vld [vmem:[%s4958_s9] ss:$0 sm:$0xff] }
 0xec8   :  { %4310 = vadd.xlane.f32.xlu0 %v4309_v31  ;;  %v4227_v19 = vpop.xlane.xlu0 %4226 }
 0xec9   :  { %v8420_v26 = vsub.f32 %v8327_v57, %v4246_v18  ;;  %v4245_v4 = vmul.f32 0.03125, %v4227_v19  ;;  %v4318_v29 = vsel %vm338_vm6, %v4276_v27, 0.0  ;;  %v4275_v61 = vmul.f32 %v8414_v17, %v8414_v17 }
 0xeca   :  { %4319 = vadd.xlane.f32.xlu1 %v4318_v29 }
 0xecb   :  { %v8426_v13 = vsub.f32 %v8333_v16, %v4245_v4  ;;  %v4315_v9 = vsel %vm338_vm6, %v4275_v61, 0.0  ;;  %v4278_v59 = vmul.f32 %v8420_v26, %v8420_v26 }
 0xecc   :  { %4316 = vadd.xlane.f32.xlu0 %v4315_v9 }
 0xecd   :  { %v4324_v32 = vsel %vm338_vm6, %v4278_v59, 0.0  ;;  %v4277_v57 = vmul.f32 %v8426_v13, %v8426_v13 }
 0xece   :  { %4325 = vadd.xlane.f32.xlu1 %v4324_v32 }
 0xecf   :  { %v4321_v11 = vsel %vm338_vm6, %v4277_v57, 0.0 }
 0xed0   :  { %4322 = vadd.xlane.f32.xlu0 %v4321_v11 }
 0xf3b   :  { %v4284_v52 = vpop.xlane.xlu1 %4283 }
 0xf3c   :  { %v4328_v2 = vmul.f32 0.03125, %v4284_v52 }
 0xf3d   :  { %v4281_v53 = vpop.xlane.xlu0 %4280 }
 0xf3e   :  { %v4344_v16 = vadd.f32 1e-05, %v4328_v2  ;;  %v4327_v43 = vmul.f32 0.03125, %v4281_v53 }
 0xf3f   :  { %v4290_v12 = vpop.xlane.xlu1 %4289 }
 0xf40   :  { %6549 = vrsqrt.f32 %v4344_v16  ;;  %v4343_v1 = vadd.f32 1e-05, %v4327_v43  ;;  %v4330_v60 = vmul.f32 0.03125, %v4290_v12 }
 0xf41   :  { %v4287_v15 = vpop.xlane.xlu0 %4286 }
 0xf42   :  { %6551 = vrsqrt.f32 %v4343_v1  ;;  %v4346_v63 = vadd.f32 1e-05, %v4330_v60  ;;  %v4329_v25 = vmul.f32 0.03125, %v4287_v15 }
 0xf43   :  { %v4296_v5 = vpop.xlane.xlu1 %4295 }
 0xf44   :  { %6553 = vrsqrt.f32 %v4346_v63  ;;  %v4345_v14 = vadd.f32 1e-05, %v4329_v25  ;;  %v4332_v54 = vmul.f32 0.03125, %v4296_v5 }
 0xf45   :  { %v4293_v36 = vpop.xlane.xlu0 %4292 }
 0xf46   :  { %6555 = vrsqrt.f32 %v4345_v14  ;;  %v4348_v56 = vadd.f32 1e-05, %v4332_v54  ;;  %v4331_v39 = vmul.f32 0.03125, %v4293_v36 }
 0xf47   :  { %v4302_v37 = vpop.xlane.xlu1 %4301 }
 0xf48   :  { %6557 = vrsqrt.f32 %v4348_v56  ;;  %v4347_v20 = vadd.f32 1e-05, %v4331_v39  ;;  %v4334_v45 = vmul.f32 0.03125, %v4302_v37 }
 0xf49   :  { %v4299_v30 = vpop.xlane.xlu0 %4298 }
 0xf4a   :  { %6559 = vrsqrt.f32 %v4347_v20  ;;  %v4350_v49 = vadd.f32 1e-05, %v4334_v45  ;;  %v4333_v23 = vmul.f32 0.03125, %v4299_v30 }
 0xf4b   :  { %v4308_v3 = vpop.xlane.xlu1 %4307 }
 0xf4c   :  { %6561 = vrsqrt.f32 %v4350_v49  ;;  %v4349_v46 = vadd.f32 1e-05, %v4333_v23  ;;  %v4336_v50 = vmul.f32 0.03125, %v4308_v3 }
 0xf4d   :  { %v6550_v33 = vpop.eup %6549  ;;  %v4305_v47 = vpop.xlane.xlu0 %4304 }
 0xf4e   :  { %6563 = vrsqrt.f32 %v4349_v46  ;;  %v4352_v44 = vadd.f32 1e-05, %v4336_v50  ;;  %v4335_v6 = vmul.f32 0.03125, %v4305_v47  ;;  %v4376_v38 = vmul.f32 %v6550_v33, %v8340_v34 }
 0xf4f   :  { %v6552_v48 = vpop.eup %6551  ;;  %v4314_v0 = vpop.xlane.xlu1 %4313 }
 0xf50   :  { %6565 = vrsqrt.f32 %v4352_v44  ;;  %v4351_v62 = vadd.f32 1e-05, %v4335_v6  ;;  %v4338_v18 = vmul.f32 0.03125, %v4314_v0  ;;  %v4398_v31 = vmul.f32 %v8441_v22, %v4376_v38 }
 0xf51   :  { %v6554_v27 = vpop.eup %6553  ;;  %v4311_v19 = vpop.xlane.xlu0 %4310  ;;  %v4375_v4 = vmul.f32 %v6552_v48, %v8343_v51 }
 0xf52   :  { %6567 = vrsqrt.f32 %v4351_v62  ;;  %v4354_v29 = vadd.f32 1e-05, %v4338_v18  ;;  %v4337_v61 = vmul.f32 0.03125, %v4311_v19  ;;  %v8449_v9 = vadd.f32 %v8444_v28, %v4398_v31 }
 0xf53   :  { %v6556_v34 = vpop.eup %6555  ;;  %v4320_v59 = vpop.xlane.xlu1 %4319  ;;  %v4397_v32 = vmul.f32 %v8441_v22, %v4375_v4  ;;  %v4378_v57 = vmul.f32 %v6554_v27, %v8348_v35 }
 0xf54   :  { %6569 = vrsqrt.f32 %v4354_v29  ;;  %v4353_v11 = vadd.f32 1e-05, %v4337_v61  ;;  %v4340_v52 = vmul.f32 0.03125, %v4320_v59  ;;  %v4440_v2 = vsel %vm338_vm6, %v8449_v9, 0.0 }
 0xf55   :  { %v6558_v53 = vpop.eup %6557  ;;  %4441 = vadd.xlane.f32.xlu1 %v4440_v2  ;;  %v4317_v51 = vpop.xlane.xlu0 %4316  ;;  %v8456_v16 = vadd.f32 %v8444_v28, %v4397_v32  ;;  %v4400_v43 = vmul.f32 %v8441_v22, %v4378_v57  ;;  %v4377_v12 = vmul.f32 %v6556_v34, %v8354_v55 }
 0xf56   :  { %6571 = vrsqrt.f32 %v4353_v11  ;;  %v4356_v1 = vadd.f32 1e-05, %v4340_v52  ;;  %v4339_v60 = vmul.f32 0.03125, %v4317_v51  ;;  %v4380_v35 = vmul.f32 %v6558_v53, %v8360_v58 }
 0xf57   :  { %v6560_v15 = vpop.eup %6559  ;;  %v4326_v63 = vpop.xlane.xlu1 %4325  ;;  %v4437_v25 = vsel %vm338_vm6, %v8456_v16, 0.0  ;;  %v8464_v5 = vadd.f32 %v8444_v28, %v4400_v43  ;;  %v4399_v14 = vmul.f32 %v8441_v22, %v4377_v12 }
 0xf58   :  { %6573 = vrsqrt.f32 %v4356_v1  ;;  %v4355_v54 = vadd.f32 1e-05, %v4339_v60  ;;  %v4342_v36 = vmul.f32 0.03125, %v4326_v63  ;;  %4438 = vadd.xlane.f32.xlu0 %v4437_v25  ;;  %v4402_v55 = vmul.f32 %v8441_v22, %v4380_v35 }
 0xf59   :  { %v6562_v56 = vpop.eup %6561  ;;  %v4446_v58 = vsel %vm338_vm6, %v8464_v5, 0.0  ;;  %v4323_v39 = vpop.xlane.xlu0 %4322  ;;  %v8471_v37 = vadd.f32 %v8444_v28, %v4399_v14  ;;  %v4379_v20 = vmul.f32 %v6560_v15, %v8366_v8 }
 0xf5a   :  { %6575 = vrsqrt.f32 %v4355_v54  ;;  %v4358_v45 = vadd.f32 1e-05, %v4342_v36  ;;  %4447 = vadd.xlane.f32.xlu1 %v4446_v58  ;;  %v4341_v30 = vmul.f32 0.03125, %v4323_v39  ;;  %v8475_v49 = vadd.f32 %v8444_v28, %v4402_v55 }
 0xf5b   :  { %v6564_v23 = vpop.eup %6563  ;;  %v4443_v3 = vsel %vm338_vm6, %v8471_v37, 0.0  ;;  %v4401_v46 = vmul.f32 %v8441_v22, %v4379_v20  ;;  %v4382_v50 = vmul.f32 %v6562_v56, %v8372_v40 }
 0xf5c   :  { %6577 = vrsqrt.f32 %v4358_v45  ;;  %v4357_v33 = vadd.f32 1e-05, %v4341_v30  ;;  %4444 = vadd.xlane.f32.xlu0 %v4443_v3  ;;  %v4452_v8 = vsel %vm338_vm6, %v8475_v49, 0.0  ;;  %v4381_v47 = vmul.f32 %v6564_v23, %v8378_v41 }
 0xf5d   :  { %v6566_v44 = vpop.eup %6565  ;;  %v8485_v6 = vadd.f32 %v8444_v28, %v4401_v46  ;;  %v4404_v38 = vmul.f32 %v8441_v22, %v4382_v50 }
 0xf5e   :  { %6579 = vrsqrt.f32 %v4357_v33  ;;  %4453 = vadd.xlane.f32.xlu1 %v4452_v8  ;;  %v4403_v48 = vmul.f32 %v8441_v22, %v4381_v47  ;;  %v4384_v40 = vmul.f32 %v6566_v44, %v8384_v21 }
 0xf5f   :  { %v6568_v0 = vpop.eup %6567  ;;  %v4449_v62 = vsel %vm338_vm6, %v8485_v6, 0.0  ;;  %v8493_v18 = vadd.f32 %v8444_v28, %v4404_v38 }
 0xf60   :  { %4450 = vadd.xlane.f32.xlu0 %v4449_v62  ;;  %v8496_v41 = vadd.f32 %v8444_v28, %v4403_v48  ;;  %v4406_v31 = vmul.f32 %v8441_v22, %v4384_v40  ;;  %v4383_v27 = vmul.f32 %v6568_v0, %v8390_v7 }
 0xf61   :  { %v6570_v19 = vpop.eup %6569  ;;  %v4458_v4 = vsel %vm338_vm6, %v8493_v18, 0.0 }
 0xf62   :  { %4459 = vadd.xlane.f32.xlu1 %v4458_v4  ;;  %v4455_v21 = vsel %vm338_vm6, %v8496_v41, 0.0  ;;  %v8505_v29 = vadd.f32 %v8444_v28, %v4406_v31  ;;  %v4405_v61 = vmul.f32 %v8441_v22, %v4383_v27  ;;  %v4386_v34 = vmul.f32 %v6570_v19, %v8396_v10 }
 0xf63   :  { %v6572_v59 = vpop.eup %6571 }
 0xf64   :  { %4456 = vadd.xlane.f32.xlu0 %v4455_v21  ;;  %v4464_v7 = vsel %vm338_vm6, %v8505_v29, 0.0  ;;  %v8512_v32 = vadd.f32 %v8444_v28, %v4405_v61  ;;  %v4408_v57 = vmul.f32 %v8441_v22, %v4386_v34  ;;  %v4385_v11 = vmul.f32 %v6572_v59, %v8402_v42 }
 0xf65   :  { %v6574_v52 = vpop.eup %6573 }
 0xf66   :  { %4465 = vadd.xlane.f32.xlu1 %v4464_v7  ;;  %v4461_v2 = vsel %vm338_vm6, %v8512_v32, 0.0  ;;  %v8519_v53 = vadd.f32 %v8444_v28, %v4408_v57  ;;  %v4407_v10 = vmul.f32 %v8441_v22, %v4385_v11  ;;  %v4388_v51 = vmul.f32 %v6574_v52, %v8408_v24 }
 0xf67   :  { %v6576_v43 = vpop.eup %6575 }
 0xf68   :  { %4462 = vadd.xlane.f32.xlu0 %v4461_v2  ;;  %v4470_v12 = vsel %vm338_vm6, %v8519_v53, 0.0  ;;  %v8526_v1 = vadd.f32 %v8444_v28, %v4407_v10  ;;  %v4410_v42 = vmul.f32 %v8441_v22, %v4388_v51  ;;  %v4387_v60 = vmul.f32 %v6576_v43, %v8414_v17 }
 0xf69   :  { %v6578_v35 = vpop.eup %6577 }
 0xf6a   :  { %4471 = vadd.xlane.f32.xlu1 %v4470_v12  ;;  %v4467_v15 = vsel %vm338_vm6, %v8526_v1, 0.0  ;;  %v8533_v63 = vadd.f32 %v8444_v28, %v4410_v42  ;;  %v4409_v24 = vmul.f32 %v8441_v22, %v4387_v60  ;;  %v4390_v25 = vmul.f32 %v6578_v35, %v8420_v26 }
 0xf6b   :  { %v6580_v14 = vpop.eup %6579 }
 0xf6c   :  { %4468 = vadd.xlane.f32.xlu0 %v4467_v15  ;;  %v4476_v54 = vsel %vm338_vm6, %v8533_v63, 0.0  ;;  %v8540_v36 = vadd.f32 %v8444_v28, %v4409_v24  ;;  %v4412_v17 = vmul.f32 %v8441_v22, %v4390_v25  ;;  %v4389_v55 = vmul.f32 %v6580_v14, %v8426_v13 }
 0xf6e   :  { %4477 = vadd.xlane.f32.xlu1 %v4476_v54  ;;  %v4473_v56 = vsel %vm338_vm6, %v8540_v36, 0.0  ;;  %v8547_v58 = vadd.f32 %v8444_v28, %v4412_v17  ;;  %v4411_v26 = vmul.f32 %v8441_v22, %v4389_v55  ;;  %v4692_v22 = vld [vmem:[%s8560_s13 + $0x18] sm:$0xff] }
 0xf6f   :  { %6278 = vmatprep.subr.mxu0 %v4692_v22 }
 0xf70   :  { %4474 = vadd.xlane.f32.xlu0 %v4473_v56  ;;  %v4482_v39 = vsel %vm338_vm6, %v8547_v58, 0.0  ;;  %v8553_v20 = vadd.f32 %v8444_v28, %v4411_v26  ;;  %6279 = vmatpush3.msra.mxu0 %v4692_v22 }
 0xf72   :  { %4483 = vadd.xlane.f32.xlu1 %v4482_v39  ;;  %v4479_v13 = vsel %vm338_vm6, %v8553_v20, 0.0 }
 0xf74   :  { %4480 = vadd.xlane.f32.xlu0 %v4479_v13 }
 0xfde   :  { %v4442_v45 = vpop.xlane.xlu1 %4441 }
 0xfdf   :  { %v4486_v30 = vmul.f32 0.03125, %v4442_v45 }
 0xfe1   :  { %v8564_v28 = vsub.f32 %v8449_v9, %v4486_v30  ;;  %v4439_v23 = vpop.xlane.xlu0 %4438 }
 0xfe2   :  { %v4485_v3 = vmul.f32 0.03125, %v4439_v23 }
 0xfe3   :  { %v4448_v46 = vpop.xlane.xlu1 %4447  ;;  %v4518_v50 = vmul.f32 %v8564_v28, %v8564_v28 }
 0xfe4   :  { %v8569_v33 = vsub.f32 %v8456_v16, %v4485_v3  ;;  %v4488_v8 = vmul.f32 0.03125, %v4448_v46 }
 0xfe5   :  { %v4445_v47 = vpop.xlane.xlu0 %4444  ;;  %v4536_v44 = vsel %vm338_vm6, %v4518_v50, 0.0 }
 0xfe6   :  { %v8573_v38 = vsub.f32 %v8464_v5, %v4488_v8  ;;  %v4487_v48 = vmul.f32 0.03125, %v4445_v47  ;;  %4537 = vadd.xlane.f32.xlu1 %v4536_v44  ;;  %v4517_v9 = vmul.f32 %v8569_v33, %v8569_v33 }
 0xfe7   :  { %v4454_v40 = vpop.xlane.xlu1 %4453 }
 0xfe8   :  { %v8578_v0 = vsub.f32 %v8471_v37, %v4487_v48  ;;  %v4490_v62 = vmul.f32 0.03125, %v4454_v40  ;;  %v4533_v16 = vsel %vm338_vm6, %v4517_v9, 0.0  ;;  %v4520_v31 = vmul.f32 %v8573_v38, %v8573_v38 }
 0xfe9   :  { %4534 = vadd.xlane.f32.xlu0 %v4533_v16  ;;  %v4451_v27 = vpop.xlane.xlu0 %4450 }
 0xfea   :  { %v8584_v5 = vsub.f32 %v8475_v49, %v4490_v62  ;;  %v4489_v19 = vmul.f32 0.03125, %v4451_v27  ;;  %v4542_v4 = vsel %vm338_vm6, %v4520_v31, 0.0  ;;  %v4519_v21 = vmul.f32 %v8578_v0, %v8578_v0 }
 0xfeb   :  { %4543 = vadd.xlane.f32.xlu1 %v4542_v4  ;;  %v4460_v37 = vpop.xlane.xlu1 %4459  ;;  %v4691_v4 = vld [vmem:[%s8560_s13 + $0x10] sm:$0xff] }
 0xfec   :  { %v8590_v61 = vsub.f32 %v8485_v6, %v4489_v19  ;;  %v4492_v34 = vmul.f32 0.03125, %v4460_v37  ;;  %v4539_v59 = vsel %vm338_vm6, %v4519_v21, 0.0  ;;  %v4522_v7 = vmul.f32 %v8584_v5, %v8584_v5  ;;  %6280 = vmatprep.subr.mxu0 %v4691_v4  ;;  %v4689_v21 = vld [vmem:[%s8560_s13] sm:$0xff] }
 0xfed   :  { %4540 = vadd.xlane.f32.xlu0 %v4539_v59  ;;  %v4457_v49 = vpop.xlane.xlu0 %4456  ;;  %6281 = vmatpush3.msra.mxu0 %v4691_v4 }
 0xfee   :  { %v8596_v57 = vsub.f32 %v8493_v18, %v4492_v34  ;;  %v4491_v11 = vmul.f32 0.03125, %v4457_v49  ;;  %v4548_v52 = vsel %vm338_vm6, %v4522_v7, 0.0  ;;  %v4521_v2 = vmul.f32 %v8590_v61, %v8590_v61 }
 0xfef   :  { %4549 = vadd.xlane.f32.xlu1 %v4548_v52  ;;  %v4466_v6 = vpop.xlane.xlu1 %4465 }
 0xff0   :  { %v8602_v10 = vsub.f32 %v8496_v41, %v4491_v11  ;;  %v4494_v51 = vmul.f32 0.03125, %v4466_v6  ;;  %v4545_v43 = vsel %vm338_vm6, %v4521_v2, 0.0  ;;  %v4524_v12 = vmul.f32 %v8596_v57, %v8596_v57 }
 0xff1   :  { %4546 = vadd.xlane.f32.xlu0 %v4545_v43  ;;  %v4463_v18 = vpop.xlane.xlu0 %4462 }
 0xff2   :  { %v8608_v42 = vsub.f32 %v8505_v29, %v4494_v51  ;;  %v4493_v60 = vmul.f32 0.03125, %v4463_v18  ;;  %v4554_v35 = vsel %vm338_vm6, %v4524_v12, 0.0  ;;  %v4523_v15 = vmul.f32 %v8602_v10, %v8602_v10 }
 0xff3   :  { %4555 = vadd.xlane.f32.xlu1 %v4554_v35  ;;  %v4472_v41 = vpop.xlane.xlu1 %4471 }
 0xff4   :  { %v8614_v24 = vsub.f32 %v8512_v32, %v4493_v60  ;;  %v4496_v25 = vmul.f32 0.03125, %v4472_v41  ;;  %v4551_v14 = vsel %vm338_vm6, %v4523_v15, 0.0  ;;  %v4526_v54 = vmul.f32 %v8608_v42, %v8608_v42 }
 0xff5   :  { %4552 = vadd.xlane.f32.xlu0 %v4551_v14  ;;  %v4469_v29 = vpop.xlane.xlu0 %4468 }
 0xff6   :  { %v8620_v17 = vsub.f32 %v8519_v53, %v4496_v25  ;;  %v4495_v55 = vmul.f32 0.03125, %v4469_v29  ;;  %v4560_v56 = vsel %vm338_vm6, %v4526_v54, 0.0  ;;  %v4525_v26 = vmul.f32 %v8614_v24, %v8614_v24 }
 0xff7   :  { %4561 = vadd.xlane.f32.xlu1 %v4560_v56  ;;  %v4478_v32 = vpop.xlane.xlu1 %4477 }
 0xff8   :  { %v8626_v39 = vsub.f32 %v8526_v1, %v4495_v55  ;;  %v4498_v13 = vmul.f32 0.03125, %v4478_v32  ;;  %v4557_v22 = vsel %vm338_vm6, %v4525_v26, 0.0  ;;  %v4528_v45 = vmul.f32 %v8620_v17, %v8620_v17 }
 0xff9   :  { %4558 = vadd.xlane.f32.xlu0 %v4557_v22  ;;  %v4475_v53 = vpop.xlane.xlu0 %4474 }
 0xffa   :  { %v8632_v30 = vsub.f32 %v8533_v63, %v4498_v13  ;;  %v4497_v23 = vmul.f32 0.03125, %v4475_v53  ;;  %v4566_v3 = vsel %vm338_vm6, %v4528_v45, 0.0  ;;  %v4527_v46 = vmul.f32 %v8626_v39, %v8626_v39 }
 0xffb   :  { %4567 = vadd.xlane.f32.xlu1 %v4566_v3  ;;  %v4484_v1 = vpop.xlane.xlu1 %4483 }
 0xffc   :  { %v8638_v50 = vsub.f32 %v8540_v36, %v4497_v23  ;;  %v4500_v8 = vmul.f32 0.03125, %v4484_v1  ;;  %v4563_v47 = vsel %vm338_vm6, %v4527_v46, 0.0  ;;  %v4530_v44 = vmul.f32 %v8632_v30, %v8632_v30  ;;  %v8669_v23 = vld [vmem:[%s4959_s17] ss:$0 sm:$0xff] }
 0xffd   :  { %4564 = vadd.xlane.f32.xlu0 %v4563_v47  ;;  %v4481_v63 = vpop.xlane.xlu0 %4480 }
 0xffe   :  { %v8644_v48 = vsub.f32 %v8547_v58, %v4500_v8  ;;  %v4499_v9 = vmul.f32 0.03125, %v4481_v63  ;;  %v4572_v40 = vsel %vm338_vm6, %v4530_v44, 0.0  ;;  %v4529_v36 = vmul.f32 %v8638_v50, %v8638_v50 }
 0xfff   :  { %4573 = vadd.xlane.f32.xlu1 %v4572_v40 }
0x1000   :  { %v8650_v62 = vsub.f32 %v8553_v20, %v4499_v9  ;;  %v4569_v16 = vsel %vm338_vm6, %v4529_v36, 0.0  ;;  %v4532_v31 = vmul.f32 %v8644_v48, %v8644_v48  ;;  %v4690_v20 = vld [vmem:[%s8560_s13 + $0x8] sm:$0xff] }
0x1001   :  { %4570 = vadd.xlane.f32.xlu0 %v4569_v16  ;;  %6282 = vmatprep.subr.mxu0 %v4690_v20  ;;  %v8673_v16 = vld [vmem:[%s4960_s21] ss:$0 sm:$0xff] }
0x1002   :  { %v4578_v58 = vsel %vm338_vm6, %v4532_v31, 0.0  ;;  %v4531_v27 = vmul.f32 %v8650_v62, %v8650_v62  ;;  %6283 = vmatpush3.msra.mxu0 %v4690_v20 }
0x1003   :  { %4579 = vadd.xlane.f32.xlu1 %v4578_v58  ;;  %6284 = vmatprep.subr.mxu0 %v4689_v21 }
0x1004   :  { %v4575_v19 = vsel %vm338_vm6, %v4531_v27, 0.0  ;;  %6285 = vmatpush3.msra.mxu0 %v4689_v21 }
0x1005   :  { %4576 = vadd.xlane.f32.xlu0 %v4575_v19 }
0x106f   :  { %v4538_v37 = vpop.xlane.xlu1 %4537 }
0x1070   :  { %v4582_v34 = vmul.f32 0.03125, %v4538_v37 }
0x1072   :  { %v4598_v59 = vadd.f32 1e-05, %v4582_v34  ;;  %v4535_v7 = vpop.xlane.xlu0 %4534 }
0x1073   :  { %v4581_v49 = vmul.f32 0.03125, %v4535_v7 }
0x1074   :  { %6581 = vrsqrt.f32 %v4598_v59  ;;  %v4544_v11 = vpop.xlane.xlu1 %4543 }
0x1075   :  { %v4597_v52 = vadd.f32 1e-05, %v4581_v49  ;;  %v4584_v2 = vmul.f32 0.03125, %v4544_v11 }
0x1076   :  { %v4541_v6 = vpop.xlane.xlu0 %4540 }
0x1077   :  { %6583 = vrsqrt.f32 %v4597_v52  ;;  %v4600_v51 = vadd.f32 1e-05, %v4584_v2  ;;  %v4583_v43 = vmul.f32 0.03125, %v4541_v6 }
0x1078   :  { %v4550_v12 = vpop.xlane.xlu1 %4549 }
0x1079   :  { %6585 = vrsqrt.f32 %v4600_v51  ;;  %v4599_v18 = vadd.f32 1e-05, %v4583_v43  ;;  %v4586_v60 = vmul.f32 0.03125, %v4550_v12 }
0x107a   :  { %v4547_v35 = vpop.xlane.xlu0 %4546 }
0x107b   :  { %6587 = vrsqrt.f32 %v4599_v18  ;;  %v4602_v15 = vadd.f32 1e-05, %v4586_v60  ;;  %v4585_v41 = vmul.f32 0.03125, %v4547_v35 }
0x107c   :  { %v4556_v25 = vpop.xlane.xlu1 %4555 }
0x107d   :  { %6589 = vrsqrt.f32 %v4602_v15  ;;  %v4601_v14 = vadd.f32 1e-05, %v4585_v41  ;;  %v4588_v54 = vmul.f32 0.03125, %v4556_v25 }
0x107e   :  { %v4553_v29 = vpop.xlane.xlu0 %4552 }
0x107f   :  { %6591 = vrsqrt.f32 %v4601_v14  ;;  %v4604_v55 = vadd.f32 1e-05, %v4588_v54  ;;  %v4587_v56 = vmul.f32 0.03125, %v4553_v29 }
0x1080   :  { %v4562_v26 = vpop.xlane.xlu1 %4561 }
0x1081   :  { %v6582_v32 = vpop.eup %6581  ;;  %6593 = vrsqrt.f32 %v4604_v55  ;;  %v4603_v13 = vadd.f32 1e-05, %v4587_v56  ;;  %v4590_v22 = vmul.f32 0.03125, %v4562_v26 }
0x1082   :  { %v4630_v45 = vmul.f32 %v6582_v32, %v8564_v28  ;;  %v4559_v53 = vpop.xlane.xlu0 %4558 }
0x1083   :  { %6595 = vrsqrt.f32 %v4603_v13  ;;  %v4606_v3 = vadd.f32 1e-05, %v4590_v22  ;;  %v4589_v46 = vmul.f32 0.03125, %v4559_v53 }
0x1084   :  { %v6584_v1 = vpop.eup %6583  ;;  %v4568_v8 = vpop.xlane.xlu1 %4567  ;;  %v4652_v40 = vmul.f32 %v8669_v23, %v4630_v45 }
0x1085   :  { %6597 = vrsqrt.f32 %v4606_v3  ;;  %v4605_v47 = vadd.f32 1e-05, %v4589_v46  ;;  %v4592_v44 = vmul.f32 0.03125, %v4568_v8  ;;  %v4629_v63 = vmul.f32 %v6584_v1, %v8569_v33 }
0x1086   :  { %v6586_v9 = vpop.eup %6585  ;;  %v4565_v36 = vpop.xlane.xlu0 %4564  ;;  %v4674_v34 = vadd.f32 %v8673_v16, %v4652_v40 }
0x1087   :  { %v4632_v28 = vmul.f32 %v6586_v9, %v8573_v38  ;;  %6599 = vrsqrt.f32 %v4605_v47  ;;  %v4608_v31 = vadd.f32 1e-05, %v4592_v44  ;;  %v4591_v58 = vmul.f32 0.03125, %v4565_v36 }
0x1088   :  { %v6588_v27 = vpop.eup %6587  ;;  %v4574_v19 = vpop.xlane.xlu1 %4573  ;;  %v4651_v4 = vmul.f32 %v8669_v23, %v4629_v63 }
0x1089   :  { %6601 = vrsqrt.f32 %v4608_v31  ;;  %v4607_v20 = vadd.f32 1e-05, %v4591_v58  ;;  %v4594_v21 = vmul.f32 0.03125, %v4574_v19  ;;  %v4631_v33 = vmul.f32 %v6588_v27, %v8578_v0 }
0x108a   :  { %v6590_v37 = vpop.eup %6589  ;;  %v4571_v59 = vpop.xlane.xlu0 %4570  ;;  %v4673_v7 = vadd.f32 %v8673_v16, %v4651_v4  ;;  %v4654_v38 = vmul.f32 %v8669_v23, %v4632_v28 }
0x108b   :  { %v4634_v49 = vmul.f32 %v6590_v37, %v8584_v5  ;;  %6603 = vrsqrt.f32 %v4607_v20  ;;  %v4610_v11 = vadd.f32 1e-05, %v4594_v21  ;;  %v4593_v52 = vmul.f32 0.03125, %v4571_v59 }
0x108c   :  { %v6592_v2 = vpop.eup %6591  ;;  %6286 = vmatprep.mubr.msk.f32.mxu0 %vm338_vm6, %v4673_v7  ;;  %v4580_v6 = vpop.xlane.xlu1 %4579  ;;  %v4653_v51 = vmul.f32 %v8669_v23, %v4631_v33  ;;  %v4676_v35 = vadd.f32 %v8673_v16, %v4654_v38 }
0x108d   :  { %6605 = vrsqrt.f32 %v4610_v11  ;;  %v4609_v0 = vadd.f32 1e-05, %v4593_v52  ;;  %v4596_v43 = vmul.f32 0.03125, %v4580_v6  ;;  %6287 = vmatmul.mubr.msk.f32.vlgmr.msra.gmra.mxu0 %vm338_vm6, %v4674_v34  ;;  %v4633_v12 = vmul.f32 %v6592_v2, %v8590_v61 }
0x108e   :  { %v6594_v18 = vpop.eup %6593  ;;  %v4577_v60 = vpop.xlane.xlu0 %4576  ;;  %v4675_v5 = vadd.f32 %v8673_v16, %v4653_v51  ;;  %v4656_v15 = vmul.f32 %v8669_v23, %v4634_v49 }
0x108f   :  { %v4636_v41 = vmul.f32 %v6594_v18, %v8596_v57  ;;  %6607 = vrsqrt.f32 %v4609_v0  ;;  %v4612_v25 = vadd.f32 1e-05, %v4596_v43  ;;  %v4595_v14 = vmul.f32 0.03125, %v4577_v60 }
0x1090   :  { %v6596_v54 = vpop.eup %6595  ;;  %6289 = vmatprep.mubr.msk.f32.mxu0 %vm338_vm6, %v4675_v5  ;;  %v4655_v29 = vmul.f32 %v8669_v23, %v4633_v12  ;;  %v4678_v32 = vadd.f32 %v8673_v16, %v4656_v15 }
0x1091   :  { %6609 = vrsqrt.f32 %v4612_v25  ;;  %v4611_v61 = vadd.f32 1e-05, %v4595_v14  ;;  %6290 = vmatmul.mubr.msk.f32.gmra.mxu0 %vm338_vm6, %v4676_v35  ;;  %v4635_v55 = vmul.f32 %v6596_v54, %v8602_v10  ;;  %v4658_v22 = vmul.f32 %v8669_v23, %v4636_v41 }
0x1092   :  { %v6598_v56 = vpop.eup %6597  ;;  %v4677_v26 = vadd.f32 %v8673_v16, %v4655_v29 }
0x1093   :  { %v4638_v57 = vmul.f32 %v6598_v56, %v8608_v42  ;;  %6611 = vrsqrt.f32 %v4611_v61  ;;  %v4657_v13 = vmul.f32 %v8669_v23, %v4635_v55  ;;  %v4680_v42 = vadd.f32 %v8673_v16, %v4658_v22 }
0x1094   :  { %v6600_v45 = vpop.eup %6599  ;;  %6292 = vmatprep.mubr.msk.f32.mxu0 %vm338_vm6, %v4677_v26 }
0x1095   :  { %6293 = vmatmul.mubr.msk.f32.gmra.mxu0 %vm338_vm6, %v4678_v32  ;;  %v4679_v53 = vadd.f32 %v8673_v16, %v4657_v13  ;;  %v4637_v10 = vmul.f32 %v6600_v45, %v8614_v24  ;;  %v4660_v8 = vmul.f32 %v8669_v23, %v4638_v57 }
0x1096   :  { %v6602_v3 = vpop.eup %6601 }
0x1097   :  { %v4640_v46 = vmul.f32 %v6602_v3, %v8620_v17  ;;  %6295 = vmatprep.mubr.msk.f32.mxu0 %vm338_vm6, %v4679_v53  ;;  %v4659_v1 = vmul.f32 %v8669_v23, %v4637_v10  ;;  %v4682_v17 = vadd.f32 %v8673_v16, %v4660_v8 }
0x1098   :  { %v6604_v47 = vpop.eup %6603 }
0x1099   :  { %6296 = vmatmul.mubr.msk.f32.gmra.mxu0 %vm338_vm6, %v4680_v42  ;;  %v4681_v44 = vadd.f32 %v8673_v16, %v4659_v1  ;;  %v4639_v63 = vmul.f32 %v6604_v47, %v8626_v39  ;;  %v4662_v36 = vmul.f32 %v8669_v23, %v4640_v46 }
0x109a   :  { %v6606_v9 = vpop.eup %6605 }
0x109b   :  { %v4642_v24 = vmul.f32 %v6606_v9, %v8632_v30  ;;  %6298 = vmatprep.mubr.msk.f32.mxu0 %vm338_vm6, %v4681_v44  ;;  %v4661_v40 = vmul.f32 %v8669_v23, %v4639_v63  ;;  %v4684_v30 = vadd.f32 %v8673_v16, %v4662_v36 }
0x109c   :  { %v6608_v28 = vpop.eup %6607 }
0x109d   :  { %6299 = vmatmul.mubr.msk.f32.gmra.mxu0 %vm338_vm6, %v4682_v17  ;;  %v4683_v31 = vadd.f32 %v8673_v16, %v4661_v40  ;;  %v4641_v58 = vmul.f32 %v6608_v28, %v8638_v50  ;;  %v4664_v4 = vmul.f32 %v8669_v23, %v4642_v24 }
0x109e   :  { %v6610_v27 = vpop.eup %6609 }
0x109f   :  { %v4644_v39 = vmul.f32 %v6610_v27, %v8644_v48  ;;  %6301 = vmatprep.mubr.msk.f32.mxu0 %vm338_vm6, %v4683_v31  ;;  %v4663_v19 = vmul.f32 %v8669_v23, %v4641_v58  ;;  %v4686_v50 = vadd.f32 %v8673_v16, %v4664_v4 }
0x10a0   :  { %v6612_v20 = vpop.eup %6611 }
0x10a1   :  { %6302 = vmatmul.mubr.msk.f32.gmra.mxu0 %vm338_vm6, %v4684_v30  ;;  %v4685_v21 = vadd.f32 %v8673_v16, %v4663_v19  ;;  %v4643_v33 = vmul.f32 %v6612_v20, %v8650_v62  ;;  %v4666_v37 = vmul.f32 %v8669_v23, %v4644_v39  ;;  %v5260_v62 = vld [vmem:[%s4962_s25] ss:$0 sm:$0xff] }
0x10a3   :  { %6304 = vmatprep.mubr.msk.f32.mxu0 %vm338_vm6, %v4685_v21  ;;  %v4665_v48 = vmul.f32 %v8669_v23, %v4643_v33  ;;  %v4688_v59 = vadd.f32 %v8673_v16, %v4666_v37 }
0x10a5   :  { %6305 = vmatmul.mubr.msk.f32.gmra.mxu0 %vm338_vm6, %v4686_v50  ;;  %v4687_v34 = vadd.f32 %v8673_v16, %v4665_v48 }
0x10a7   :  { %6307 = vmatprep.mubr.msk.f32.mxu0 %vm338_vm6, %v4687_v34 }
0x10a9   :  { %6308 = vmatmul.mubr.msk.f32.gmra.mxu0 %vm338_vm6, %v4688_v59 }
0x114d   :  { %v6288_v23 = vpop.f32.mrf.mxu0 }
0x114e   :  { %v4820_v16 = vadd.f32 %v6288_v23, %v5260_v62 }
0x114f   :  { %v4814_v7 = vpop.f32.mrf.mxu0 }
0x1150   :  { %4894 = vst.msk [vmem:[%s8742_s29 + $0x8] sm:$0xff] %vm142_vm0, %v4820_v16  ;;  %v4815_v38 = vadd.f32 %v5260_v62, %v4814_v7 }
0x1151   :  { %v6291_v49 = vpop.f32.mrf.mxu0 }
0x1152   :  { %4893 = vst.msk [vmem:[%s8742_s29] sm:$0xff] %vm142_vm0, %v4815_v38  ;;  %v4830_v11 = vadd.f32 %v6291_v49, %v5260_v62 }
0x1153   :  { %v4824_v52 = vpop.f32.mrf.mxu0 }
0x1154   :  { %4896 = vst.msk [vmem:[%s8742_s29 + $0x18] sm:$0xff] %vm142_vm0, %v4830_v11  ;;  %v4825_v2 = vadd.f32 %v5260_v62, %v4824_v52 }
0x1155   :  { %v6294_v6 = vpop.f32.mrf.mxu0 }
0x1156   :  { %4895 = vst.msk [vmem:[%s8742_s29 + $0x10] sm:$0xff] %vm142_vm0, %v4825_v2  ;;  %v4840_v51 = vadd.f32 %v6294_v6, %v5260_v62 }
0x1157   :  { %v4834_v0 = vpop.f32.mrf.mxu0 }
0x1158   :  { %4898 = vst.msk [vmem:[%s8742_s29 + $0x28] sm:$0xff] %vm142_vm0, %v4840_v51  ;;  %v4835_v43 = vadd.f32 %v5260_v62, %v4834_v0 }
0x1159   :  { %v6297_v12 = vpop.f32.mrf.mxu0 }
0x115a   :  { %4897 = vst.msk [vmem:[%s8742_s29 + $0x20] sm:$0xff] %vm142_vm0, %v4835_v43  ;;  %v4850_v18 = vadd.f32 %v6297_v12, %v5260_v62 }
0x115b   :  { %v4844_v60 = vpop.f32.mrf.mxu0 }
0x115c   :  { %4900 = vst.msk [vmem:[%s8742_s29 + $0x38] sm:$0xff] %vm142_vm0, %v4850_v18  ;;  %v4845_v5 = vadd.f32 %v5260_v62, %v4844_v60 }
0x115d   :  { %v6300_v35 = vpop.f32.mrf.mxu0 }
0x115e   :  { %4899 = vst.msk [vmem:[%s8742_s29 + $0x30] sm:$0xff] %vm142_vm0, %v4845_v5  ;;  %v4860_v15 = vadd.f32 %v6300_v35, %v5260_v62 }
0x115f   :  { %v4854_v41 = vpop.f32.mrf.mxu0 }
0x1160   :  { %4902 = vst.msk [vmem:[%s8742_s29 + $0x48] sm:$0xff] %vm142_vm0, %v4860_v15  ;;  %v4855_v25 = vadd.f32 %v5260_v62, %v4854_v41 }
0x1161   :  { %v6303_v14 = vpop.f32.mrf.mxu0 }
0x1162   :  { %4901 = vst.msk [vmem:[%s8742_s29 + $0x40] sm:$0xff] %vm142_vm0, %v4855_v25  ;;  %v4870_v54 = vadd.f32 %v6303_v14, %v5260_v62 }
0x1163   :  { %v4864_v29 = vpop.f32.mrf.mxu0 }
0x1164   :  { %4904 = vst.msk [vmem:[%s8742_s29 + $0x58] sm:$0xff] %vm142_vm0, %v4870_v54  ;;  %v4865_v61 = vadd.f32 %v5260_v62, %v4864_v29 }
0x1165   :  { %v6306_v55 = vpop.f32.mrf.mxu0 }
0x1166   :  { %4903 = vst.msk [vmem:[%s8742_s29 + $0x50] sm:$0xff] %vm142_vm0, %v4865_v61  ;;  %v4880_v56 = vadd.f32 %v6306_v55, %v5260_v62 }
0x1167   :  { %v4874_v26 = vpop.f32.mrf.mxu0 }
0x1168   :  { %4906 = vst.msk [vmem:[%s8742_s29 + $0x68] sm:$0xff] %vm142_vm0, %v4880_v56  ;;  %v4875_v32 = vadd.f32 %v5260_v62, %v4874_v26 }
0x1169   :  { %v6309_v57 = vpop.f32.mrf.mxu0 }
0x116a   :  { %4905 = vst.msk [vmem:[%s8742_s29 + $0x60] sm:$0xff] %vm142_vm0, %v4875_v32  ;;  %v4890_v13 = vadd.f32 %v6309_v57, %v5260_v62 }
0x116b   :  { %v4884_v22 = vpop.f32.mrf.mxu0 }
0x116c   :  { %4908 = vst.msk [vmem:[%s8742_s29 + $0x78] sm:$0xff] %vm142_vm0, %v4890_v13  ;;  %v4885_v45 = vadd.f32 %v5260_v62, %v4884_v22 }
0x116e   :  { %4907 = vst.msk [vmem:[%s8742_s29 + $0x70] sm:$0xff] %vm142_vm0, %v4885_v45 }

</bundles_post_ra>
